<compile_context>
chip_gen: v6e
topology: v6e:2x2x1
jax: 0.10.0
libtpu: 0.0.40
codegen_flags: <defaults>
</compile_context>

<pallas_src>
from functools import partial

import jax
import jax.numpy as jnp
from jax.experimental import pallas as pl
from jax.experimental.pallas import tpu as pltpu


def make_divisible(v, divisor=8, min_value=None):
    min_value = min_value or divisor
    new_v = max(min_value, int(v + divisor / 2) // divisor * divisor)
    if new_v < 0.9 * v:
        new_v += divisor
    return new_v


# ----------------------------------------------------------------------------------
# Fused EdgeResidual kernel (one batch block per grid step)
# ----------------------------------------------------------------------------------
def _edge_residual_kernel(xp_ref, wcat_ref, bexp_ref, w1_ref, b1_ref,
                          w2_ref, b2_ref, wpwl_ref, bpwl_ref,
                          o_ref, col_ref, *, has_se, has_residual):
    # xp_ref:   (Bb, H+2, W+2, Cin)  spatially padded NHWC input tile (bf16)
    # wcat_ref: (9*Cin, Cmid)        conv_exp weights (BN1 folded), K order (dh, dw, c)
    # bexp_ref: (1, Cmid)            folded BN1 bias (f32)
    # w1_ref:   (Cmid, Cr)  b1_ref: (1, Cr)      SE reduce (pre-transposed)
    # w2_ref:   (Cr, Cmid)  b2_ref: (1, Cmid)    SE expand (pre-transposed)
    # wpwl_ref: (Cmid, Cout) bpwl_ref: (1, Cout) conv_pwl (BN2 folded, pre-transposed)
    # o_ref:    (Bb, Cout, H*W)      lane-dense output block
    # col_ref:  (Bb*H*W, 9*Cin)      bf16 im2col scratch (VMEM)
    bb, hp, wp, cin = xp_ref.shape
    h, w = hp - 2, wp - 2
    hw = h * w
    rows = bb * hw
    cm = wcat_ref.shape[-1]
    cout = o_ref.shape[1]

    # --- stage im2col: 9 shifted windows -> one (rows, 9*Cin) bf16 slab ------------
    # Every logical column of col_ref is rewritten each grid step (no stale lanes).
    for dh in range(3):
        for dw in range(3):
            t = dh * 3 + dw
            patch = xp_ref[:, dh:dh + h, dw:dw + w, :].reshape(rows, cin)
            col_ref[:, t * cin:(t + 1) * cin] = patch.astype(col_ref.dtype)

    # --- conv_exp as ONE big-K MXU matmul + folded BN1 + ReLU ----------------------
    mid = jnp.dot(col_ref[...], wcat_ref[...],
                  preferred_element_type=jnp.float32)          # (rows, Cmid) f32
    mid = jnp.maximum(mid + bexp_ref[...], 0.0)

    # --- SqueezeExcite --------------------------------------------------------------
    if has_se:
        mid3 = mid.reshape(bb, hw, cm)
        # global average pool over valid spatial positions (true H*W divisor)
        pooled = jnp.sum(mid3, axis=1) * (1.0 / hw)            # (Bb, Cmid) f32
        hid = jnp.maximum(
            jnp.dot(pooled.astype(w1_ref.dtype), w1_ref[...],
                    preferred_element_type=jnp.float32) + b1_ref[...], 0.0)
        logit = jnp.dot(hid.astype(w2_ref.dtype), w2_ref[...],
                        preferred_element_type=jnp.float32) + b2_ref[...]
        gate = jax.nn.sigmoid(logit)                           # (Bb, Cmid) f32
        mid = (mid3 * gate[:, None, :]).reshape(rows, cm)

    # --- conv_pwl (1x1) + folded BN2 ------------------------------------------------
    out = jnp.dot(mid.astype(wpwl_ref.dtype), wpwl_ref[...],
                  preferred_element_type=jnp.float32) + bpwl_ref[...]   # (rows, Cout)

    # --- residual add (eval mode: drop_connect is identity) -------------------------
    if has_residual:
        res = xp_ref[:, 1:1 + h, 1:1 + w, :].reshape(rows, cin)
        out = out + res.astype(jnp.float32)

    # --- lane-dense store: (rows, Cout) -> (Bb, Cout, H*W), H*W dense on lanes ------
    out = jnp.transpose(out.reshape(bb, hw, cout), (0, 2, 1))
    o_ref[...] = out.astype(o_ref.dtype)


# ----------------------------------------------------------------------------------
# VMEM budgeting helpers
# ----------------------------------------------------------------------------------
def _round_up(v, m):
    return -(-v // m) * m


def _tile_bytes(shape, itemsize):
    """Bytes of a VMEM buffer including (sublane, 128)-tile padding of the minor dims."""
    sub = {4: 8, 2: 16, 1: 32}.get(itemsize, 8)
    s = list(shape)
    s[-1] = _round_up(s[-1], 128)
    if len(s) >= 2:
        s[-2] = _round_up(s[-2], sub)
    total = itemsize
    for d in s:
        total *= d
    return total


def _resident_vmem_bytes(bb, *, hp, wp, cin, cm, cout, cr, hw, out_itemsize):
    rows = bb * hw
    b = 0
    b += 2 * _tile_bytes((bb, hp, wp, cin), 2)            # input block (bf16), 2x buffered
    b += 2 * _tile_bytes((bb, cout, hw), out_itemsize)    # output block, 2x buffered
    for shp, it in (((9 * cin, cm), 2), ((1, cm), 4), ((cm, cr), 2), ((1, cr), 4),
                    ((cr, cm), 2), ((1, cm), 4), ((cm, cout), 2), ((1, cout), 4)):
        b += 2 * _tile_bytes(shp, it)                     # weights/biases (conservative x2)
    b += _tile_bytes((rows, 9 * cin), 2)                  # im2col scratch
    b += 3 * _tile_bytes((rows, cm), 4)                   # mid + gated mid + spill headroom
    b += _tile_bytes((rows, cout), 4)                     # pwl output value
    b += _tile_bytes((rows, cin), 2)                      # patch staging
    return b


def _pick_batch_block(n, block_bytes_fn, budget_bytes):
    divisors = [d for d in range(1, n + 1) if n % d == 0]
    fitting = [d for d in divisors if block_bytes_fn(d) <= budget_bytes]
    if not fitting:
        # TODO(synk): spatial (H) tiling with a 1-row halo for very large H*W*Cmid;
        # for now fall back to bb=1 and rely on the raised vmem_limit_bytes.
        return 1
    multi_step = [d for d in fitting if n // d >= 2]      # keep both v7x TCs busy
    return max(multi_step) if multi_step else max(fitting)


# ----------------------------------------------------------------------------------
# Wrapper
# ----------------------------------------------------------------------------------
def edge_residual(x, w_exp, bn1, se_params, w_pwl, bn2, *, stride=1, eps=1e-5):
    """EdgeResidual eval-mode forward.

    x:         (N, Cin, H, W) f32, NCHW (PyTorch layout)
    w_exp:     (Cmid, Cin, 3, 3)  conv_exp weight (no bias)
    bn1/bn2:   (gamma, beta, running_mean, running_var)
    se_params: (w_reduce (Cr, Cmid), b_reduce (Cr,), w_expand (Cmid, Cr), b_expand (Cmid,)) or None
    w_pwl:     (Cout, Cmid, 1, 1) conv_pwl weight (no bias)
    """
    assert stride == 1, "only stride=1 implemented"
    # TODO(synk): in this module variant stride lands on conv_pwl; stride>1 would
    # subsample the mid-activation rows (strided H*W index) before the pointwise matmul.
    n, cin, hgt, wdt = x.shape
    cm = w_exp.shape[0]
    cout = w_pwl.shape[0]
    hw = hgt * wdt
    has_se = se_params is not None
    has_residual = (cin == cout) and (stride == 1)

    f32, bf16 = jnp.float32, jnp.bfloat16

    # ---- fold BatchNorm (eval) into the convolutions in f32, then cast to bf16 ------
    g1, be1, m1, v1 = bn1
    s1 = g1 / jnp.sqrt(v1 + eps)
    sh1 = be1 - m1 * s1
    g2, be2, m2, v2 = bn2
    s2 = g2 / jnp.sqrt(v2 + eps)
    sh2 = be2 - m2 * s2

    # conv_exp + BN1 -> single (9*Cin, Cmid) matrix, K order (dh, dw, c)
    wexp_f = w_exp.astype(f32) * s1[:, None, None, None]               # (Cmid, Cin, 3, 3)
    wcat = jnp.transpose(wexp_f, (2, 3, 1, 0)).reshape(9 * cin, cm).astype(bf16)
    bexp = sh1.reshape(1, cm).astype(f32)

    if has_se:
        w_se1, b_se1, w_se2, b_se2 = se_params
        cr = w_se1.shape[0]
        w1t = jnp.transpose(w_se1.reshape(cr, cm)).astype(bf16)        # (Cmid, Cr)
        b1 = b_se1.reshape(1, cr).astype(f32)
        w2t = jnp.transpose(w_se2.reshape(cm, cr)).astype(bf16)        # (Cr, Cmid)
        b2 = b_se2.reshape(1, cm).astype(f32)
    else:
        cr = 8
        w1t = jnp.zeros((cm, cr), bf16)
        b1 = jnp.zeros((1, cr), f32)
        w2t = jnp.zeros((cr, cm), bf16)
        b2 = jnp.zeros((1, cm), f32)

    wpwl_t = jnp.transpose(w_pwl.reshape(cout, cm).astype(f32) * s2[:, None]).astype(bf16)
    bpwl = sh2.reshape(1, cout).astype(f32)

    # ---- layout plumbing (XLA side): NCHW -> NHWC, 1px zero-pad, cast to bf16 -------
    xp = jnp.pad(jnp.transpose(x, (0, 2, 3, 1)),
                 ((0, 0), (1, 1), (1, 1), (0, 0))).astype(bf16)
    hp, wp_ = hgt + 2, wdt + 2

    # ---- generation-aware VMEM budgeting ---------------------------------------------
    try:
        cap = int(pltpu.get_tpu_info().vmem_capacity_bytes)
    except Exception:
        cap = 64 * 1024 * 1024            # conservative fallback (v7x per-core VMEM)
    budget = min(cap // 3, 48 * 1024 * 1024)

    est = partial(_resident_vmem_bytes, hp=hp, wp=wp_, cin=cin, cm=cm, cout=cout,
                  cr=cr, hw=hw, out_itemsize=jnp.dtype(x.dtype).itemsize)
    bb = _pick_batch_block(n, est, budget)
    vmem_limit = int(min(cap * 0.9, max(est(bb) + (8 << 20), 32 << 20)))

    kernel = partial(_edge_residual_kernel, has_se=has_se, has_residual=has_residual)

    out_flat = pl.pallas_call(
        kernel,
        out_shape=jax.ShapeDtypeStruct((n, cout, hw), x.dtype),
        grid_spec=pltpu.PrefetchScalarGridSpec(
            num_scalar_prefetch=0,
            grid=(n // bb,),
            in_specs=[
                pl.BlockSpec((bb, hp, wp_, cin), lambda b: (b, 0, 0, 0)),
                # weights/biases: constant index maps -> fetched once, stay resident
                pl.BlockSpec((9 * cin, cm), lambda b: (0, 0)),
                pl.BlockSpec((1, cm), lambda b: (0, 0)),
                pl.BlockSpec((cm, cr), lambda b: (0, 0)),
                pl.BlockSpec((1, cr), lambda b: (0, 0)),
                pl.BlockSpec((cr, cm), lambda b: (0, 0)),
                pl.BlockSpec((1, cm), lambda b: (0, 0)),
                pl.BlockSpec((cm, cout), lambda b: (0, 0)),
                pl.BlockSpec((1, cout), lambda b: (0, 0)),
            ],
            out_specs=pl.BlockSpec((bb, cout, hw), lambda b: (b, 0, 0)),
            scratch_shapes=[pltpu.VMEM((bb * hw, 9 * cin), bf16)],
        ),
        compiler_params=pltpu.CompilerParams(
            dimension_semantics=("parallel",),
            vmem_limit_bytes=vmem_limit),
    )(xp, wcat, bexp, w1t, b1, w2t, b2, wpwl_t, bpwl)

    # (N, Cout, H*W) -> NCHW: pure metadata reshape, no extra HBM transpose pass.
    return out_flat.reshape(n, cout, hgt, wdt)


# ----------------------------------------------------------------------------------
# Pure-JAX reference (mirrors the PyTorch module in eval mode, full f32)
# ----------------------------------------------------------------------------------
def reference_edge_residual(x, w_exp, bn1, se_params, w_pwl, bn2, eps=1e-5):
    hi = jax.lax.Precision.HIGHEST

    def bn(y, p):
        g, b, m, v = p
        return (y - m[None, :, None, None]) / jnp.sqrt(v[None, :, None, None] + eps) \
            * g[None, :, None, None] + b[None, :, None, None]

    y = jax.lax.conv_general_dilated(
        x, w_exp, window_strides=(1, 1), padding=((1, 1), (1, 1)),
        dimension_numbers=('NCHW', 'OIHW', 'NCHW'), precision=hi)
    y = jnp.maximum(bn(y, bn1), 0.0)
    if se_params is not None:
        w1, b1, w2, b2 = se_params
        pooled = jnp.mean(y, axis=(2, 3))
        hid = jnp.maximum(jnp.dot(pooled, w1.T, precision=hi) + b1, 0.0)
        se = jnp.dot(hid, w2.T, precision=hi) + b2
        y = y * jax.nn.sigmoid(se)[:, :, None, None]
    z = jax.lax.conv_general_dilated(
        y, w_pwl, window_strides=(1, 1), padding=((0, 0), (0, 0)),
        dimension_numbers=('NCHW', 'OIHW', 'NCHW'), precision=hi)
    z = bn(z, bn2)
    if x.shape[1] == z.shape[1]:
        z = z + x
    return z


if __name__ == "__main__":
    # EdgeResidual config: in_chs=32, out_chs=32, exp_kernel_size=3, exp_ratio=4 -> mid=128,
    # stride=1, se_ratio=0.25 with se_kwargs defaults (reduce_mid=False, divisor=1) -> Cr=8.
    in_chs, out_chs = 32, 32
    exp_ratio = 4.0
    mid_chs = make_divisible(in_chs * exp_ratio)          # 128
    se_ratio = 0.25
    reduced_chs = make_divisible(in_chs * se_ratio, 1)    # 8 (reduced_base_chs = in_chs)
    n, hgt, wdt = 2, 16, 16
    eps = 1e-5

    key = jax.random.PRNGKey(0)
    ks = jax.random.split(key, 16)

    x = jax.random.normal(ks[0], (n, in_chs, hgt, wdt), jnp.float32)

    # conv_exp (no bias) + BN1
    w_exp = jax.random.normal(ks[1], (mid_chs, in_chs, 3, 3), jnp.float32) * 0.05
    bn1 = (1.0 + 0.1 * jax.random.normal(ks[2], (mid_chs,), jnp.float32),
           0.1 * jax.random.normal(ks[3], (mid_chs,), jnp.float32),
           0.1 * jax.random.normal(ks[4], (mid_chs,), jnp.float32),
           jax.random.uniform(ks[5], (mid_chs,), jnp.float32, 0.5, 1.5))

    # SqueezeExcite: conv_reduce (Cr, Cmid) + bias, conv_expand (Cmid, Cr) + bias
    se_params = (jax.random.normal(ks[6], (reduced_chs, mid_chs), jnp.float32) * 0.1,
                 0.1 * jax.random.normal(ks[7], (reduced_chs,), jnp.float32),
                 jax.random.normal(ks[8], (mid_chs, reduced_chs), jnp.float32) * 0.1,
                 0.1 * jax.random.normal(ks[9], (mid_chs,), jnp.float32))

    # conv_pwl (no bias) + BN2
    w_pwl = jax.random.normal(ks[10], (out_chs, mid_chs, 1, 1), jnp.float32) * 0.05
    bn2 = (1.0 + 0.1 * jax.random.normal(ks[11], (out_chs,), jnp.float32),
           0.1 * jax.random.normal(ks[12], (out_chs,), jnp.float32),
           0.1 * jax.random.normal(ks[13], (out_chs,), jnp.float32),
           jax.random.uniform(ks[14], (out_chs,), jnp.float32, 0.5, 1.5))

    out = edge_residual(x, w_exp, bn1, se_params, w_pwl, bn2, stride=1, eps=eps)
    jax.block_until_ready(out)

    ref = reference_edge_residual(x, w_exp, bn1, se_params, w_pwl, bn2, eps=eps)
    err = float(jnp.max(jnp.abs(out - ref)))
    # bf16 inputs/weights with f32 accumulation vs. an all-f32 HIGHEST reference:
    # expected max deviation ~1e-2; 3e-2 keeps >2x margin while still being meaningful.
    assert jnp.allclose(out, ref, atol=3e-2, rtol=3e-2), f"mismatch vs reference (max err {err})"

    print("KERNEL_OK")
</pallas_src>

<mosaic_0001>
module attributes {stable_mosaic.version = 11 : i64} {
  func.func @_edge_residual_kernel(%arg0: i32, %arg1: memref<1x18x18x32xbf16, #tpu.memory_space<vmem>>, %arg2: memref<288x128xbf16, #tpu.memory_space<vmem>>, %arg3: memref<1x128xf32, #tpu.memory_space<vmem>>, %arg4: memref<128x8xbf16, #tpu.memory_space<vmem>>, %arg5: memref<1x8xf32, #tpu.memory_space<vmem>>, %arg6: memref<8x128xbf16, #tpu.memory_space<vmem>>, %arg7: memref<1x128xf32, #tpu.memory_space<vmem>>, %arg8: memref<128x32xbf16, #tpu.memory_space<vmem>>, %arg9: memref<1x32xf32, #tpu.memory_space<vmem>>, %arg10: memref<1x32x256xf32, #tpu.memory_space<vmem>>, %arg11: memref<256x288xbf16, #tpu.memory_space<vmem>>) attributes {dimension_semantics = [#tpu.dimension_semantics<parallel>], iteration_bounds = array<i64: 2>, scalar_prefetch = 0 : i64, scratch_operands = 1 : i64, tpu.core_type = #tpu.core_type<tc>, window_params = [{transform_indices = @transform_0, window_bounds = array<i64: 1, 18, 18, 32>}, {pipeline_mode = #tpu.pipeline_mode<synchronous>, transform_indices = @transform_1, window_bounds = array<i64: 288, 128>}, {pipeline_mode = #tpu.pipeline_mode<synchronous>, transform_indices = @transform_2, window_bounds = array<i64: 1, 128>}, {pipeline_mode = #tpu.pipeline_mode<synchronous>, transform_indices = @transform_3, window_bounds = array<i64: 128, 8>}, {pipeline_mode = #tpu.pipeline_mode<synchronous>, transform_indices = @transform_4, window_bounds = array<i64: 1, 8>}, {pipeline_mode = #tpu.pipeline_mode<synchronous>, transform_indices = @transform_5, window_bounds = array<i64: 8, 128>}, {pipeline_mode = #tpu.pipeline_mode<synchronous>, transform_indices = @transform_6, window_bounds = array<i64: 1, 128>}, {pipeline_mode = #tpu.pipeline_mode<synchronous>, transform_indices = @transform_7, window_bounds = array<i64: 128, 32>}, {pipeline_mode = #tpu.pipeline_mode<synchronous>, transform_indices = @transform_8, window_bounds = array<i64: 1, 32>}, {transform_indices = @transform_9, window_bounds = array<i64: 1, 32, 256>}]} {
    %c0 = arith.constant 0 : index
    %c0_0 = arith.constant 0 : index
    %c0_1 = arith.constant 0 : index
    %c0_2 = arith.constant 0 : index
    %0 = vector.load %arg1[%c0, %c0_0, %c0_1, %c0_2] : memref<1x18x18x32xbf16, #tpu.memory_space<vmem>>, vector<1x16x16x32xbf16>
    %1 = vector.shape_cast %0 : vector<1x16x16x32xbf16> to vector<256x32xbf16>
    %c0_3 = arith.constant 0 : index
    %c0_4 = arith.constant 0 : index
    %2 = vector.load %arg11[%c0_3, %c0_4] : memref<256x288xbf16, #tpu.memory_space<vmem>>, vector<256x32xbf16>
    tpu.vector_store %arg11[%c0_3, %c0_4], %1 {strides = array<i32>} : memref<256x288xbf16, #tpu.memory_space<vmem>>, vector<256x32xbf16>,
    %c0_5 = arith.constant 0 : index
    %c0_6 = arith.constant 0 : index
    %c1 = arith.constant 1 : index
    %c0_7 = arith.constant 0 : index
    %3 = vector.load %arg1[%c0_5, %c0_6, %c1, %c0_7] : memref<1x18x18x32xbf16, #tpu.memory_space<vmem>>, vector<1x16x16x32xbf16>
    %4 = vector.shape_cast %3 : vector<1x16x16x32xbf16> to vector<256x32xbf16>
    %c0_8 = arith.constant 0 : index
    %c32 = arith.constant 32 : index
    %5 = vector.load %arg11[%c0_8, %c32] : memref<256x288xbf16, #tpu.memory_space<vmem>>, vector<256x32xbf16>
    tpu.vector_store %arg11[%c0_8, %c32], %4 {strides = array<i32>} : memref<256x288xbf16, #tpu.memory_space<vmem>>, vector<256x32xbf16>,
    %c0_9 = arith.constant 0 : index
    %c0_10 = arith.constant 0 : index
    %c2 = arith.constant 2 : index
    %c0_11 = arith.constant 0 : index
    %6 = vector.load %arg1[%c0_9, %c0_10, %c2, %c0_11] : memref<1x18x18x32xbf16, #tpu.memory_space<vmem>>, vector<1x16x16x32xbf16>
    %7 = vector.shape_cast %6 : vector<1x16x16x32xbf16> to vector<256x32xbf16>
    %c0_12 = arith.constant 0 : index
    %c64 = arith.constant 64 : index
    %8 = vector.load %arg11[%c0_12, %c64] : memref<256x288xbf16, #tpu.memory_space<vmem>>, vector<256x32xbf16>
    tpu.vector_store %arg11[%c0_12, %c64], %7 {strides = array<i32>} : memref<256x288xbf16, #tpu.memory_space<vmem>>, vector<256x32xbf16>,
    %c0_13 = arith.constant 0 : index
    %c1_14 = arith.constant 1 : index
    %c0_15 = arith.constant 0 : index
    %c0_16 = arith.constant 0 : index
    %9 = vector.load %arg1[%c0_13, %c1_14, %c0_15, %c0_16] : memref<1x18x18x32xbf16, #tpu.memory_space<vmem>>, vector<1x16x16x32xbf16>
    %10 = vector.shape_cast %9 : vector<1x16x16x32xbf16> to vector<256x32xbf16>
    %c0_17 = arith.constant 0 : index
    %c96 = arith.constant 96 : index
    %11 = vector.load %arg11[%c0_17, %c96] : memref<256x288xbf16, #tpu.memory_space<vmem>>, vector<256x32xbf16>
    tpu.vector_store %arg11[%c0_17, %c96], %10 {strides = array<i32>} : memref<256x288xbf16, #tpu.memory_space<vmem>>, vector<256x32xbf16>,
    %c0_18 = arith.constant 0 : index
    %c1_19 = arith.constant 1 : index
    %c1_20 = arith.constant 1 : index
    %c0_21 = arith.constant 0 : index
    %12 = vector.load %arg1[%c0_18, %c1_19, %c1_20, %c0_21] : memref<1x18x18x32xbf16, #tpu.memory_space<vmem>>, vector<1x16x16x32xbf16>
    %13 = vector.shape_cast %12 : vector<1x16x16x32xbf16> to vector<256x32xbf16>
    %c0_22 = arith.constant 0 : index
    %c128 = arith.constant 128 : index
    %14 = vector.load %arg11[%c0_22, %c128] : memref<256x288xbf16, #tpu.memory_space<vmem>>, vector<256x32xbf16>
    tpu.vector_store %arg11[%c0_22, %c128], %13 {strides = array<i32>} : memref<256x288xbf16, #tpu.memory_space<vmem>>, vector<256x32xbf16>,
    %c0_23 = arith.constant 0 : index
    %c1_24 = arith.constant 1 : index
    %c2_25 = arith.constant 2 : index
    %c0_26 = arith.constant 0 : index
    %15 = vector.load %arg1[%c0_23, %c1_24, %c2_25, %c0_26] : memref<1x18x18x32xbf16, #tpu.memory_space<vmem>>, vector<1x16x16x32xbf16>
    %16 = vector.shape_cast %15 : vector<1x16x16x32xbf16> to vector<256x32xbf16>
    %c0_27 = arith.constant 0 : index
    %c160 = arith.constant 160 : index
    %17 = vector.load %arg11[%c0_27, %c160] : memref<256x288xbf16, #tpu.memory_space<vmem>>, vector<256x32xbf16>
    tpu.vector_store %arg11[%c0_27, %c160], %16 {strides = array<i32>} : memref<256x288xbf16, #tpu.memory_space<vmem>>, vector<256x32xbf16>,
    %c0_28 = arith.constant 0 : index
    %c2_29 = arith.constant 2 : index
    %c0_30 = arith.constant 0 : index
    %c0_31 = arith.constant 0 : index
    %18 = vector.load %arg1[%c0_28, %c2_29, %c0_30, %c0_31] : memref<1x18x18x32xbf16, #tpu.memory_space<vmem>>, vector<1x16x16x32xbf16>
    %19 = vector.shape_cast %18 : vector<1x16x16x32xbf16> to vector<256x32xbf16>
    %c0_32 = arith.constant 0 : index
    %c192 = arith.constant 192 : index
    %20 = vector.load %arg11[%c0_32, %c192] : memref<256x288xbf16, #tpu.memory_space<vmem>>, vector<256x32xbf16>
    tpu.vector_store %arg11[%c0_32, %c192], %19 {strides = array<i32>} : memref<256x288xbf16, #tpu.memory_space<vmem>>, vector<256x32xbf16>,
    %c0_33 = arith.constant 0 : index
    %c2_34 = arith.constant 2 : index
    %c1_35 = arith.constant 1 : index
    %c0_36 = arith.constant 0 : index
    %21 = vector.load %arg1[%c0_33, %c2_34, %c1_35, %c0_36] : memref<1x18x18x32xbf16, #tpu.memory_space<vmem>>, vector<1x16x16x32xbf16>
    %22 = vector.shape_cast %21 : vector<1x16x16x32xbf16> to vector<256x32xbf16>
    %c0_37 = arith.constant 0 : index
    %c224 = arith.constant 224 : index
    %23 = vector.load %arg11[%c0_37, %c224] : memref<256x288xbf16, #tpu.memory_space<vmem>>, vector<256x32xbf16>
    tpu.vector_store %arg11[%c0_37, %c224], %22 {strides = array<i32>} : memref<256x288xbf16, #tpu.memory_space<vmem>>, vector<256x32xbf16>,
    %c0_38 = arith.constant 0 : index
    %c2_39 = arith.constant 2 : index
    %c2_40 = arith.constant 2 : index
    %c0_41 = arith.constant 0 : index
    %24 = vector.load %arg1[%c0_38, %c2_39, %c2_40, %c0_41] : memref<1x18x18x32xbf16, #tpu.memory_space<vmem>>, vector<1x16x16x32xbf16>
    %25 = vector.shape_cast %24 : vector<1x16x16x32xbf16> to vector<256x32xbf16>
    %c0_42 = arith.constant 0 : index
    %c256 = arith.constant 256 : index
    %26 = vector.load %arg11[%c0_42, %c256] : memref<256x288xbf16, #tpu.memory_space<vmem>>, vector<256x32xbf16>
    tpu.vector_store %arg11[%c0_42, %c256], %25 {strides = array<i32>} : memref<256x288xbf16, #tpu.memory_space<vmem>>, vector<256x32xbf16>,
    %c0_43 = arith.constant 0 : index
    %c0_44 = arith.constant 0 : index
    %27 = vector.load %arg11[%c0_43, %c0_44] : memref<256x288xbf16, #tpu.memory_space<vmem>>, vector<256x288xbf16>
    %c0_45 = arith.constant 0 : index
    %c0_46 = arith.constant 0 : index
    %28 = vector.load %arg2[%c0_45, %c0_46] : memref<288x128xbf16, #tpu.memory_space<vmem>>, vector<288x128xbf16>
    %cst = arith.constant dense<0.000000e+00> : vector<256x128xf32>
    %29 = tpu.matmul %27, %28, %cst {dimension_numbers = #tpu.dot_dimension_numbers<[1], [0], [0], [1], [0, 0, 1, 1], [], []>} : vector<256x288xbf16>, vector<288x128xbf16>, vector<256x128xf32> -> vector<256x128xf32>
    %c0_47 = arith.constant 0 : index
    %c0_48 = arith.constant 0 : index
    %30 = vector.load %arg3[%c0_47, %c0_48] : memref<1x128xf32, #tpu.memory_space<vmem>>, vector<1x128xf32>
    %31 = vector.broadcast %30 : vector<1x128xf32> to vector<256x128xf32>
    %32 = arith.addf %29, %31 : vector<256x128xf32>
    %cst_49 = arith.constant 0.000000e+00 : f32
    %33 = vector.broadcast %cst_49 : f32 to vector<256x128xf32>
    %34 = arith.maximumf %32, %33 : vector<256x128xf32>
    %35 = vector.shape_cast %34 : vector<256x128xf32> to vector<1x256x128xf32>
    %cst_50 = arith.constant dense<0.000000e+00> : vector<1x128xf32>
    %36 = vector.multi_reduction <add>, %35, %cst_50 [1] : vector<1x256x128xf32> to vector<1x128xf32>
    %cst_51 = arith.constant 3.906250e-03 : f32
    %37 = vector.broadcast %cst_51 : f32 to vector<1x128xf32>
    %38 = arith.mulf %36, %37 : vector<1x128xf32>
    %39 = arith.truncf %38 : vector<1x128xf32> to vector<1x128xbf16>
    %c0_52 = arith.constant 0 : index
    %c0_53 = arith.constant 0 : index
    %40 = vector.load %arg4[%c0_52, %c0_53] : memref<128x8xbf16, #tpu.memory_space<vmem>>, vector<128x8xbf16>
    %cst_54 = arith.constant dense<0.000000e+00> : vector<1x8xf32>
    %41 = tpu.matmul %39, %40, %cst_54 {dimension_numbers = #tpu.dot_dimension_numbers<[1], [0], [0], [1], [0, 0, 1, 1], [], []>} : vector<1x128xbf16>, vector<128x8xbf16>, vector<1x8xf32> -> vector<1x8xf32>
    %c0_55 = arith.constant 0 : index
    %c0_56 = arith.constant 0 : index
    %42 = vector.load %arg5[%c0_55, %c0_56] : memref<1x8xf32, #tpu.memory_space<vmem>>, vector<1x8xf32>
    %43 = arith.addf %41, %42 : vector<1x8xf32>
    %cst_57 = arith.constant 0.000000e+00 : f32
    %44 = vector.broadcast %cst_57 : f32 to vector<1x8xf32>
    %45 = arith.maximumf %43, %44 : vector<1x8xf32>
    %46 = arith.truncf %45 : vector<1x8xf32> to vector<1x8xbf16>
    %c0_58 = arith.constant 0 : index
    %c0_59 = arith.constant 0 : index
    %47 = vector.load %arg6[%c0_58, %c0_59] : memref<8x128xbf16, #tpu.memory_space<vmem>>, vector<8x128xbf16>
    %cst_60 = arith.constant dense<0.000000e+00> : vector<1x128xf32>
    %48 = tpu.matmul %46, %47, %cst_60 {dimension_numbers = #tpu.dot_dimension_numbers<[1], [0], [0], [1], [0, 0, 1, 1], [], []>} : vector<1x8xbf16>, vector<8x128xbf16>, vector<1x128xf32> -> vector<1x128xf32>
    %c0_61 = arith.constant 0 : index
    %c0_62 = arith.constant 0 : index
    %49 = vector.load %arg7[%c0_61, %c0_62] : memref<1x128xf32, #tpu.memory_space<vmem>>, vector<1x128xf32>
    %50 = arith.addf %48, %49 : vector<1x128xf32>
    %51 = arith.negf %50 : vector<1x128xf32>
    %52 = math.exp %51 : vector<1x128xf32>
    %cst_63 = arith.constant 1.000000e+00 : f32
    %53 = vector.broadcast %cst_63 : f32 to vector<1x128xf32>
    %54 = arith.addf %53, %52 : vector<1x128xf32>
    %55 = arith.divf %53, %54 : vector<1x128xf32>
    %56 = vector.shape_cast %55 : vector<1x128xf32> to vector<1x1x128xf32>
    %57 = vector.broadcast %56 : vector<1x1x128xf32> to vector<1x256x128xf32>
    %58 = arith.mulf %35, %57 : vector<1x256x128xf32>
    %59 = vector.shape_cast %58 : vector<1x256x128xf32> to vector<256x128xf32>
    %60 = arith.truncf %59 : vector<256x128xf32> to vector<256x128xbf16>
    %c0_64 = arith.constant 0 : index
    %c0_65 = arith.constant 0 : index
    %61 = vector.load %arg8[%c0_64, %c0_65] : memref<128x32xbf16, #tpu.memory_space<vmem>>, vector<128x32xbf16>
    %cst_66 = arith.constant dense<0.000000e+00> : vector<256x32xf32>
    %62 = tpu.matmul %60, %61, %cst_66 {dimension_numbers = #tpu.dot_dimension_numbers<[1], [0], [0], [1], [0, 0, 1, 1], [], []>} : vector<256x128xbf16>, vector<128x32xbf16>, vector<256x32xf32> -> vector<256x32xf32>
    %c0_67 = arith.constant 0 : index
    %c0_68 = arith.constant 0 : index
    %63 = vector.load %arg9[%c0_67, %c0_68] : memref<1x32xf32, #tpu.memory_space<vmem>>, vector<1x32xf32>
    %64 = vector.broadcast %63 : vector<1x32xf32> to vector<256x32xf32>
    %65 = arith.addf %62, %64 : vector<256x32xf32>
    %c0_69 = arith.constant 0 : index
    %c1_70 = arith.constant 1 : index
    %c1_71 = arith.constant 1 : index
    %c0_72 = arith.constant 0 : index
    %66 = vector.load %arg1[%c0_69, %c1_70, %c1_71, %c0_72] : memref<1x18x18x32xbf16, #tpu.memory_space<vmem>>, vector<1x16x16x32xbf16>
    %67 = vector.shape_cast %66 : vector<1x16x16x32xbf16> to vector<256x32xbf16>
    %68 = arith.extf %67 : vector<256x32xbf16> to vector<256x32xf32>
    %69 = arith.addf %65, %68 : vector<256x32xf32>
    %70 = vector.shape_cast %69 : vector<256x32xf32> to vector<1x256x32xf32>
    %71 = tpu.transpose %70, [0, 2, 1] : vector<1x256x32xf32> -> vector<1x32x256xf32>
    %c0_73 = arith.constant 0 : index
    %c0_74 = arith.constant 0 : index
    %c0_75 = arith.constant 0 : index
    %72 = vector.load %arg10[%c0_73, %c0_74, %c0_75] : memref<1x32x256xf32, #tpu.memory_space<vmem>>, vector<1x32x256xf32>
    tpu.vector_store %arg10[%c0_73, %c0_74, %c0_75], %71 {strides = array<i32>} : memref<1x32x256xf32, #tpu.memory_space<vmem>>, vector<1x32x256xf32>,
    return
  }
  func.func @transform_0(%arg0: i32) -> (i32, i32, i32, i32) {
    %c0_i32 = arith.constant 0 : i32
    %c0_i32_0 = arith.constant 0 : i32
    %c0_i32_1 = arith.constant 0 : i32
    %c0_i32_2 = arith.constant 0 : i32
    return %arg0, %c0_i32, %c0_i32_0, %c0_i32_1 : i32, i32, i32, i32
  }
  func.func @transform_1(%arg0: i32) -> (i32, i32) {
    %c0_i32 = arith.constant 0 : i32
    %c0_i32_0 = arith.constant 0 : i32
    %c0_i32_1 = arith.constant 0 : i32
    return %c0_i32, %c0_i32_0 : i32, i32
  }
  func.func @transform_2(%arg0: i32) -> (i32, i32) {
    %c0_i32 = arith.constant 0 : i32
    %c0_i32_0 = arith.constant 0 : i32
    %c0_i32_1 = arith.constant 0 : i32
    return %c0_i32, %c0_i32_0 : i32, i32
  }
  func.func @transform_3(%arg0: i32) -> (i32, i32) {
    %c0_i32 = arith.constant 0 : i32
    %c0_i32_0 = arith.constant 0 : i32
    %c0_i32_1 = arith.constant 0 : i32
    return %c0_i32, %c0_i32_0 : i32, i32
  }
  func.func @transform_4(%arg0: i32) -> (i32, i32) {
    %c0_i32 = arith.constant 0 : i32
    %c0_i32_0 = arith.constant 0 : i32
    %c0_i32_1 = arith.constant 0 : i32
    return %c0_i32, %c0_i32_0 : i32, i32
  }
  func.func @transform_5(%arg0: i32) -> (i32, i32) {
    %c0_i32 = arith.constant 0 : i32
    %c0_i32_0 = arith.constant 0 : i32
    %c0_i32_1 = arith.constant 0 : i32
    return %c0_i32, %c0_i32_0 : i32, i32
  }
  func.func @transform_6(%arg0: i32) -> (i32, i32) {
    %c0_i32 = arith.constant 0 : i32
    %c0_i32_0 = arith.constant 0 : i32
    %c0_i32_1 = arith.constant 0 : i32
    return %c0_i32, %c0_i32_0 : i32, i32
  }
  func.func @transform_7(%arg0: i32) -> (i32, i32) {
    %c0_i32 = arith.constant 0 : i32
    %c0_i32_0 = arith.constant 0 : i32
    %c0_i32_1 = arith.constant 0 : i32
    return %c0_i32, %c0_i32_0 : i32, i32
  }
  func.func @transform_8(%arg0: i32) -> (i32, i32) {
    %c0_i32 = arith.constant 0 : i32
    %c0_i32_0 = arith.constant 0 : i32
    %c0_i32_1 = arith.constant 0 : i32
    return %c0_i32, %c0_i32_0 : i32, i32
  }
  func.func @transform_9(%arg0: i32) -> (i32, i32, i32) {
    %c0_i32 = arith.constant 0 : i32
    %c0_i32_0 = arith.constant 0 : i32
    %c0_i32_1 = arith.constant 0 : i32
    return %arg0, %c0_i32, %c0_i32_0 : i32, i32, i32
  }
}

</mosaic_0001>

<bundles_post_ra>
// kernel: tpu_custom_call.1
= control target key start
LH: loop header
LB: loop body
LE: loop exit
PB: predicated region body
PF: predicated region fallthrough
CT: control target
= control target key end

     0   :  { %14 = vsyncpa [#allocation4], 0  ;;  %s9056_s0 = inlined_call_operand.vmem [shape: bf16[2,18,18,32], index: 0, kind: input, shape index: {}]   ;;  %s9057_s1 = inlined_call_operand.vmem [shape: bf16[288,128], index: 1, kind: input, shape index: {}]   ;;  %s9058_s2 = inlined_call_operand.vmem [shape: f32[1,128], index: 2, kind: input, shape index: {}]   ;;  %s9059_s3 = inlined_call_operand.vmem [shape: bf16[128,8], index: 3, kind: input, shape index: {}]   ;;  %s9060_s4 = inlined_call_operand.vmem [shape: f32[1,8], index: 4, kind: input, shape index: {}]   ;;  %s9061_s5 = inlined_call_operand.vmem [shape: bf16[8,128], index: 5, kind: input, shape index: {}]   ;;  %s9062_s6 = inlined_call_operand.vmem [shape: f32[1,128], index: 6, kind: input, shape index: {}]   ;;  %s9063_s7 = inlined_call_operand.vmem [shape: bf16[128,32], index: 7, kind: input, shape index: {}]   ;;  %s9064_s8 = inlined_call_operand.vmem [shape: f32[1,32], index: 8, kind: input, shape index: {}]   ;;  %s9065_s9 = inlined_call_operand.hbm [shape: f32[2,32,256], index: 9, kind: output, shape index: {}]  }
   0x1   :  { %16 = vsyncpa [#allocation4 + $0x1], 0  ;;  %s6372_s30 = smov 0   ;;  %s6374_s10 = smov 0  }
   0x2   :  { %s6376_s11 = smov 0   ;;  %s6378_s12 = smov 0  }
   0x3 LB: > { %s6393_s13 = sadd.s32 4294967295, %s6312_s12   ;;  %s5372_s14 = sadd.s32 4294967294, %s6312_s12   ;;  %s6312_s12 = sphi %s6378_s12, %s9109_s12   ;;  %s6308_s11 = sphi %s6376_s11, %s9108_s11   ;;  %s6304_s10 = sphi %s6374_s10, %s9107_s10   ;;  %s6300_s30 = sphi %s6372_s30, %s9106_s30  }
   0x4   : > { %s6397_s15 = sadd.s32 1, %s6312_s12   ;;  %s223_s16 = sadd.s32 1, %s6308_s11 }
   0x5   : > { %s220_s17 = ssub.s32 %s6312_s12, %s6397_s15  ;;  %p233_p0 = scmp.ne.s32.totalorder %s6308_s11, %s6304_s10 }
   0x6   : > { %p221_p1 = scmp.eq.s32.totalorder %s220_s17, 0  ;;  %p234_p2 = scmp.eq.s32.totalorder %s6393_s13, 1 }
   0x7   : > { %p239_p3 = scmp.ne.s32.totalorder %s6304_s10, %s6300_s30  ;;  %p240_p4 = scmp.eq.s32.totalorder %s5372_s14, 1 }
   0x8   : > { %s6408_s18 = scalar_select %p221_p1, %s6308_s11, %s223_s16  }
   0x9   : > { %p6410_p5 = por %p234_p2, %p233_p0  ;;  %p6414_p6 = por %p240_p4, %p239_p3 }
   0xa   : > { %p5375_p7 = scmp.ge.s32.totalorder %s6312_s12, 1  ;;  %p290_p8 = scmp.lt.s32.totalorder %s6312_s12, 3 }
   0xc   : > { %p291_p9 = pnand %p5375_p7, %p290_p8 }
   0xd   : > { %p326_p10 = scmp.lt.s32.totalorder (!%p291_p9), %s6393_s13, 1  ;;  %s6314_s24 = smov (!%p291_p9), 64  }
   0xe   : > { %294 = sbr.rel (%p291_p9) target bundleno = 1639 (0x667), region = 56  ;;  %s6315_s25 = smov (!%p291_p9), 32  }
   0xf   : > { %s6316_s17 = smov (!%p291_p9), 96  }
  0x13   : > { %s327_s21 = scalar_select %p326_p10, %s6393_s13, 1  ;;  %v6164_v0 = vld [vmem:[%s9057_s1 + $0x78] sm:$0xff]   ;;  %vm1057_vm0 = vcmask 1042432   ;;  %v6166_v2 = vld [vmem:[%s9057_s1 + $0x70] sm:$0xff]   ;;  %vm1058_vm1 = vcmask 1046532   ;;  %v6168_v4 = vld [vmem:[%s9057_s1 + $0x68] sm:$0xff]  }
  0x14   : > { %v6165_v1 = vld [vmem:[%s9057_s1 + $0x38] sm:$0xff]   ;;  %5838 = vmatprep.subr.bf16.mxu0 %v6164_v0  ;;  %v6167_v3 = vld [vmem:[%s9057_s1 + $0x30] sm:$0xff]   ;;  %vm445_vm2 = vsmask.f32 3328  ;;  %vm6448_vm3 = vmor %vm1057_vm0, %vm1058_vm1  ;;  %vm446_vm4 = vsmask.f32 7440 }
  0x15   : > { %s6117_s26 = smul.u32 216, %s327_s21  ;;  %5839 = vmatpush3.bf16.msra.mxu0 %v6165_v1  ;;  %v6169_v29 = vld [vmem:[%s9057_s1 + $0x28] sm:$0xff]   ;;  %v6170_v39 = vld [vmem:[%s9057_s1 + $0x60] sm:$0xff]   ;;  %vm6488_vm5 = vmor %vm445_vm2, %vm446_vm4  ;;  %vm364_vm6 = vcmask 257024   ;;  %vm928_vm7 = vcmask 519424   ;;  %vm1268_vm8 = vcmask 781824  }
  0x16   : > { %5840 = vmatprep.subr.bf16.mxu0 %v6166_v2  ;;  %v6171_v50 = vld [vmem:[%s9057_s1 + $0x20] sm:$0xff]   ;;  %v6172_v57 = vld [vmem:[%s9057_s1 + $0x58] sm:$0xff]   ;;  %vm1462_vm9 = vcmask 1044224   ;;  %vm3807_vm10 = vcmask 261120   ;;  %vm6318_vm11 = vmmov 0   ;;  %vm4362_vm12 = vcmask 1043456  }
  0x17   : > { %s6437_s22 = scalar_lea.vmem %s9056_s0, %s6117_s26  ;;  %vm4358_vm13 = vcmask 64512  }
  0x18   : > { %v5539_v5 = vld [vmem:[%s6437_s22 + $0x1c] sm:$0xf]  ;;  %v5538_v6 = vld [vmem:[%s6437_s22 + $0x18] sm:$0xf]  ;;  %v5474_v7 = vld [vmem:[%s6437_s22 + $0xc] sm:$0xe] }
  0x19   : > { %2394 = vrot.lane.b32.xlu1 %v5539_v5, %s6314_s24  ;;  %2392 = vrot.lane.b32.xlu0 %v5538_v6, %s6314_s24  ;;  %v5475_v9 = vld [vmem:[%s6437_s22 + $0x10] sm:$0xf]  ;;  %v5522_v10 = vrot.slane %v5474_v7, 9  ;;  %v961_v11 = vld [vmem:[%s6437_s22] sm:$0xe] }
  0x1a   : > { %v2089_v12 = vrot.slane %v5475_v9, 5  ;;  %v962_v13 = vld [vmem:[%s6437_s22 + $0x4] sm:$0xf]  ;;  %v5378_v14 = vrot.slane %v961_v11, 9  ;;  %v5476_v15 = vld [vmem:[%s6437_s22 + $0x14] sm:$0x1]  ;;  %5841 = vmatpush3.bf16.msra.mxu0 %v6167_v3 }
  0x1b   : > { %v1062_v16 = vrot.slane %v962_v13, 5  ;;  %v2092_v17 = vrot.slane %v5476_v15, 5  ;;  %v963_v18 = vld [vmem:[%s6437_s22 + $0x8] sm:$0x1]  ;;  %5842 = vmatprep.subr.bf16.mxu0 %v6168_v4  ;;  %v397_v22 = vld [vmem:[%s6437_s22] sm:$0xf] }
  0x1c   : > { %v2090_v19 = vsel %vm6448_vm3, %v5522_v10, %v2089_v12  ;;  %v2091_v20 = vrot.slane %v2089_v12, 4  ;;  %v1065_v21 = vrot.slane %v963_v18, 5  ;;  %v398_v23 = vld [vmem:[%s6437_s22 + $0x4] sm:$0xf]  ;;  %v5394_v25 = vld [vmem:[%s6437_s22 + $0xc] sm:$0xf] }
  0x1d   : > { %2199 = vrot.lane.b32.xlu1 %v2090_v19, %s6315_s25  ;;  %v1063_v24 = vsel %vm6448_vm3, %v5378_v14, %v1062_v16  ;;  %v1064_v26 = vrot.slane %v1062_v16, 4  ;;  %v449_v27 = vshrl.u32 %v397_v22, 16  ;;  %v452_v28 = vshll.u32 %v397_v22, 16  ;;  %v399_v33 = vld [vmem:[%s6437_s22 + $0x8] sm:$0x1]  ;;  %v6173_v3 = vld [vmem:[%s9057_s1 + $0x18] sm:$0xff]  }
  0x1e   : > { %1172 = vrot.lane.b32.xlu0 %v1063_v24, %s6314_s24  ;;  %v2093_v30 = vsel %vm6448_vm3, %v2091_v20, %v2092_v17  ;;  %v458_v31 = vshll.u32 %v398_v23, 16  ;;  %v462_v32 = vshrl.u32 %v398_v23, 16  ;;  %v5571_v34 = vld [vmem:[%s6437_s22 + $0x1c] sm:$0xf]  ;;  %v468_v37 = vshll.u32 %v399_v33, 16  ;;  %5843 = vmatpush3.bf16.msra.mxu0 %v6169_v29  ;;  %v6174_v9 = vld [vmem:[%s9057_s1 + $0x50] sm:$0xff]  }
  0x1f   : > { %v451_v35 = vrot.slane %v449_v27, 4  ;;  %v454_v36 = vrot.slane %v452_v28, 5  ;;  %v5572_v38 = vld [vmem:[%s6437_s22 + $0x20] sm:$0x1]  ;;  %v2578_v42 = vshll.u32 %v5571_v34, 16  ;;  %v2582_v43 = vshrl.u32 %v5571_v34, 16  ;;  %5844 = vmatprep.subr.bf16.mxu0 %v6170_v39 }
  0x20   : > { %v460_v40 = vrot.slane %v458_v31, 5  ;;  %v464_v41 = vrot.slane %v462_v32, 4  ;;  %v5570_v44 = vld [vmem:[%s6437_s22 + $0x18] sm:$0xf]  ;;  %v1066_v45 = vsel %vm6448_vm3, %v1064_v26, %v1065_v21  ;;  %v2588_v47 = vshll.u32 %v5572_v38, 16  ;;  %v6175_v27 = vld [vmem:[%s9057_s1 + $0x10] sm:$0xff]  }
  0x21   : > { %2201 = vrot.lane.b32.xlu1 %v2093_v30, %s6315_s25  ;;  %v455_v46 = vor.u32 %v454_v36, %v451_v35  ;;  %v2569_v48 = vshrl.u32 %v5570_v44, 16  ;;  %v401_v49 = vld [vmem:[%s6437_s22 + $0x10] sm:$0xf]  ;;  %v2580_v53 = vrot.slane %v2578_v42, 5  ;;  %v2584_v54 = vrot.slane %v2582_v43, 4  ;;  %v6176_v31 = vld [vmem:[%s9057_s1 + $0x48] sm:$0xff]  }
  0x22   : > { %1366 = vrot.lane.b32.xlu0 %v5394_v25, %s6316_s17  ;;  %v465_v52 = vor.u32 %v464_v41, %v460_v40  ;;  %v2572_v55 = vshll.u32 %v5570_v44, 16  ;;  %v402_v56 = vld [vmem:[%s6437_s22 + $0x14] sm:$0x1]  ;;  %v470_v59 = vrot.slane %v468_v37, 5  ;;  %v482_v61 = vshll.u32 %v401_v49, 16  ;;  %5845 = vmatpush3.bf16.msra.mxu0 %v6171_v50  ;;  %v6177_v35 = vld [vmem:[%s9057_s1 + $0x8] sm:$0xff]  }
  0x23   : > { %v456_v58 = vrot.slane %v455_v46, 4  ;;  %v2571_v60 = vrot.slane %v2569_v48, 4  ;;  %v400_v62 = vld [vmem:[%s6437_s22 + $0xc] sm:$0xf]  ;;  %v2585_v0 = vor.u32 %v2584_v54, %v2580_v53  ;;  %v486_v2 = vshrl.u32 %v401_v49, 16  ;;  %5846 = vmatprep.subr.bf16.mxu0 %v6172_v57  ;;  %v6178_v44 = vld [vmem:[%s9057_s1 + $0x40] sm:$0xff]  }
  0x24   : > { %v466_v63 = vrot.slane %v465_v52, 4  ;;  %v2574_v1 = vrot.slane %v2572_v55, 5  ;;  %v2590_v5 = vrot.slane %v2588_v47, 5  ;;  %v484_v6 = vrot.slane %v482_v61, 5  ;;  %v5395_v10 = vld [vmem:[%s6437_s22 + $0x10] sm:$0xf] }
  0x25   : > { %1174 = vrot.lane.b32.xlu1 %v1066_v45, %s6314_s24  ;;  %v461_v4 = vsel %vm6488_vm5, %v456_v58, %v460_v40  ;;  %v473_v7 = vshrl.u32 %v400_v62, 16  ;;  %v2586_v11 = vrot.slane %v2585_v0, 4  ;;  %v488_v13 = vrot.slane %v486_v2, 4  ;;  %v5478_v18 = vld [vmem:[%s6437_s22 + $0x1c] sm:$0xf]  ;;  %v6179_v46 = vld [vmem:[%s9057_s1] sm:$0xff]  }
  0x26   : > { %832 = vrot.lane.b32.xlu0 %v461_v4, %s6315_s25  ;;  %v2575_v12 = vor.u32 %v2574_v1, %v2571_v60  ;;  %v492_v14 = vshll.u32 %v402_v56, 16  ;;  %v471_v15 = vsel %vm6488_vm5, %v466_v63, %v470_v59  ;;  %v476_v17 = vshll.u32 %v400_v62, 16  ;;  %5847 = vmatpush3.bf16.msra.mxu0 %v6173_v3  ;;  %v965_v26 = vld [vmem:[%s6437_s22 + $0x10] sm:$0xf]  ;;  %v5479_v30 = vld [vmem:[%s6437_s22 + $0x20] sm:$0x1] }
  0x27   : > { %v475_v16 = vrot.slane %v473_v7, 4  ;;  %v489_v20 = vor.u32 %v488_v13, %v484_v6  ;;  %5848 = vmatprep.subr.bf16.mxu0 %v6174_v9  ;;  %v2591_v22 = vsel %vm6488_vm5, %v2586_v11, %v2590_v5  ;;  %v2096_v25 = vrot.slane %v5478_v18, 5  ;;  %v5477_v32 = vld [vmem:[%s6437_s22 + $0x18] sm:$0xe]  ;;  %v966_v39 = vld [vmem:[%s6437_s22 + $0x14] sm:$0x1] }
  0x28   : > { %v2576_v19 = vrot.slane %v2575_v12, 4  ;;  %v478_v21 = vrot.slane %v476_v17, 5  ;;  %v494_v24 = vrot.slane %v492_v14, 5  ;;  %v1069_v34 = vrot.slane %v965_v26, 5  ;;  %v964_v40 = vld [vmem:[%s6437_s22 + $0xc] sm:$0xe] }
  0x29   : > { %1368 = vrot.lane.b32.xlu1 %v5395_v10, %s6316_s17  ;;  %v490_v23 = vrot.slane %v489_v20, 4  ;;  %v2098_v37 = vrot.slane %v2096_v25, 4  ;;  %v2099_v38 = vrot.slane %v5479_v30, 5  ;;  %v5523_v42 = vrot.slane %v5477_v32, 9  ;;  %v5574_v43 = vld [vmem:[%s6437_s22 + $0x28] sm:$0xf] }
  0x2a   : > { %834 = vrot.lane.b32.xlu0 %v471_v15, %s6315_s25  ;;  %v2581_v28 = vsel %vm6488_vm5, %v2576_v19, %v2580_v53  ;;  %v479_v29 = vor.u32 %v478_v21, %v475_v16  ;;  %5849 = vmatpush3.bf16.msra.mxu0 %v6175_v27  ;;  %v5573_v45 = vld [vmem:[%s6437_s22 + $0x24] sm:$0xf]  ;;  %v1071_v47 = vrot.slane %v1069_v34, 4  ;;  %v1072_v48 = vrot.slane %v966_v39, 5  ;;  %v404_v57 = vld [vmem:[%s6437_s22 + $0x1c] sm:$0xf] }
  0x2b   : > { %5850 = vmatprep.subr.bf16.mxu0 %v6176_v31  ;;  %v495_v36 = vsel %vm6488_vm5, %v490_v23, %v494_v24  ;;  %v5379_v49 = vrot.slane %v964_v40, 9  ;;  %v2100_v50 = vsel %vm6448_vm3, %v2098_v37, %v2099_v38  ;;  %v2602_v52 = vshll.u32 %v5574_v43, 16  ;;  %v403_v58 = vld [vmem:[%s6437_s22 + $0x18] sm:$0xf]  ;;  %v5575_v1 = vld [vmem:[%s6437_s22 + $0x2c] sm:$0x1] }
  0x2c   : > { %v480_v33 = vrot.slane %v479_v29, 4  ;;  %v2606_v53 = vshrl.u32 %v5574_v43, 16  ;;  %v2097_v54 = vsel %vm6448_vm3, %v5523_v42, %v2096_v25  ;;  %v2593_v55 = vshrl.u32 %v5573_v45, 16  ;;  %v5540_v12 = vld [vmem:[%s6437_s22 + $0x24] sm:$0xf] }
  0x2d   : > { %2954 = vrot.lane.b32.xlu1 %v2591_v22, %s6316_s17  ;;  %v2596_v56 = vshll.u32 %v5573_v45, 16  ;;  %v1073_v59 = vsel %vm6448_vm3, %v1071_v47, %v1072_v48  ;;  %v1070_v60 = vsel %vm6448_vm3, %v5379_v49, %v1069_v34  ;;  %v2604_v61 = vrot.slane %v2602_v52, 5  ;;  %v405_v14 = vld [vmem:[%s6437_s22 + $0x20] sm:$0x1]  ;;  %v5397_v17 = vld [vmem:[%s6437_s22 + $0x1c] sm:$0xf] }
  0x2e   : > { %2952 = vrot.lane.b32.xlu0 %v2581_v28, %s6316_s17  ;;  %v485_v41 = vsel %vm6488_vm5, %v480_v33, %v484_v6  ;;  %5851 = vmatpush3.bf16.msra.mxu0 %v6177_v35  ;;  %v2608_v62 = vrot.slane %v2606_v53, 4  ;;  %v506_v63 = vshll.u32 %v404_v57, 16  ;;  %v510_v0 = vshrl.u32 %v404_v57, 16  ;;  %v5541_v6 = vld [vmem:[%s6437_s22 + $0x28] sm:$0xf] }
  0x2f   : > { %5852 = vmatprep.subr.bf16.mxu0 %v6178_v44  ;;  %v2595_v2 = vrot.slane %v2593_v55, 4  ;;  %v2598_v3 = vrot.slane %v2596_v56, 5  ;;  %v497_v4 = vshrl.u32 %v403_v58, 16  ;;  %v500_v5 = vshll.u32 %v403_v58, 16  ;;  %v5396_v22 = vld [vmem:[%s6437_s22 + $0x18] sm:$0xf] }
  0x30   : > { %v2609_v7 = vor.u32 %v2608_v62, %v2604_v61  ;;  %v2612_v9 = vshll.u32 %v5575_v1, 16  ;;  %v508_v10 = vrot.slane %v506_v63, 5  ;;  %v512_v11 = vrot.slane %v510_v0, 4  ;;  %v5481_v25 = vld [vmem:[%s6437_s22 + $0x28] sm:$0xf] }
  0x31   : > { %838 = vrot.lane.b32.xlu1 %v495_v36, %s6315_s25  ;;  %v2599_v13 = vor.u32 %v2598_v3, %v2595_v2  ;;  %v499_v15 = vrot.slane %v497_v4, 4  ;;  %v502_v16 = vrot.slane %v500_v5, 5  ;;  %v516_v21 = vshll.u32 %v405_v14, 16  ;;  %v5482_v32 = vld [vmem:[%s6437_s22 + $0x2c] sm:$0x1] }
  0x32   : > { %836 = vrot.lane.b32.xlu0 %v485_v41, %s6315_s25  ;;  %5853 = vmatpush3.bf16.msra.mxu0 %v6179_v46  ;;  %v2610_v18 = vrot.slane %v2609_v7, 4  ;;  %v2614_v19 = vrot.slane %v2612_v9, 5  ;;  %v513_v20 = vor.u32 %v512_v11, %v508_v10  ;;  %v2103_v29 = vrot.slane %v5481_v25, 5  ;;  %v968_v33 = vld [vmem:[%s6437_s22 + $0x1c] sm:$0xf] }
  0x33   : > { %v2600_v23 = vrot.slane %v2599_v13, 4  ;;  %v503_v24 = vor.u32 %v502_v16, %v499_v15  ;;  %v518_v28 = vrot.slane %v516_v21, 5  ;;  %v5480_v34 = vld [vmem:[%s6437_s22 + $0x24] sm:$0xe]  ;;  %v2106_v37 = vrot.slane %v5482_v32, 5 }
  0x34   : > { %v2615_v26 = vsel %vm6488_vm5, %v2610_v18, %v2614_v19  ;;  %v514_v27 = vrot.slane %v513_v20, 4  ;;  %v2105_v36 = vrot.slane %v2103_v29, 4  ;;  %v1076_v38 = vrot.slane %v968_v33, 5  ;;  %v5577_v39 = vld [vmem:[%s6437_s22 + $0x34] sm:$0xf] }
  0x35   : > { %2205 = vrot.lane.b32.xlu1 %v2100_v50, %s6315_s25  ;;  %v2605_v30 = vsel %vm6488_vm5, %v2600_v23, %v2604_v61  ;;  %v504_v31 = vrot.slane %v503_v24, 4  ;;  %v5524_v41 = vrot.slane %v5480_v34, 9  ;;  %v969_v42 = vld [vmem:[%s6437_s22 + $0x20] sm:$0x1]  ;;  %v967_v43 = vld [vmem:[%s6437_s22 + $0x18] sm:$0xe] }
  0x36   : > { %2203 = vrot.lane.b32.xlu0 %v2097_v54, %s6315_s25  ;;  %v519_v35 = vsel %vm6488_vm5, %v514_v27, %v518_v28  ;;  %v5576_v44 = vld [vmem:[%s6437_s22 + $0x30] sm:$0xf]  ;;  %v2626_v45 = vshll.u32 %v5577_v39, 16  ;;  %v2630_v46 = vshrl.u32 %v5577_v39, 16  ;;  %v2107_v47 = vsel %vm6448_vm3, %v2105_v36, %v2106_v37  ;;  %v407_v55 = vld [vmem:[%s6437_s22 + $0x28] sm:$0xf] }
  0x37   : > { %v509_v40 = vsel %vm6488_vm5, %v504_v31, %v508_v10  ;;  %v1078_v48 = vrot.slane %v1076_v38, 4  ;;  %v1079_v49 = vrot.slane %v969_v42, 5  ;;  %v5380_v50 = vrot.slane %v967_v43, 9  ;;  %v406_v56 = vld [vmem:[%s6437_s22 + $0x24] sm:$0xf]  ;;  %v6631_v36 = vld [vmem:[%s9057_s1 + $0x88] sm:$0xff]  }
  0x38   : > { %v2104_v52 = vsel %vm6448_vm3, %v5524_v41, %v2103_v29  ;;  %v2617_v53 = vshrl.u32 %v5576_v44, 16  ;;  %v2620_v54 = vshll.u32 %v5576_v44, 16  ;;  %v6598_v57 = vrot.slane %v2626_v45, 5  ;;  %v5578_v61 = vld [vmem:[%s6437_s22 + $0x38] sm:$0x1]  ;;  %6113 = vmatprep.subr.bf16.mxu1 %v6631_v36  ;;  %6003 = vmatprep.subr.bf16.mxu0 %v6631_v36 }
  0x39   : > { %1178 = vrot.lane.b32.xlu1 %v1073_v59, %s6314_s24  ;;  %v2632_v58 = vrot.slane %v2630_v46, 4  ;;  %v1080_v59 = vsel %vm6448_vm3, %v1078_v48, %v1079_v49  ;;  %v530_v62 = vshll.u32 %v407_v55, 16  ;;  %v534_v63 = vshrl.u32 %v407_v55, 16  ;;  %v5426_v4 = vld [vmem:[%s6437_s22 + $0xc] sm:$0xf]  ;;  %v6644_v46 = vld [vmem:[%s9057_s1 + $0x80] sm:$0xff]   ;;  %6115 = vmatpush3.bf16.msra.mxu1 %v6631_v36 }
  0x3a   : > { %1176 = vrot.lane.b32.xlu0 %v1070_v60, %s6314_s24  ;;  %v1077_v60 = vsel %vm6448_vm3, %v5380_v50, %v1076_v38  ;;  %v2619_v0 = vrot.slane %v2617_v53, 4  ;;  %v2622_v1 = vrot.slane %v2620_v54, 5  ;;  %v521_v2 = vshrl.u32 %v406_v56, 16  ;;  %v408_v7 = vld [vmem:[%s6437_s22 + $0x2c] sm:$0x1]  ;;  %6114 = vmatprep.subr.bf16.mxu1 %v6644_v46 }
  0x3b   : > { %v524_v3 = vshll.u32 %v406_v56, 16  ;;  %v2633_v5 = vor.u32 %v2632_v58, %v6598_v57  ;;  %v5427_v9 = vld [vmem:[%s6437_s22 + $0x10] sm:$0xf]  ;;  %v5543_v10 = vld [vmem:[%s6437_s22 + $0x34] sm:$0xf]  ;;  %v6613_v11 = vrot.slane %v530_v62, 5 }
  0x3c   : > { %v1544_v13 = vshrl.u32 %v5426_v4, 16  ;;  %v1547_v14 = vshll.u32 %v5426_v4, 16  ;;  %v5542_v15 = vld [vmem:[%s6437_s22 + $0x30] sm:$0xf]  ;;  %v2623_v16 = vor.u32 %v2622_v1, %v2619_v0  ;;  %v1553_v19 = vshll.u32 %v5427_v9, 16 }
  0x3d   : > { %2398 = vrot.lane.b32.xlu1 %v5541_v6, %s6314_s24  ;;  %v2636_v6 = vshll.u32 %v5578_v61, 16  ;;  %v526_v18 = vrot.slane %v524_v3, 5  ;;  %v5399_v20 = vld [vmem:[%s6437_s22 + $0x28] sm:$0xf]  ;;  %v540_v21 = vshll.u32 %v408_v7, 16  ;;  %v1557_v24 = vshrl.u32 %v5427_v9, 16  ;;  %6116 = vmatpush3.bf16.msra.mxu1 %v6644_v46 }
  0x3e   : > { %2396 = vrot.lane.b32.xlu0 %v5540_v12, %s6314_s24  ;;  %v536_v12 = vrot.slane %v534_v63, 4  ;;  %v1549_v23 = vrot.slane %v1547_v14, 5  ;;  %v2634_v25 = vrot.slane %v2633_v5, 4  ;;  %v6619_v27 = vld [vmem:[%s6437_s22 + $0x34] sm:$0xf]  ;;  %v1555_v28 = vrot.slane %v1553_v19, 5 }
  0x3f   : > { %v5428_v31 = vld [vmem:[%s6437_s22 + $0x14] sm:$0x1]  ;;  %v5398_v32 = vld [vmem:[%s6437_s22 + $0x24] sm:$0xf]  ;;  %v2624_v33 = vrot.slane %v2623_v16, 4  ;;  %v542_v37 = vrot.slane %v540_v21, 5 }
  0x40   : > { %v537_v29 = vor.u32 %v536_v12, %v6613_v11  ;;  %v5485_v38 = vld [vmem:[%s6437_s22 + $0x38] sm:$0x1]  ;;  %v2110_v39 = vrot.slane %v6619_v27, 5  ;;  %v1559_v41 = vrot.slane %v1557_v24, 4  ;;  %v5483_v43 = vld [vmem:[%s6437_s22 + $0x30] sm:$0xe] }
  0x41   : > { %1372 = vrot.lane.b32.xlu1 %v5397_v17, %s6316_s17  ;;  %v523_v17 = vrot.slane %v521_v2, 4  ;;  %v972_v44 = vld [vmem:[%s6437_s22 + $0x2c] sm:$0x1]  ;;  %v1563_v45 = vshll.u32 %v5428_v31, 16  ;;  %v5580_v54 = vld [vmem:[%s6437_s22 + $0x40] sm:$0xf] }
  0x42   : > { %1370 = vrot.lane.b32.xlu0 %v5396_v22, %s6316_s17  ;;  %v1546_v22 = vrot.slane %v1544_v13, 4  ;;  %v1560_v50 = vor.u32 %v1559_v41, %v1555_v28  ;;  %v332_v56 = vld [vmem:[%s6437_s22] sm:$0xf]  ;;  %v1086_v63 = vrot.slane %v972_v44, 5  ;;  %v970_v0 = vld [vmem:[%s6437_s22 + $0x24] sm:$0xe] }
  0x43   : > { %v527_v34 = vor.u32 %v526_v18, %v523_v17  ;;  %v1565_v55 = vrot.slane %v1563_v45, 5  ;;  %365 = vst.msk [vmem:[#allocation2] sm:$0xf] %vm364_vm6, %v332_v56  ;;  %v5579_v1 = vld [vmem:[%s6437_s22 + $0x3c] sm:$0xf]  ;;  %v2650_v4 = vshll.u32 %v5580_v54, 16 }
  0x44   : > { %v1561_v58 = vrot.slane %v1560_v50, 4  ;;  %v2654_v5 = vshrl.u32 %v5580_v54, 16  ;;  %v410_v7 = vld [vmem:[%s6437_s22 + $0x34] sm:$0xf]  ;;  %v2641_v9 = vshrl.u32 %v5579_v1, 16  ;;  %v5381_v14 = vrot.slane %v970_v0, 9 }
  0x45   : > { %2958 = vrot.lane.b32.xlu1 %v2615_v26, %s6316_s17  ;;  %v2638_v26 = vrot.slane %v2636_v6, 5  ;;  %v528_v53 = vrot.slane %v527_v34, 4  ;;  %v333_v6 = vld [vmem:[%s6437_s22 + $0x4] sm:$0xf]  ;;  %v409_v12 = vld [vmem:[%s6437_s22 + $0x30] sm:$0xf] }
  0x46   : > { %2956 = vrot.lane.b32.xlu0 %v2605_v30, %s6316_s17  ;;  %v1550_v30 = vor.u32 %v1549_v23, %v1546_v22  ;;  %v1566_v2 = vsel %vm6488_vm5, %v1561_v58, %v1565_v55  ;;  %366 = vst.msk [vmem:[#allocation2 + $0xc] sm:$0xf] %vm364_vm6, %v333_v6  ;;  %v554_v16 = vshll.u32 %v410_v7, 16  ;;  %v335_v17 = vld [vmem:[%s6437_s22 + $0x10] sm:$0xf]  ;;  %v545_v21 = vshrl.u32 %v409_v12, 16 }
  0x47   : > { %v2639_v42 = vsel %vm6488_vm5, %v2634_v25, %v2638_v26  ;;  %v533_v3 = vsel %vm6488_vm5, %v528_v53, %v6613_v11  ;;  %1960 = vst.msk [vmem:[#allocation2 + $0x10] sm:$0xf] %vm364_vm6, %v1566_v2  ;;  %v334_v18 = vld [vmem:[%s6437_s22 + $0xc] sm:$0xf]  ;;  %368 = vst.msk [vmem:[#allocation2 + $0x24] sm:$0xf] %vm364_vm6, %v335_v17 }
  0x48   : > { %367 = vst.msk [vmem:[#allocation2 + $0x18] sm:$0xf] %vm364_vm6, %v334_v18  ;;  %v6692_v22 = vrot.slane %v2650_v4, 5  ;;  %v2656_v23 = vrot.slane %v2654_v5, 4  ;;  %v2643_v24 = vrot.slane %v2641_v9, 4 }
  0x49   : > { %842 = vrot.lane.b32.xlu1 %v519_v35, %s6315_s25  ;;  %v6626_v35 = vld [vmem:[%s6437_s22 + $0x28] sm:$0xf]  ;;  %v5430_v31 = vld [vmem:[%s6437_s22 + $0x1c] sm:$0xf]  ;;  %v5487_v53 = vld [vmem:[%s6437_s22 + $0x40] sm:$0xf] }
  0x4a   : > { %840 = vrot.lane.b32.xlu0 %v509_v40, %s6315_s25  ;;  %v1551_v40 = vrot.slane %v1550_v30, 4  ;;  %v1083_v48 = vrot.slane %v6626_v35, 5  ;;  %v411_v30 = vld [vmem:[%s6437_s22 + $0x38] sm:$0x1]  ;;  %v547_v35 = vrot.slane %v545_v21, 4  ;;  %v1581_v41 = vshrl.u32 %v5430_v31, 16 }
  0x4b   : > { %v5401_v56 = vld [vmem:[%s6437_s22 + $0x34] sm:$0xf]  ;;  %v5488_v4 = vld [vmem:[%s6437_s22 + $0x44] sm:$0x1]  ;;  %v5486_v5 = vld [vmem:[%s6437_s22 + $0x3c] sm:$0xe] }
  0x4c   : > { %v1556_v49 = vsel %vm6488_vm5, %v1551_v40, %v1555_v28  ;;  %v1085_v62 = vrot.slane %v1083_v48, 4  ;;  %v1084_v26 = vsel %vm6448_vm3, %v5381_v14, %v1083_v48  ;;  %v548_v28 = vshll.u32 %v409_v12, 16  ;;  %v6714_v2 = vld [vmem:[%s6437_s22 + $0x34] sm:$0xf]  ;;  %v337_v21 = vld [vmem:[%s6437_s22 + $0x1c] sm:$0xf] }
  0x4d   : > { %2209 = vrot.lane.b32.xlu1 %v2107_v47, %s6315_s25  ;;  %v538_v47 = vrot.slane %v537_v29, 4  ;;  %1959 = vst.msk [vmem:[#allocation2 + $0x4] sm:$0xf] %vm364_vm6, %v1556_v49  ;;  %v5545_v29 = vld [vmem:[%s6437_s22 + $0x40] sm:$0xf]  ;;  %v1583_v49 = vrot.slane %v1581_v41, 4 }
  0x4e   : > { %2207 = vrot.lane.b32.xlu0 %v2104_v52, %s6315_s25  ;;  %v2629_v52 = vsel %vm6488_vm5, %v2624_v33, %v6598_v57  ;;  %v2113_v57 = vrot.slane %v5485_v38, 5  ;;  %v1087_v19 = vsel %vm6448_vm3, %v1085_v62, %v1086_v63  ;;  %v6701_v33 = vrot.slane %v554_v16, 5  ;;  %370 = vst.msk [vmem:[#allocation2 + $0x3c] sm:$0xf] %vm364_vm6, %v337_v21  ;;  %v339_v21 = vld [vmem:[%s6437_s22 + $0x28] sm:$0xf] }
  0x4f   : > { %v543_v61 = vsel %vm6488_vm5, %v538_v47, %v542_v37  ;;  %v5431_v37 = vld [vmem:[%s6437_s22 + $0x20] sm:$0x1]  ;;  %v1577_v38 = vshll.u32 %v5430_v31, 16  ;;  %v550_v44 = vrot.slane %v548_v28, 5  ;;  %v1090_v14 = vrot.slane %v6714_v2, 5 }
  0x50   : > { %v2120_v17 = vrot.slane %v5488_v4, 5  ;;  %v5526_v18 = vrot.slane %v5486_v5, 9  ;;  %v5582_v28 = vld [vmem:[%s6437_s22 + $0x48] sm:$0xf]  ;;  %372 = vst.msk [vmem:[#allocation2 + $0x54] sm:$0xf] %vm364_vm6, %v339_v21 }
  0x51   : > { %1182 = vrot.lane.b32.xlu1 %v1080_v59, %s6314_s24  ;;  %v2112_v59 = vrot.slane %v2110_v39, 4  ;;  %v1579_v45 = vrot.slane %v1577_v38, 5  ;;  %v551_v63 = vor.u32 %v550_v44, %v547_v35  ;;  %v5433_v31 = vld [vmem:[%s6437_s22 + $0x28] sm:$0xf]  ;;  %v2665_v38 = vshrl.u32 %v5582_v28, 16 }
  0x52   : > { %1180 = vrot.lane.b32.xlu0 %v1077_v60, %s6314_s24  ;;  %v5525_v60 = vrot.slane %v5483_v43, 9  ;;  %v5429_v43 = vld [vmem:[%s6437_s22 + $0x18] sm:$0xf]  ;;  %v1605_v41 = vshrl.u32 %v5433_v31, 16 }
  0x53   : > { %v2114_v11 = vsel %vm6448_vm3, %v2112_v59, %v2113_v57  ;;  %v1568_v47 = vshrl.u32 %v5429_v43, 16  ;;  %v1571_v48 = vshll.u32 %v5429_v43, 16  ;;  %v1584_v57 = vor.u32 %v1583_v49, %v1579_v45 }
  0x54   : > { %v2111_v13 = vsel %vm6448_vm3, %v5525_v60, %v2110_v39  ;;  %v2657_v39 = vor.u32 %v2656_v23, %v6692_v22 }
  0x55   : > { %2402 = vrot.lane.b32.xlu1 %v5543_v10, %s6314_s24  ;;  %v2644_v10 = vshll.u32 %v5579_v1, 16  ;;  %v1570_v54 = vrot.slane %v1568_v47, 4  ;;  %v1573_v55 = vrot.slane %v1571_v48, 5  ;;  %v2117_v1 = vrot.slane %v5487_v53, 5 }
  0x56   : > { %2400 = vrot.lane.b32.xlu0 %v5542_v15, %s6314_s24  ;;  %v5581_v15 = vld [vmem:[%s6437_s22 + $0x44] sm:$0x1]  ;;  %v2658_v58 = vrot.slane %v2657_v39, 4  ;;  %v2668_v39 = vshll.u32 %v5582_v28, 16  ;;  %v1607_v53 = vrot.slane %v1605_v41, 4 }
  0x57   : > { %v2646_v25 = vrot.slane %v2644_v10, 5  ;;  %v2660_v27 = vshll.u32 %v5581_v15, 16  ;;  %v1574_v0 = vor.u32 %v1573_v55, %v1570_v54  ;;  %v2119_v16 = vrot.slane %v2117_v1, 4 }
  0x58   : > { %v2118_v35 = vsel %vm6448_vm3, %v5526_v18, %v2117_v1  ;;  %v6781_v18 = vld [vmem:[%s6437_s22 + $0x4c] sm:$0xf] }
  0x59   : > { %1376 = vrot.lane.b32.xlu1 %v5399_v20, %s6316_s17  ;;  %v558_v20 = vshrl.u32 %v410_v7, 16  ;;  %v2647_v40 = vor.u32 %v2646_v25, %v2643_v24  ;;  %v2662_v50 = vrot.slane %v2660_v27, 5  ;;  %v1575_v6 = vrot.slane %v1574_v0, 4  ;;  %v973_v27 = vld [vmem:[%s6437_s22 + $0x30] sm:$0xe] }
  0x5a   : > { %1374 = vrot.lane.b32.xlu0 %v5398_v32, %s6316_s17  ;;  %v5544_v32 = vld [vmem:[%s6437_s22 + $0x3c] sm:$0xf]  ;;  %v1092_v25 = vrot.slane %v1090_v14, 4  ;;  %v5382_v43 = vrot.slane %v973_v27, 9 }
  0x5b   : > { %v560_v34 = vrot.slane %v558_v20, 4  ;;  %v2648_v62 = vrot.slane %v2647_v40, 4  ;;  %v2663_v7 = vsel %vm6488_vm5, %v2658_v58, %v2662_v50  ;;  %v1580_v15 = vsel %vm6488_vm5, %v1575_v6, %v1579_v45  ;;  %v5583_v20 = vld [vmem:[%s6437_s22 + $0x4c] sm:$0xf]  ;;  %v413_v40 = vld [vmem:[%s6437_s22 + $0x40] sm:$0xf] }
  0x5c   : > { %1961 = vst.msk [vmem:[#allocation2 + $0x1c] sm:$0xf] %vm364_vm6, %v1580_v15  ;;  %v578_v54 = vshll.u32 %v413_v40, 16  ;;  %v582_v55 = vshrl.u32 %v413_v40, 16  ;;  %v5402_v27 = vld [vmem:[%s6437_s22 + $0x3c] sm:$0xf] }
  0x5d   : > { %2962 = vrot.lane.b32.xlu1 %v2639_v42, %s6316_s17  ;;  %v1587_v42 = vshll.u32 %v5431_v37, 16  ;;  %v561_v59 = vor.u32 %v560_v34, %v6701_v33  ;;  %v2121_v34 = vsel %vm6448_vm3, %v2119_v16, %v2120_v17  ;;  %v1601_v37 = vshll.u32 %v5433_v31, 16  ;;  %v5489_v31 = vld [vmem:[%s6437_s22 + $0x48] sm:$0xe]  ;;  %v5437_v40 = vld [vmem:[%s6437_s22 + $0x38] sm:$0x1] }
  0x5e   : > { %2960 = vrot.lane.b32.xlu0 %v2629_v52, %s6316_s17  ;;  %v564_v52 = vshll.u32 %v411_v30, 16  ;;  %v2678_v30 = vshrl.u32 %v5583_v20, 16  ;;  %v6768_v4 = vrot.slane %v578_v54, 5  ;;  %v584_v5 = vrot.slane %v582_v55, 4  ;;  %v978_v54 = vld [vmem:[%s6437_s22 + $0x44] sm:$0x1] }
  0x5f   : > { %v1589_v60 = vrot.slane %v1587_v42, 5  ;;  %v562_v9 = vrot.slane %v561_v59, 4  ;;  %v1603_v44 = vrot.slane %v1601_v37, 5  ;;  %v2667_v59 = vrot.slane %v2665_v38, 4  ;;  %v5436_v37 = vld [vmem:[%s6437_s22 + $0x34] sm:$0xf] }
  0x60   : > { %v566_v10 = vrot.slane %v564_v52, 5  ;;  %v2680_v50 = vrot.slane %v2678_v30, 4  ;;  %v412_v52 = vld [vmem:[%s6437_s22 + $0x3c] sm:$0xf]  ;;  %v2124_v30 = vrot.slane %v6781_v18, 5  ;;  %v1625_v41 = vshll.u32 %v5436_v37, 16 }
  0x61   : > { %846 = vrot.lane.b32.xlu1 %v543_v61, %s6315_s25  ;;  %v5400_v61 = vld [vmem:[%s6437_s22 + $0x30] sm:$0xf]  ;;  %v569_v0 = vshrl.u32 %v412_v52, 16  ;;  %v572_v1 = vshll.u32 %v412_v52, 16  ;;  %v5585_v55 = vld [vmem:[%s6437_s22 + $0x54] sm:$0xf] }
  0x62   : > { %844 = vrot.lane.b32.xlu0 %v533_v3, %s6315_s25  ;;  %v1585_v3 = vrot.slane %v1584_v57, 4  ;;  %v567_v23 = vsel %vm6488_vm5, %v562_v9, %v566_v10  ;;  %v2670_v57 = vrot.slane %v2668_v39, 5  ;;  %v5586_v39 = vld [vmem:[%s6437_s22 + $0x58] sm:$0xf]  ;;  %v5435_v52 = vld [vmem:[%s6437_s22 + $0x30] sm:$0xf] }
  0x63   : > { %v571_v15 = vrot.slane %v569_v0, 4  ;;  %v574_v16 = vrot.slane %v572_v1, 5 }
  0x64   : > { %v1590_v12 = vsel %vm6488_vm5, %v1585_v3, %v1589_v60  ;;  %v1608_v60 = vor.u32 %v1607_v53, %v1603_v44  ;;  %v5527_v53 = vrot.slane %v5489_v31, 9 }
  0x65   : > { %2213 = vrot.lane.b32.xlu1 %v2114_v11, %s6315_s25  ;;  %v2653_v11 = vsel %vm6488_vm5, %v2648_v62, %v6692_v22  ;;  %1962 = vst.msk [vmem:[#allocation2 + $0x28] sm:$0xf] %vm364_vm6, %v1590_v12  ;;  %v336_v22 = vld [vmem:[%s6437_s22 + $0x18] sm:$0xf]  ;;  %v1091_v62 = vsel %vm6448_vm3, %v5382_v43, %v1090_v14  ;;  %v2671_v12 = vor.u32 %v2670_v57, %v2667_v59  ;;  %v5546_v14 = vld [vmem:[%s6437_s22 + $0x48] sm:$0xf] }
  0x66   : > { %2211 = vrot.lane.b32.xlu0 %v2111_v13, %s6315_s25  ;;  %v552_v13 = vrot.slane %v551_v63, 4  ;;  %369 = vst.msk [vmem:[#allocation2 + $0x30] sm:$0xf] %vm364_vm6, %v336_v22  ;;  %v5584_v63 = vld [vmem:[%s6437_s22 + $0x50] sm:$0x1]  ;;  %v1609_v3 = vrot.slane %v1608_v60, 4  ;;  %v575_v28 = vor.u32 %v574_v16, %v571_v15 }
  0x67   : > { %v2684_v10 = vshll.u32 %v5584_v63, 16  ;;  %v338_v22 = vld [vmem:[%s6437_s22 + $0x24] sm:$0xf]  ;;  %v1616_v59 = vshrl.u32 %v5435_v52, 16  ;;  %v976_v60 = vld [vmem:[%s6437_s22 + $0x3c] sm:$0xe] }
  0x68   : > { %v557_v24 = vsel %vm6488_vm5, %v552_v13, %v6701_v33  ;;  %v5432_v33 = vld [vmem:[%s6437_s22 + $0x24] sm:$0xf]  ;;  %371 = vst.msk [vmem:[#allocation2 + $0x48] sm:$0xf] %vm364_vm6, %v338_v22  ;;  %v2702_v63 = vshrl.u32 %v5586_v39, 16  ;;  %v1100_v15 = vrot.slane %v978_v54, 5 }
  0x69   : > { %1186 = vrot.lane.b32.xlu1 %v1087_v19, %s6314_s24  ;;  %v975_v19 = vld [vmem:[%s6437_s22 + $0x38] sm:$0x1]  ;;  %v1592_v45 = vshrl.u32 %v5432_v33, 16  ;;  %v1595_v47 = vshll.u32 %v5432_v33, 16  ;;  %v415_v16 = vld [vmem:[%s6437_s22 + $0x48] sm:$0xf] }
  0x6a   : > { %1184 = vrot.lane.b32.xlu0 %v1084_v26, %s6314_s24  ;;  %v1093_v26 = vrot.slane %v975_v19, 5  ;;  %v585_v19 = vor.u32 %v584_v5, %v6768_v4  ;;  %v5383_v18 = vrot.slane %v976_v60, 9  ;;  %v5624_v22 = vld [vmem:[%s6437_s22 + $0x30] sm:$0xe] }
  0x6b   : > { %v1597_v58 = vrot.slane %v1595_v47, 5  ;;  %v2126_v47 = vrot.slane %v2124_v30, 4 }
  0x6c   : > { %v1094_v48 = vsel %vm6448_vm3, %v1092_v25, %v1093_v26  ;;  %v2686_v25 = vrot.slane %v2684_v10, 5  ;;  %v2672_v26 = vrot.slane %v2671_v12, 4 }
  0x6d   : > { %2406 = vrot.lane.b32.xlu1 %v5545_v29, %s6314_s24  ;;  %v2674_v29 = vshll.u32 %v5583_v20, 16 }
  0x6e   : > { %2404 = vrot.lane.b32.xlu0 %v5544_v32, %s6314_s24  ;;  %v5434_v32 = vld [vmem:[%s6437_s22 + $0x2c] sm:$0x1] }
  0x6f   : > { %v1611_v42 = vshll.u32 %v5434_v32, 16  ;;  %v6759_v49 = vrot.slane %v2674_v29, 5  ;;  %v5491_v29 = vld [vmem:[%s6437_s22 + $0x50] sm:$0x1]  ;;  %v586_v32 = vrot.slane %v585_v19, 4 }
  0x71   : > { %1380 = vrot.lane.b32.xlu1 %v5401_v56, %s6316_s17  ;;  %v1594_v56 = vrot.slane %v1592_v45, 4  ;;  %v2681_v9 = vor.u32 %v2680_v50, %v6759_v49  ;;  %v2677_v38 = vsel %vm6488_vm5, %v2672_v26, %v6759_v49  ;;  %v576_v45 = vrot.slane %v575_v28, 4 }
  0x72   : > { %1378 = vrot.lane.b32.xlu0 %v5400_v61, %s6316_s17  ;;  %v1613_v61 = vrot.slane %v1611_v42, 5  ;;  %v1629_v42 = vshrl.u32 %v5436_v37, 16  ;;  %v1635_v50 = vshll.u32 %v5437_v40, 16  ;;  %v5628_v40 = vld [vmem:[%s6437_s22 + $0x40] sm:$0xf] }
  0x73   : > { %v1598_v2 = vor.u32 %v1597_v58, %v1594_v56  ;;  %v1627_v56 = vrot.slane %v1625_v41, 5  ;;  %v581_v5 = vsel %vm6488_vm5, %v576_v45, %v6768_v4  ;;  %v2125_v4 = vsel %vm6448_vm3, %v5527_v53, %v2124_v30  ;;  %v5629_v41 = vld [vmem:[%s6437_s22 + $0x44] sm:$0x1] }
  0x74   : > { %v1614_v13 = vsel %vm6488_vm5, %v1609_v3, %v1613_v61  ;;  %v1631_v58 = vrot.slane %v1629_v42, 4  ;;  %v2698_v61 = vshll.u32 %v5586_v39, 16  ;;  %v1637_v1 = vrot.slane %v1635_v50, 5  ;;  %v5627_v39 = vld [vmem:[%s6437_s22 + $0x3c] sm:$0xe] }
  0x75   : > { %2966 = vrot.lane.b32.xlu1 %v2663_v7, %s6316_s17  ;;  %v1599_v6 = vrot.slane %v1598_v2, 4  ;;  %v5547_v7 = vld [vmem:[%s6437_s22 + $0x4c] sm:$0xf]  ;;  %1964 = vst.msk [vmem:[#allocation2 + $0x40] sm:$0xf] %vm364_vm6, %v1614_v13  ;;  %v1618_v2 = vrot.slane %v1616_v59, 4 }
  0x76   : > { %2964 = vrot.lane.b32.xlu0 %v2653_v11, %s6316_s17  ;;  %v414_v11 = vld [vmem:[%s6437_s22 + $0x44] sm:$0x1]  ;;  %v1632_v0 = vor.u32 %v1631_v58, %v1627_v56  ;;  %v6837_v19 = vrot.slane %v2698_v61, 5  ;;  %v596_v42 = vshll.u32 %v415_v16, 16  ;;  %v5669_v50 = vrot.slane %v5627_v39, 9 }
  0x77   : > { %v1604_v17 = vsel %vm6488_vm5, %v1599_v6, %v1603_v44  ;;  %v588_v20 = vshll.u32 %v414_v11, 16  ;;  %v2689_v6 = vshrl.u32 %v5585_v55, 16  ;;  %v6829_v11 = vld [vmem:[%s6437_s22 + $0x4c] sm:$0xf]  ;;  %v3202_v53 = vrot.slane %v5629_v41, 5 }
  0x78   : > { %1963 = vst.msk [vmem:[#allocation2 + $0x34] sm:$0xf] %vm364_vm6, %v1604_v17  ;;  %v1633_v13 = vrot.slane %v1632_v0, 4  ;;  %v606_v31 = vshrl.u32 %v6829_v11, 16  ;;  %v5549_v58 = vld [vmem:[%s6437_s22 + $0x58] sm:$0xf] }
  0x79   : > { %850 = vrot.lane.b32.xlu1 %v567_v23, %s6315_s25  ;;  %v5403_v23 = vld [vmem:[%s6437_s22 + $0x40] sm:$0xf] }
  0x7a   : > { %848 = vrot.lane.b32.xlu0 %v557_v24, %s6315_s25  ;;  %v2682_v24 = vrot.slane %v2681_v9, 4  ;;  %v1638_v21 = vsel %vm6488_vm5, %v1633_v13, %v1637_v1  ;;  %v598_v1 = vrot.slane %v596_v42, 5 }
  0x7b   : > { %1966 = vst.msk [vmem:[#allocation2 + $0x58] sm:$0xf] %vm364_vm6, %v1638_v21 }
  0x7c   : > { %v2687_v33 = vsel %vm6488_vm5, %v2682_v24, %v2686_v25  ;;  %v5587_v24 = vld [vmem:[%s6437_s22 + $0x5c] sm:$0x1]  ;;  %v6845_v25 = vrot.slane %v2689_v6, 4 }
  0x7d   : > { %2217 = vrot.lane.b32.xlu1 %v2121_v34, %s6315_s25  ;;  %v590_v34 = vrot.slane %v588_v20, 5  ;;  %v6839_v20 = vrot.slane %v2702_v63, 4  ;;  %v608_v63 = vrot.slane %v606_v31, 4 }
  0x7e   : > { %2215 = vrot.lane.b32.xlu0 %v2118_v35, %s6315_s25  ;;  %v6798_v35 = vld [vmem:[%s6437_s22 + $0x40] sm:$0xf] }
  0x7f   : > { %v591_v49 = vsel %vm6488_vm5, %v586_v32, %v590_v34  ;;  %v1097_v57 = vrot.slane %v6798_v35, 5  ;;  %v593_v32 = vshrl.u32 %v415_v16, 16  ;;  %v5626_v34 = vld [vmem:[%s6437_s22 + $0x38] sm:$0x1]  ;;  %v5668_v35 = vrot.slane %v5624_v22, 9 }
  0x80   : > { %v2705_v59 = vor.u32 %v6839_v20, %v6837_v19  ;;  %v6911_v22 = vld [vmem:[%s6437_s22 + $0x58] sm:$0xf] }
  0x81   : > { %1190 = vrot.lane.b32.xlu1 %v1094_v48, %s6314_s24  ;;  %v2127_v48 = vrot.slane %v5491_v29, 5  ;;  %v5625_v29 = vld [vmem:[%s6437_s22 + $0x34] sm:$0xf]  ;;  %v595_v0 = vrot.slane %v593_v32, 4  ;;  %v2131_v39 = vrot.slane %v6911_v22, 5 }
  0x82   : > { %1188 = vrot.lane.b32.xlu0 %v1091_v62, %s6314_s24  ;;  %v1619_v62 = vshll.u32 %v5435_v52, 16  ;;  %v3192_v37 = vrot.slane %v5625_v29, 5  ;;  %v3199_v52 = vrot.slane %v5628_v40, 5  ;;  %v6924_v40 = vld [vmem:[%s6437_s22 + $0x4c] sm:$0xf] }
  0x83   : > { %v2128_v12 = vsel %vm6448_vm3, %v2126_v47, %v2127_v48  ;;  %v1098_v48 = vsel %vm6448_vm3, %v5383_v18, %v1097_v57  ;;  %v599_v18 = vor.u32 %v598_v1, %v595_v0  ;;  %v343_v22 = vld [vmem:[%s6437_s22 + $0x40] sm:$0xf] }
  0x84   : > { %v1621_v9 = vrot.slane %v1619_v62, 5  ;;  %v3194_v45 = vrot.slane %v3192_v37, 4  ;;  %v3200_v60 = vsel %vm6448_vm3, %v5669_v50, %v3199_v52  ;;  %v3201_v61 = vrot.slane %v3199_v52, 4  ;;  %376 = vst.msk [vmem:[#allocation2 + $0x84] sm:$0xf] %vm364_vm6, %v343_v22 }
  0x85   : > { %2410 = vrot.lane.b32.xlu1 %v5547_v7, %s6314_s24  ;;  %v2692_v7 = vshll.u32 %v5585_v55, 16  ;;  %v2708_v55 = vshll.u32 %v5587_v24, 16  ;;  %3326 = vst.msk [vmem:[#allocation2 + $0x50] sm:$0xf] %vm364_vm6, %v3200_v60  ;;  %v7022_v22 = vld [vmem:[%s6437_s22 + $0x58] sm:$0xf] }
  0x86   : > { %2408 = vrot.lane.b32.xlu0 %v5546_v14, %s6314_s24  ;;  %v1099_v14 = vrot.slane %v1097_v57, 4  ;;  %v1622_v17 = vor.u32 %v1621_v9, %v1618_v2  ;;  %v417_v57 = vld [vmem:[%s6437_s22 + $0x50] sm:$0x1]  ;;  %v341_v2 = vld [vmem:[%s6437_s22 + $0x34] sm:$0xf]  ;;  %v3203_v6 = vsel %vm6448_vm3, %v3201_v61, %v3202_v53 }
  0x87   : > { %v6847_v26 = vrot.slane %v2692_v7, 5  ;;  %374 = vst.msk [vmem:[#allocation2 + $0x6c] sm:$0xf] %vm364_vm6, %v341_v2  ;;  %v340_v7 = vld [vmem:[%s6437_s22 + $0x30] sm:$0xf]  ;;  %v612_v13 = vshll.u32 %v417_v57, 16 }
  0x88   : > { %v1623_v28 = vrot.slane %v1622_v17, 4  ;;  %3327 = vst.msk [vmem:[#allocation2 + $0x5c] sm:$0xf] %vm364_vm6, %v3203_v6  ;;  %373 = vst.msk [vmem:[#allocation2 + $0x60] sm:$0xf] %vm364_vm6, %v340_v7 }
  0x89   : > { %1384 = vrot.lane.b32.xlu1 %v5403_v23, %s6316_s17  ;;  %v614_v32 = vrot.slane %v612_v13, 5  ;;  %v981_v53 = vld [vmem:[%s6437_s22 + $0x50] sm:$0x1]  ;;  %v5589_v61 = vld [vmem:[%s6437_s22 + $0x64] sm:$0xf] }
  0x8a   : > { %1382 = vrot.lane.b32.xlu0 %v5402_v27, %s6316_s17  ;;  %v602_v27 = vshll.u32 %v6829_v11, 16  ;;  %v2706_v11 = vrot.slane %v2705_v59, 4  ;;  %v1104_v59 = vrot.slane %v6924_v40, 5  ;;  %v1107_v6 = vrot.slane %v981_v53, 5  ;;  %v419_v13 = vld [vmem:[%s6437_s22 + $0x58] sm:$0xf] }
  0x8b   : > { %v6809_v43 = vpop.permute.xlu1 %2394  ;;  %v2393_v44 = vpop.permute.xlu0 %2392  ;;  %v5550_v53 = vld [vmem:[%s6437_s22 + $0x60] sm:$0xf] }
  0x8c   : > { %v6888_v62 = vrot.slane %v602_v27, 5  ;;  %v5494_v27 = vld [vmem:[%s6437_s22 + $0x5c] sm:$0x1] }
  0x8d   : > { %2970 = vrot.lane.b32.xlu1 %v2687_v33, %s6316_s17  ;;  %v1101_v33 = vsel %vm6448_vm3, %v1099_v14, %v1100_v15  ;;  %v5440_v14 = vld [vmem:[%s6437_s22 + $0x44] sm:$0x1]  ;;  %v5404_v15 = vld [vmem:[%s6437_s22 + $0x48] sm:$0xf]  ;;  %v2134_v52 = vrot.slane %v5494_v27, 5 }
  0x8e   : > { %2968 = vrot.lane.b32.xlu0 %v2677_v38, %s6316_s17  ;;  %v1628_v38 = vsel %vm6488_vm5, %v1623_v28, %v1627_v56  ;;  %v609_v17 = vor.u32 %v608_v63, %v6888_v62  ;;  %v1659_v24 = vshll.u32 %v5440_v14, 16  ;;  %v5588_v63 = vld [vmem:[%s6437_s22 + $0x60] sm:$0xf] }
  0x8f   : > { %v2200_v3 = vpop.permute.xlu1 %2199  ;;  %1965 = vst.msk [vmem:[#allocation2 + $0x4c] sm:$0xf] %vm364_vm6, %v1628_v38  ;;  %v600_v38 = vrot.slane %v599_v18, 4  ;;  %v418_v18 = vld [vmem:[%s6437_s22 + $0x54] sm:$0xf] }
  0x90   : > { %2295 = vst.msk [vmem:[#allocation2 + $0x4] sm:$0xf] %vm928_vm7, %v2200_v3  ;;  %v6824_v10 = vpop.permute.xlu0 %1172 }
  0x91   : > { %854 = vrot.lane.b32.xlu1 %v591_v49, %s6315_s25  ;;  %2488 = vst.msk [vmem:[#allocation2 + $0x4] sm:$0xf] %vm1268_vm8, %v2393_v44  ;;  %v3193_v44 = vsel %vm6448_vm3, %v5668_v35, %v3192_v37  ;;  %v2695_v49 = vor.u32 %v6847_v26, %v6845_v25  ;;  %v5438_v25 = vld [vmem:[%s6437_s22 + $0x3c] sm:$0xf]  ;;  %v605_v60 = vsel %vm6488_vm5, %v600_v38, %v6888_v62 }
  0x92   : > { %852 = vrot.lane.b32.xlu0 %v581_v5, %s6315_s25  ;;  %3324 = vst.msk [vmem:[#allocation2 + $0x38] sm:$0xf] %vm364_vm6, %v3193_v44  ;;  %v5548_v5 = vld [vmem:[%s6437_s22 + $0x54] sm:$0xf]  ;;  %v1643_v37 = vshll.u32 %v5438_v25, 16 }
  0x93   : > { %v2202_v23 = vpop.permute.xlu1 %2201  ;;  %v2696_v16 = vrot.slane %v2695_v49, 4  ;;  %v979_v49 = vld [vmem:[%s6437_s22 + $0x48] sm:$0xe] }
  0x94   : > { %2296 = vst.msk [vmem:[#allocation2 + $0x10] sm:$0xf] %vm928_vm7, %v2202_v23  ;;  %v1367_v30 = vpop.permute.xlu0 %1366  ;;  %v5384_v62 = vrot.slane %v979_v49, 9 }
  0x95   : > { %2221 = vrot.lane.b32.xlu1 %v2128_v12, %s6315_s25  ;;  %2489 = vst.msk [vmem:[#allocation2 + $0x10] sm:$0xf] %vm1268_vm8, %v6809_v43  ;;  %v3195_v43 = vrot.slane %v5626_v34, 5  ;;  %v2710_v12 = vrot.slane %v2708_v55, 5  ;;  %v5492_v34 = vld [vmem:[%s6437_s22 + $0x54] sm:$0xe]  ;;  %v2701_v44 = vsel %vm6488_vm5, %v2696_v16, %v6837_v19 }
  0x96   : > { %2219 = vrot.lane.b32.xlu0 %v2125_v4, %s6315_s25  ;;  %v5439_v4 = vld [vmem:[%s6437_s22 + $0x40] sm:$0xf]  ;;  %v2716_v16 = vshll.u32 %v5588_v63, 16 }
  0x97   : > { %v1175_v47 = vpop.permute.xlu1 %1174  ;;  %v3196_v56 = vsel %vm6448_vm3, %v3194_v45, %v3195_v43  ;;  %v1649_v20 = vshll.u32 %v5439_v4, 16  ;;  %v1653_v23 = vshrl.u32 %v5439_v4, 16  ;;  %v2711_v31 = vsel %vm6488_vm5, %v2706_v11, %v2710_v12  ;;  %v6190_v45 = vld [vmem:[#allocation2 + $0x50] ss:$12 sps:$4 sm:$0xff]  }
  0x98   : > { %v833_v54 = vpop.permute.xlu0 %832  ;;  %3325 = vst.msk [vmem:[#allocation2 + $0x44] sm:$0xf] %vm364_vm6, %v3196_v56  ;;  %v2133_v56 = vrot.slane %v2131_v39, 4  ;;  %v2722_v12 = vshll.u32 %v5589_v61, 16  ;;  %v2726_v11 = vshrl.u32 %v5589_v61, 16 }
  0x99   : > { %929 = vst.msk [vmem:[#allocation2] sm:$0xf] %vm928_vm7, %v833_v54  ;;  %1194 = vrot.lane.b32.xlu1 %v1101_v33, %s6314_s24  ;;  %v1651_v29 = vrot.slane %v1649_v20, 5  ;;  %v1655_v35 = vrot.slane %v1653_v23, 4  ;;  %v610_v33 = vrot.slane %v609_v17, 4  ;;  %v626_v20 = vshll.u32 %v419_v13, 16 }
  0x9a   : > { %1269 = vst.msk [vmem:[#allocation2] sm:$0xf] %vm1268_vm8, %v6824_v10  ;;  %1192 = vrot.lane.b32.xlu0 %v1098_v48, %s6314_s24  ;;  %v5405_v10 = vld [vmem:[%s6437_s22 + $0x4c] sm:$0xf]  ;;  %v1645_v48 = vrot.slane %v1643_v37, 5  ;;  %v2728_v27 = vrot.slane %v2726_v11, 4 }
  0x9b   : > { %1463 = vst.msk [vmem:[#allocation2] sm:$0xf] %vm1462_vm9, %v1367_v30  ;;  %v1369_v3 = vpop.permute.xlu1 %1368  ;;  %v1640_v30 = vshrl.u32 %v5438_v25, 16  ;;  %v1656_v43 = vor.u32 %v1655_v35, %v1651_v29  ;;  %v615_v55 = vsel %vm6488_vm5, %v610_v33, %v614_v32  ;;  %v342_v23 = vld [vmem:[%s6437_s22 + $0x3c] sm:$0xf]  ;;  %v620_v32 = vshll.u32 %v418_v18, 16 }
  0x9c   : > { %v835_v9 = vpop.permute.xlu0 %834  ;;  %v5590_v25 = vld [vmem:[%s6437_s22 + $0x68] sm:$0x1]  ;;  %375 = vst.msk [vmem:[#allocation2 + $0x78] sm:$0xf] %vm364_vm6, %v342_v23  ;;  %v5551_v37 = vld [vmem:[%s6437_s22 + $0x64] sm:$0xf] }
  0x9d   : > { %930 = vst.msk [vmem:[#allocation2 + $0xc] sm:$0xf] %vm928_vm7, %v835_v9  ;;  %2414 = vrot.lane.b32.xlu1 %v5549_v58, %s6314_s24  ;;  %v1642_v41 = vrot.slane %v1640_v30, 4  ;;  %v1657_v54 = vrot.slane %v1656_v43, 4  ;;  %v5528_v58 = vrot.slane %v5492_v34, 9  ;;  %v2135_v9 = vsel %vm6448_vm3, %v2133_v56, %v2134_v52 }
  0x9e   : > { %1270 = vst.msk [vmem:[#allocation2 + $0xc] sm:$0xf] %vm1268_vm8, %v1175_v47  ;;  %2412 = vrot.lane.b32.xlu0 %v5548_v5, %s6314_s24  ;;  %v1661_v47 = vrot.slane %v1659_v24, 5  ;;  %v2718_v30 = vrot.slane %v2716_v16, 5  ;;  %v5442_v34 = vld [vmem:[%s6437_s22 + $0x4c] sm:$0xf] }
  0x9f   : > { %1464 = vst.msk [vmem:[#allocation2 + $0xc] sm:$0xf] %vm1462_vm9, %v1369_v3  ;;  %v2955_v21 = vpop.permute.xlu1 %2954  ;;  %v6189_v28 = vld [vmem:[#allocation2 + $0x38] ss:$12 sps:$4 sm:$0xff]   ;;  %v1646_v19 = vor.u32 %v1645_v48, %v1642_v41  ;;  %v2132_v14 = vsel %vm6448_vm3, %v5528_v58, %v2131_v39  ;;  %v5443_v33 = vld [vmem:[%s6437_s22 + $0x50] sm:$0x1] }
  0xa0   : > { %3049 = vst.msk [vmem:[#allocation2 + $0x10] sm:$0xf] %vm1462_vm9, %v2955_v21  ;;  %v2953_v26 = vpop.permute.xlu0 %2952  ;;  %6011 = vmatprep.mubr.msk.bf16.mxu1 %vm3807_vm10, %v6189_v28  ;;  %v1662_v0 = vsel %vm6488_vm5, %v1657_v54, %v1661_v47  ;;  %v630_v21 = vshrl.u32 %v419_v13, 16  ;;  %v1673_v38 = vshll.u32 %v5442_v34, 16  ;;  %v1677_v39 = vshrl.u32 %v5442_v34, 16 }
  0xa1   : > { %3048 = vst.msk [vmem:[#allocation2 + $0x4] sm:$0xf] %vm1462_vm9, %v2953_v26  ;;  %1388 = vrot.lane.b32.xlu1 %v5405_v10, %s6316_s17  ;;  %6012 = vmatmul.mubr.msk.bf16.vlgmr.msra.gmra.mxu1 %vm3807_vm10, %v6190_v45  ;;  %v1647_v1 = vrot.slane %v1646_v19, 4  ;;  %v1106_v10 = vrot.slane %v1104_v59, 4  ;;  %v6974_v26 = vrot.slane %v2722_v12, 5  ;;  %v2732_v40 = vshll.u32 %v5590_v25, 16 }
  0xa2   : > { %1386 = vrot.lane.b32.xlu0 %v5404_v15, %s6316_s17  ;;  %1968 = vst.msk [vmem:[#allocation2 + $0x70] sm:$0xf] %vm364_vm6, %v1662_v0  ;;  %v2713_v15 = vshrl.u32 %v5588_v63, 16  ;;  %v6985_v41 = vrot.slane %v626_v20, 5  ;;  %v5441_v45 = vld [vmem:[%s6437_s22 + $0x48] sm:$0xf] }
  0xa3   : > { %v839_v42 = vpop.permute.xlu1 %838  ;;  %v1652_v7 = vsel %vm6488_vm5, %v1647_v1, %v1651_v29  ;;  %v1108_v24 = vsel %vm6448_vm3, %v1106_v10, %v1107_v6  ;;  %v2729_v43 = vor.u32 %v2728_v27, %v6974_v26  ;;  %v420_v47 = vld [vmem:[%s6437_s22 + $0x5c] sm:$0x1]  ;;  %v6991_v48 = vrot.slane %v1673_v38, 5  ;;  %v5406_v61 = vld [vmem:[%s6437_s22 + $0x54] sm:$0xf] }
  0xa4   : > { %932 = vst.msk [vmem:[#allocation2 + $0x24] sm:$0xf] %vm928_vm7, %v839_v42  ;;  %v837_v50 = vpop.permute.xlu0 %836  ;;  %v2715_v29 = vrot.slane %v2713_v15, 4  ;;  %v632_v42 = vrot.slane %v630_v21, 4  ;;  %v1667_v56 = vshll.u32 %v5441_v45, 16  ;;  %v636_v0 = vshll.u32 %v420_v47, 16 }
  0xa5   : > { %931 = vst.msk [vmem:[#allocation2 + $0x18] sm:$0xf] %vm928_vm7, %v837_v50  ;;  %2974 = vrot.lane.b32.xlu1 %v2711_v31, %s6316_s17  ;;  %v617_v31 = vshrl.u32 %v418_v18, 16  ;;  %v1679_v50 = vrot.slane %v1677_v39, 4  ;;  %v7002_v1 = vld [vmem:[%s6437_s22 + $0x64] sm:$0xf] }
  0xa6   : > { %2972 = vrot.lane.b32.xlu0 %v2701_v44, %s6316_s17  ;;  %v6180_v3 = vld [vmem:[#allocation2] ss:$12 sps:$4 sm:$0xff]   ;;  %1967 = vst.msk [vmem:[#allocation2 + $0x64] sm:$0xf] %vm364_vm6, %v1652_v7  ;;  %v1683_v44 = vshll.u32 %v5443_v33, 16  ;;  %v2719_v54 = vor.u32 %v2718_v30, %v2715_v29  ;;  %v633_v63 = vor.u32 %v632_v42, %v6985_v41  ;;  %v638_v20 = vrot.slane %v636_v0, 5 }
  0xa7   : > { %v2206_v57 = vpop.permute.xlu1 %2205  ;;  %v619_v19 = vrot.slane %v617_v31, 4  ;;  %v1680_v49 = vor.u32 %v1679_v50, %v6991_v48  ;;  %v7006_v6 = vld [vmem:[%s6437_s22 + $0x68] sm:$0x1]  ;;  %v7009_v12 = vld [vmem:[%s6437_s22 + $0x60] sm:$0xe] }
  0xa8   : > { %2298 = vst.msk [vmem:[#allocation2 + $0x28] sm:$0xf] %vm928_vm7, %v2206_v57  ;;  %v2204_v2 = vpop.permute.xlu0 %2203  ;;  %v6182_v5 = vld [vmem:[#allocation2 + $0x4] ss:$12 sps:$4 sm:$0xff]   ;;  %v1685_v57 = vrot.slane %v1683_v44, 5  ;;  %v634_v18 = vrot.slane %v633_v63, 4 }
  0xa9   : > { %2297 = vst.msk [vmem:[#allocation2 + $0x1c] sm:$0xf] %vm928_vm7, %v2204_v2  ;;  %858 = vrot.lane.b32.xlu1 %v615_v55, %s6315_s25  ;;  %3888 = vmatprep.mubr.bf16.mxu0 %v6182_v5  ;;  %v622_v55 = vrot.slane %v620_v32, 5  ;;  %v1669_v2 = vrot.slane %v1667_v56, 5  ;;  %v2734_v5 = vrot.slane %v2732_v40, 5  ;;  %v2141_v21 = vrot.slane %v7006_v6, 5 }
  0xaa   : > { %856 = vrot.lane.b32.xlu0 %v605_v60, %s6315_s25  ;;  %3889 = vmatmul.mubr.bf16.vlgmr.msra.gmra.mxu0 %v6180_v3  ;;  %v2730_v3 = vrot.slane %v2729_v43, 4  ;;  %v5630_v13 = vld [vmem:[%s6437_s22 + $0x48] sm:$0xe]  ;;  %v5631_v16 = vld [vmem:[%s6437_s22 + $0x4c] sm:$0xf]  ;;  %v5529_v39 = vrot.slane %v7009_v12, 9 }
  0xab   : > { %v1179_v4 = vpop.permute.xlu1 %1178  ;;  %6004 = vmatpush3.bf16.msra.mxu0 %v6631_v36  ;;  %v1105_v36 = vsel %vm6448_vm3, %v5384_v62, %v1104_v59  ;;  %v5407_v59 = vld [vmem:[%s6437_s22 + $0x58] sm:$0xf]  ;;  %v1681_v62 = vrot.slane %v1680_v49, 4  ;;  %v623_v10 = vor.u32 %v622_v55, %v619_v19  ;;  %v3206_v25 = vrot.slane %v5631_v16, 5  ;;  %v5633_v27 = vld [vmem:[%s6437_s22 + $0x54] sm:$0xe] }
  0xac   : > { %1272 = vst.msk [vmem:[#allocation2 + $0x24] sm:$0xf] %vm1268_vm8, %v1179_v4  ;;  %v1177_v17 = vpop.permute.xlu0 %1176  ;;  %6005 = vmatprep.subr.bf16.mxu0 %v6644_v46  ;;  %v5592_v32 = vld [vmem:[%s6437_s22 + $0x70] sm:$0xf]  ;;  %v5591_v40 = vld [vmem:[%s6437_s22 + $0x6c] sm:$0xf] }
  0xad   : > { %1271 = vst.msk [vmem:[#allocation2 + $0x18] sm:$0xf] %vm1268_vm8, %v1177_v17  ;;  %2225 = vrot.lane.b32.xlu1 %v2135_v9, %s6315_s25  ;;  %v2720_v9 = vrot.slane %v2719_v54, 4  ;;  %v1686_v15 = vsel %vm6488_vm5, %v1681_v62, %v1685_v57  ;;  %v5632_v17 = vld [vmem:[%s6437_s22 + $0x50] sm:$0x1]  ;;  %v624_v31 = vrot.slane %v623_v10, 4 }
  0xae   : > { %2223 = vrot.lane.b32.xlu0 %v2132_v14, %s6315_s25  ;;  %v2138_v14 = vrot.slane %v7002_v1, 5  ;;  %1970 = vst.msk [vmem:[#allocation2 + $0x88] sm:$0xf] %vm364_vm6, %v1686_v15  ;;  %v3208_v42 = vrot.slane %v3206_v25, 4  ;;  %v1111_v44 = vrot.slane %v7022_v22, 5  ;;  %v2740_v63 = vshll.u32 %v5591_v40, 16 }
  0xaf   : > { %v2399_v28 = vpop.permute.xlu1 %2398  ;;  %6006 = vmatpush3.bf16.msra.mxu0 %v6644_v46  ;;  %v1664_v46 = vshrl.u32 %v5441_v45, 16  ;;  %v2725_v30 = vsel %vm6488_vm5, %v2720_v9, %v6974_v26  ;;  %v5671_v45 = vrot.slane %v5633_v27, 9  ;;  %v984_v50 = vld [vmem:[%s6437_s22 + $0x5c] sm:$0x1]  ;;  %v629_v19 = vsel %vm6488_vm5, %v624_v31, %v6985_v41  ;;  %v982_v56 = vld [vmem:[%s6437_s22 + $0x54] sm:$0xe] }
  0xb0   : > { %2491 = vst.msk [vmem:[#allocation2 + $0x28] sm:$0xf] %vm1268_vm8, %v2399_v28  ;;  %v2397_v35 = vpop.permute.xlu0 %2396  ;;  %v5634_v28 = vld [vmem:[%s6437_s22 + $0x58] sm:$0xf]  ;;  %v2140_v38 = vrot.slane %v2138_v14, 4  ;;  %v5385_v9 = vrot.slane %v982_v56, 9  ;;  %v2139_v6 = vsel %vm6448_vm3, %v5529_v39, %v2138_v14 }
  0xb1   : > { %2490 = vst.msk [vmem:[#allocation2 + $0x1c] sm:$0xf] %vm1268_vm8, %v2397_v35  ;;  %1198 = vrot.lane.b32.xlu1 %v1108_v24, %s6314_s24  ;;  %v1666_v60 = vrot.slane %v1664_v46, 4  ;;  %v2735_v24 = vsel %vm6488_vm5, %v2730_v3, %v2734_v5  ;;  %v3209_v35 = vrot.slane %v5632_v17, 5  ;;  %v3213_v43 = vrot.slane %v5634_v28, 5 }
  0xb2   : > { %1196 = vrot.lane.b32.xlu0 %v1105_v36, %s6314_s24  ;;  %v5670_v36 = vrot.slane %v5630_v13, 9  ;;  %v2746_v46 = vshll.u32 %v5592_v32, 16  ;;  %v345_v41 = vld [vmem:[%s6437_s22 + $0x4c] sm:$0xf]  ;;  %v344_v5 = vld [vmem:[%s6437_s22 + $0x48] sm:$0xf]  ;;  %v2142_v62 = vsel %vm6448_vm3, %v2140_v38, %v2141_v21  ;;  %v1112_v28 = vsel %vm6448_vm3, %v5385_v9, %v1111_v44 }
  0xb3   : > { %v1373_v52 = vpop.permute.xlu1 %1372  ;;  %v1670_v11 = vor.u32 %v1669_v2, %v1666_v60  ;;  %v3215_v49 = vrot.slane %v3213_v43, 4  ;;  %v1114_v2 = vrot.slane %v984_v50, 5  ;;  %378 = vst.msk [vmem:[#allocation2 + $0x9c] sm:$0xf] %vm364_vm6, %v345_v41  ;;  %v422_v12 = vld [vmem:[%s6437_s22 + $0x64] sm:$0xf] }
  0xb4   : > { %1466 = vst.msk [vmem:[#allocation2 + $0x24] sm:$0xf] %vm1462_vm9, %v1373_v52  ;;  %v1371_v58 = vpop.permute.xlu0 %1370  ;;  %v3207_v26 = vsel %vm6448_vm3, %v5670_v36, %v3206_v25  ;;  %v2750_v52 = vshrl.u32 %v5592_v32, 16  ;;  %v7079_v10 = vrot.slane %v2746_v46, 5  ;;  %v7089_v13 = vld [vmem:[%s6437_s22 + $0x74] sm:$0x1] }
  0xb5   : > { %1465 = vst.msk [vmem:[#allocation2 + $0x18] sm:$0xf] %vm1462_vm9, %v1371_v58  ;;  %2418 = vrot.lane.b32.xlu1 %v5551_v37, %s6314_s24  ;;  %v1671_v23 = vrot.slane %v1670_v11, 4  ;;  %v5635_v37 = vld [vmem:[%s6437_s22 + $0x5c] sm:$0x1]  ;;  %v2737_v58 = vshrl.u32 %v5591_v40, 16 }
  0xb6   : > { %2416 = vrot.lane.b32.xlu0 %v5550_v53, %s6314_s24  ;;  %3328 = vst.msk [vmem:[#allocation2 + $0x68] sm:$0xf] %vm364_vm6, %v3207_v26  ;;  %v3216_v47 = vrot.slane %v5635_v37, 5  ;;  %v3210_v53 = vsel %vm6448_vm3, %v3208_v42, %v3209_v35  ;;  %377 = vst.msk [vmem:[#allocation2 + $0x90] sm:$0xf] %vm364_vm6, %v344_v5  ;;  %v650_v1 = vshll.u32 %v422_v12, 16 }
  0xb7   : > { %v2959_v7 = vpop.permute.xlu1 %2958  ;;  %v1676_v34 = vsel %vm6488_vm5, %v1671_v23, %v6991_v48  ;;  %v639_v48 = vsel %vm6488_vm5, %v634_v18, %v638_v20  ;;  %3329 = vst.msk [vmem:[#allocation2 + $0x74] sm:$0xf] %vm364_vm6, %v3210_v53  ;;  %v7091_v15 = vrot.slane %v2737_v58, 4  ;;  %v5445_v16 = vld [vmem:[%s6437_s22 + $0x58] sm:$0xf]  ;;  %v7096_v20 = vrot.slane %v2740_v63, 5 }
  0xb8   : > { %3051 = vst.msk [vmem:[#allocation2 + $0x28] sm:$0xf] %vm1462_vm9, %v2959_v7  ;;  %v2957_v4 = vpop.permute.xlu0 %2956  ;;  %v3217_v3 = vsel %vm6448_vm3, %v3215_v49, %v3216_v47  ;;  %v1113_v7 = vrot.slane %v1111_v44, 4  ;;  %v5446_v17 = vld [vmem:[%s6437_s22 + $0x5c] sm:$0x1]  ;;  %v1697_v23 = vshll.u32 %v5445_v16, 16 }
  0xb9   : > { %3050 = vst.msk [vmem:[#allocation2 + $0x1c] sm:$0xf] %vm1462_vm9, %v2957_v4  ;;  %1392 = vrot.lane.b32.xlu1 %v5407_v59, %s6316_s17  ;;  %v3214_v59 = vsel %vm6448_vm3, %v5671_v45, %v3213_v43  ;;  %v2752_v4 = vrot.slane %v2750_v52, 4  ;;  %v421_v21 = vld [vmem:[%s6437_s22 + $0x60] sm:$0xf]  ;;  %v654_v14 = vshrl.u32 %v422_v12, 16 }
  0xba   : > { %1390 = vrot.lane.b32.xlu0 %v5406_v61, %s6316_s17  ;;  %1969 = vst.msk [vmem:[#allocation2 + $0x7c] sm:$0xf] %vm364_vm6, %v1676_v34  ;;  %3330 = vst.msk [vmem:[#allocation2 + $0x80] sm:$0xf] %vm364_vm6, %v3214_v59  ;;  %v1707_v36 = vshll.u32 %v5446_v17, 16  ;;  %v1115_v27 = vsel %vm6448_vm3, %v1113_v7, %v1114_v2  ;;  %v641_v34 = vshrl.u32 %v421_v21, 16 }
  0xbb   : > { %v843_v29 = vpop.permute.xlu1 %842  ;;  %3331 = vst.msk [vmem:[#allocation2 + $0x8c] sm:$0xf] %vm364_vm6, %v3217_v3  ;;  %v5444_v25 = vld [vmem:[%s6437_s22 + $0x54] sm:$0xf]  ;;  %v644_v35 = vshll.u32 %v421_v21, 16  ;;  %v2756_v40 = vshll.u32 %v7089_v13, 16  ;;  %v2753_v47 = vor.u32 %v2752_v4, %v7079_v10 }
  0xbc   : > { %934 = vst.msk [vmem:[#allocation2 + $0x3c] sm:$0xf] %vm928_vm7, %v843_v29  ;;  %v841_v33 = vpop.permute.xlu0 %840  ;;  %v1688_v31 = vshrl.u32 %v5444_v25, 16  ;;  %v5553_v39 = vld [vmem:[%s6437_s22 + $0x70] sm:$0xf]  ;;  %v1709_v44 = vrot.slane %v1707_v36, 5 }
  0xbd   : > { %933 = vst.msk [vmem:[#allocation2 + $0x30] sm:$0xf] %vm928_vm7, %v841_v33  ;;  %2978 = vrot.lane.b32.xlu1 %v2735_v24, %s6316_s17  ;;  %v1701_v24 = vshrl.u32 %v5445_v16, 16  ;;  %v1691_v33 = vshll.u32 %v5444_v25, 16  ;;  %v5552_v43 = vld [vmem:[%s6437_s22 + $0x6c] sm:$0xf] }
  0xbe   : > { %2976 = vrot.lane.b32.xlu0 %v2725_v30, %s6316_s17  ;;  %v6195_v29 = vld [vmem:[#allocation2 + $0x68] ss:$12 sps:$4 sm:$0xff]   ;;  %v1699_v30 = vrot.slane %v1697_v23, 5  ;;  %v1690_v22 = vrot.slane %v1688_v31, 4  ;;  %v7121_v46 = vrot.slane %v650_v1, 5  ;;  %v656_v52 = vrot.slane %v654_v14, 4 }
  0xbf   : > { %v2210_v54 = vpop.permute.xlu1 %2209  ;;  %v3358_v55 = vld [vmem:[#allocation2 + $0x24] sm:$0xff]  ;;  %v1703_v37 = vrot.slane %v1701_v24, 4  ;;  %6015 = vmatprep.mubr.msk.bf16.mxu1 %vm3807_vm10, %v6195_v29  ;;  %v1693_v45 = vrot.slane %v1691_v33, 5  ;;  %v2754_v63 = vrot.slane %v2753_v47, 4  ;;  %v2758_v41 = vrot.slane %v2756_v40, 5 }
  0xc0   : > { %2300 = vst.msk [vmem:[#allocation2 + $0x40] sm:$0xf] %vm928_vm7, %v2210_v54  ;;  %v2208_v57 = vpop.permute.xlu0 %2207  ;;  %v3356_v60 = vld [vmem:[#allocation2 + $0x18] sm:$0xff]  ;;  %v423_v50 = vld [vmem:[%s6437_s22 + $0x68] sm:$0x1]  ;;  %v643_v54 = vrot.slane %v641_v34, 4 }
  0xc1   : > { %v6183_v61 = vld [vmem:[#allocation2 + $0x1c] ss:$12 sps:$4 sm:$0xff]   ;;  %2299 = vst.msk [vmem:[#allocation2 + $0x34] sm:$0xf] %vm928_vm7, %v2208_v57  ;;  %862 = vrot.lane.b32.xlu1 %v639_v48, %s6315_s25  ;;  %v5686_v0 = vcombine.low %v3356_v60, %v3358_v55  ;;  %v1704_v42 = vor.u32 %v1703_v37, %v1699_v30  ;;  %v2743_v48 = vor.u32 %v7096_v20, %v7091_v15  ;;  %v7124_v55 = vld [vmem:[%s6437_s22 + $0x70] sm:$0xf] }
  0xc2   : > { %860 = vrot.lane.b32.xlu0 %v629_v19, %s6315_s25  ;;  %3896 = vmatprep.mubr.bf16.mxu0 %v6183_v61  ;;  %v6196_v26 = vld [vmem:[#allocation2 + $0x80] ss:$12 sps:$4 sm:$0xff]   ;;  %v646_v19 = vrot.slane %v644_v35, 5  ;;  %v1694_v58 = vor.u32 %v1693_v45, %v1690_v22  ;;  %v5409_v49 = vld [vmem:[%s6437_s22 + $0x64] sm:$0xf]  ;;  %v660_v57 = vshll.u32 %v423_v50, 16  ;;  %v2759_v16 = vsel %vm6488_vm5, %v2754_v63, %v2758_v41 }
  0xc3   : > { %v1183_v11 = vpop.permute.xlu1 %1182  ;;  %3897 = vmatmul.mubr.bf16.gmra.mxu0 %v5686_v0  ;;  %6016 = vmatmul.mubr.msk.bf16.gmra.mxu1 %vm3807_vm10, %v6196_v26  ;;  %v1705_v56 = vrot.slane %v1704_v42, 4  ;;  %v657_v0 = vor.u32 %v656_v52, %v7121_v46  ;;  %v5500_v2 = vld [vmem:[%s6437_s22 + $0x74] sm:$0x1]  ;;  %v2145_v3 = vrot.slane %v7124_v55, 5  ;;  %v2744_v7 = vrot.slane %v2743_v48, 4 }
  0xc4   : > { %1274 = vst.msk [vmem:[#allocation2 + $0x3c] sm:$0xf] %vm1268_vm8, %v1183_v11  ;;  %v1181_v18 = vpop.permute.xlu0 %1180  ;;  %v1695_v61 = vrot.slane %v1694_v58, 4  ;;  %v647_v9 = vor.u32 %v646_v19, %v643_v54  ;;  %v2148_v13 = vrot.slane %v5500_v2, 5  ;;  %v5498_v4 = vld [vmem:[%s6437_s22 + $0x6c] sm:$0xe] }
  0xc5   : > { %1273 = vst.msk [vmem:[#allocation2 + $0x30] sm:$0xf] %vm1268_vm8, %v1181_v18  ;;  %2229 = vrot.lane.b32.xlu1 %v2142_v62, %s6315_s25  ;;  %v1710_v60 = vsel %vm6488_vm5, %v1705_v56, %v1709_v44  ;;  %v5408_v62 = vld [vmem:[%s6437_s22 + $0x60] sm:$0xf]  ;;  %v7147_v15 = vld [vmem:[%s6437_s22 + $0x64] sm:$0xf]  ;;  %v2749_v1 = vsel %vm6488_vm5, %v2744_v7, %v7079_v10 }
  0xc6   : > { %2227 = vrot.lane.b32.xlu0 %v2139_v6, %s6315_s25  ;;  %1972 = vst.msk [vmem:[#allocation2 + $0xa0] sm:$0xf] %vm364_vm6, %v1710_v60  ;;  %v1700_v12 = vsel %vm6488_vm5, %v1695_v61, %v1699_v30  ;;  %v662_v6 = vrot.slane %v660_v57, 5  ;;  %v658_v17 = vrot.slane %v657_v0, 4  ;;  %v2147_v18 = vrot.slane %v2145_v3, 4 }
  0xc7   : > { %v2403_v32 = vpop.permute.xlu1 %2402  ;;  %1971 = vst.msk [vmem:[#allocation2 + $0x94] sm:$0xf] %vm364_vm6, %v1700_v12  ;;  %v347_v20 = vld [vmem:[%s6437_s22 + $0x58] sm:$0xf]  ;;  %v346_v21 = vld [vmem:[%s6437_s22 + $0x54] sm:$0xf] }
  0xc8   : > { %2493 = vst.msk [vmem:[#allocation2 + $0x40] sm:$0xf] %vm1268_vm8, %v2403_v32  ;;  %v2401_v38 = vpop.permute.xlu0 %2400  ;;  %v648_v14 = vrot.slane %v647_v9, 4  ;;  %v5595_v24 = vld [vmem:[%s6437_s22 + $0x7c] sm:$0xf]  ;;  %v5530_v25 = vrot.slane %v5498_v4, 9  ;;  %v663_v34 = vsel %vm6488_vm5, %v658_v17, %v662_v6  ;;  %v2149_v35 = vsel %vm6448_vm3, %v2147_v18, %v2148_v13 }
  0xc9   : > { %2492 = vst.msk [vmem:[#allocation2 + $0x34] sm:$0xf] %vm1268_vm8, %v2401_v38  ;;  %1202 = vrot.lane.b32.xlu1 %v1115_v27, %s6314_s24  ;;  %v1118_v27 = vrot.slane %v7147_v15, 5  ;;  %v7166_v10 = vld [vmem:[%s6437_s22 + $0x68] sm:$0x1]  ;;  %v2770_v38 = vshll.u32 %v5595_v24, 16 }
  0xca   : > { %1200 = vrot.lane.b32.xlu0 %v1112_v28, %s6314_s24  ;;  %380 = vst.msk [vmem:[#allocation2 + $0xb4] sm:$0xf] %vm364_vm6, %v347_v20  ;;  %379 = vst.msk [vmem:[#allocation2 + $0xa8] sm:$0xf] %vm364_vm6, %v346_v21  ;;  %v5448_v28 = vld [vmem:[%s6437_s22 + $0x64] sm:$0xf]  ;;  %v653_v26 = vsel %vm6488_vm5, %v648_v14, %v7121_v46 }
  0xcb   : > { %v1377_v53 = vpop.permute.xlu1 %1376  ;;  %v5594_v29 = vld [vmem:[%s6437_s22 + $0x78] sm:$0xf]  ;;  %v5449_v30 = vld [vmem:[%s6437_s22 + $0x68] sm:$0x1]  ;;  %v1721_v31 = vshll.u32 %v5448_v28, 16  ;;  %v1725_v32 = vshrl.u32 %v5448_v28, 16 }
  0xcc   : > { %1468 = vst.msk [vmem:[#allocation2 + $0x3c] sm:$0xf] %vm1462_vm9, %v1377_v53  ;;  %v1375_v59 = vpop.permute.xlu0 %1374  ;;  %v7176_v37 = vld [vmem:[%s6437_s22 + $0x60] sm:$0xe]  ;;  %v7179_v33 = vld [vmem:[%s6437_s22 + $0x80] sm:$0x1]  ;;  %v2146_v53 = vsel %vm6448_vm3, %v5530_v25, %v2145_v3 }
  0xcd   : > { %1467 = vst.msk [vmem:[#allocation2 + $0x30] sm:$0xf] %vm1462_vm9, %v1375_v59  ;;  %2422 = vrot.lane.b32.xlu1 %v5553_v39, %s6314_s24  ;;  %v1731_v39 = vshll.u32 %v5449_v30, 16  ;;  %v5447_v40 = vld [vmem:[%s6437_s22 + $0x60] sm:$0xf]  ;;  %v2774_v44 = vshrl.u32 %v5595_v24, 16 }
  0xce   : > { %2420 = vrot.lane.b32.xlu0 %v5552_v43, %s6314_s24  ;;  %v425_v45 = vld [vmem:[%s6437_s22 + $0x70] sm:$0xf]  ;;  %v7186_v43 = vrot.slane %v1721_v31, 5  ;;  %v1727_v47 = vrot.slane %v1725_v32, 4  ;;  %v2761_v54 = vshrl.u32 %v5594_v29, 16  ;;  %v1712_v19 = vshrl.u32 %v5447_v40, 16 }
  0xcf   : > { %v2963_v5 = vpop.permute.xlu1 %2962  ;;  %v1715_v55 = vshll.u32 %v5447_v40, 16  ;;  %v2764_v56 = vshll.u32 %v5594_v29, 16  ;;  %v1733_v59 = vrot.slane %v1731_v39, 5  ;;  %v1121_v57 = vrot.slane %v7166_v10, 5  ;;  %v424_v60 = vld [vmem:[%s6437_s22 + $0x6c] sm:$0xf] }
  0xd0   : > { %3053 = vst.msk [vmem:[#allocation2 + $0x40] sm:$0xf] %vm1462_vm9, %v2963_v5  ;;  %v2961_v11 = vpop.permute.xlu0 %2960  ;;  %v1728_v58 = vor.u32 %v1727_v47, %v7186_v43  ;;  %v1714_v61 = vrot.slane %v1712_v19, 4  ;;  %v5386_v0 = vrot.slane %v7176_v37, 9  ;;  %v2780_v2 = vshll.u32 %v7179_v33, 16 }
  0xd1   : > { %3052 = vst.msk [vmem:[#allocation2 + $0x34] sm:$0xf] %vm1462_vm9, %v2961_v11  ;;  %1396 = vrot.lane.b32.xlu1 %v5409_v49, %s6316_s17  ;;  %v1120_v49 = vrot.slane %v1118_v27, 4  ;;  %v1717_v63 = vrot.slane %v1715_v55, 5  ;;  %v674_v3 = vshll.u32 %v425_v45, 16  ;;  %v7202_v7 = vrot.slane %v2770_v38, 5 }
  0xd2   : > { %1394 = vrot.lane.b32.xlu0 %v5408_v62, %s6316_s17  ;;  %v1729_v5 = vrot.slane %v1728_v58, 4  ;;  %v2776_v9 = vrot.slane %v2774_v44, 4  ;;  %v678_v12 = vshrl.u32 %v425_v45, 16  ;;  %v5636_v6 = vld [vmem:[%s6437_s22 + $0x60] sm:$0xe]  ;;  %v2763_v13 = vrot.slane %v2761_v54, 4 }
  0xd3   : > { %v847_v23 = vpop.permute.xlu1 %846  ;;  %v1718_v11 = vor.u32 %v1717_v63, %v1714_v61  ;;  %v2766_v4 = vrot.slane %v2764_v56, 5  ;;  %v5637_v18 = vld [vmem:[%s6437_s22 + $0x64] sm:$0xf]  ;;  %v1122_v20 = vsel %vm6448_vm3, %v1120_v49, %v1121_v57  ;;  %v668_v21 = vshll.u32 %v424_v60, 16  ;;  %v5639_v14 = vld [vmem:[%s6437_s22 + $0x6c] sm:$0xe] }
  0xd4   : > { %936 = vst.msk [vmem:[#allocation2 + $0x54] sm:$0xf] %vm928_vm7, %v847_v23  ;;  %v845_v36 = vpop.permute.xlu0 %844  ;;  %v1734_v17 = vsel %vm6488_vm5, %v1729_v5, %v1733_v59  ;;  %v426_v25 = vld [vmem:[%s6437_s22 + $0x74] sm:$0x1]  ;;  %v7221_v28 = vrot.slane %v674_v3, 5  ;;  %v5672_v29 = vrot.slane %v5636_v6, 9 }
  0xd5   : > { %935 = vst.msk [vmem:[#allocation2 + $0x48] sm:$0xf] %vm928_vm7, %v845_v36  ;;  %2982 = vrot.lane.b32.xlu1 %v2759_v16, %s6316_s17  ;;  %v665_v16 = vshrl.u32 %v424_v60, 16  ;;  %v1719_v23 = vrot.slane %v1718_v11, 4  ;;  %v1119_v36 = vsel %vm6448_vm3, %v5386_v0, %v1118_v27  ;;  %v7224_v10 = vld [vmem:[%s6437_s22 + $0x7c] sm:$0xf]  ;;  %v2777_v27 = vor.u32 %v2776_v9, %v7202_v7 }
  0xd6   : > { %2980 = vrot.lane.b32.xlu0 %v2749_v1, %s6316_s17  ;;  %1974 = vst.msk [vmem:[#allocation2 + $0xb8] sm:$0xf] %vm364_vm6, %v1734_v17  ;;  %v5638_v1 = vld [vmem:[%s6437_s22 + $0x68] sm:$0x1]  ;;  %v680_v31 = vrot.slane %v678_v12, 4  ;;  %v2767_v37 = vor.u32 %v2766_v4, %v2763_v13  ;;  %v5673_v38 = vrot.slane %v5639_v14, 9 }
  0xd7   : > { %v2214_v22 = vpop.permute.xlu1 %2213  ;;  %v3362_v42 = vld [vmem:[#allocation2 + $0x3c] sm:$0xff]  ;;  %v1724_v32 = vsel %vm6488_vm5, %v1719_v23, %v7186_v43  ;;  %v5640_v15 = vld [vmem:[%s6437_s22 + $0x70] sm:$0xf]  ;;  %v3223_v33 = vrot.slane %v5638_v1, 5  ;;  %v667_v40 = vrot.slane %v665_v16, 4  ;;  %v684_v43 = vshll.u32 %v426_v25, 16 }
  0xd8   : > { %2302 = vst.msk [vmem:[#allocation2 + $0x58] sm:$0xf] %vm928_vm7, %v2214_v22  ;;  %v2212_v48 = vpop.permute.xlu0 %2211  ;;  %v3360_v50 = vld [vmem:[#allocation2 + $0x30] sm:$0xff]  ;;  %v5555_v39 = vld [vmem:[%s6437_s22 + $0x7c] sm:$0xf]  ;;  %v670_v22 = vrot.slane %v668_v21, 5  ;;  %v681_v19 = vor.u32 %v680_v31, %v7221_v28 }
  0xd9   : > { %v6186_v52 = vld [vmem:[#allocation2 + $0x34] ss:$12 sps:$4 sm:$0xff]   ;;  %2301 = vst.msk [vmem:[#allocation2 + $0x4c] sm:$0xf] %vm928_vm7, %v2212_v48  ;;  %866 = vrot.lane.b32.xlu1 %v663_v34, %s6315_s25  ;;  %v5689_v46 = vcombine.low %v3360_v50, %v3362_v42  ;;  %v3220_v34 = vrot.slane %v5637_v18, 5  ;;  %v2152_v47 = vrot.slane %v7224_v10, 5 }
  0xda   : > { %864 = vrot.lane.b32.xlu0 %v653_v26, %s6315_s25  ;;  %3904 = vmatprep.mubr.bf16.mxu0 %v6186_v52  ;;  %1973 = vst.msk [vmem:[#allocation2 + $0xac] sm:$0xf] %vm364_vm6, %v1724_v32  ;;  %v5554_v45 = vld [vmem:[%s6437_s22 + $0x78] sm:$0xf]  ;;  %v3227_v48 = vrot.slane %v5640_v15, 5  ;;  %v2782_v54 = vrot.slane %v2780_v2, 5  ;;  %v671_v63 = vor.u32 %v670_v22, %v667_v40 }
  0xdb   : > { %v1187_v41 = vpop.permute.xlu1 %1186  ;;  %3905 = vmatmul.mubr.bf16.gmra.mxu0 %v5689_v46  ;;  %v3221_v26 = vsel %vm6448_vm3, %v5672_v29, %v3220_v34  ;;  %v3222_v42 = vrot.slane %v3220_v34, 4  ;;  %v7247_v55 = vld [vmem:[%s6437_s22 + $0x80] sm:$0x1]  ;;  %v5410_v56 = vld [vmem:[%s6437_s22 + $0x6c] sm:$0xf]  ;;  %v2778_v58 = vrot.slane %v2777_v27, 4 }
  0xdc   : > { %1276 = vst.msk [vmem:[#allocation2 + $0x54] sm:$0xf] %vm1268_vm8, %v1187_v41  ;;  %v1185_v62 = vpop.permute.xlu0 %1184  ;;  %v7255_v59 = vld [vmem:[%s6437_s22 + $0x78] sm:$0xe]  ;;  %v7258_v49 = vld [vmem:[%s6437_s22 + $0x70] sm:$0xf]  ;;  %v3228_v57 = vsel %vm6448_vm3, %v5673_v38, %v3227_v48 }
  0xdd   : > { %1275 = vst.msk [vmem:[#allocation2 + $0x48] sm:$0xf] %vm1268_vm8, %v1185_v62  ;;  %2233 = vrot.lane.b32.xlu1 %v2149_v35, %s6315_s25  ;;  %v5641_v35 = vld [vmem:[%s6437_s22 + $0x74] sm:$0x1]  ;;  %v3224_v46 = vsel %vm6448_vm3, %v3222_v42, %v3223_v33  ;;  %v3229_v60 = vrot.slane %v3227_v48, 4  ;;  %v2768_v61 = vrot.slane %v2767_v37, 4  ;;  %v2783_v18 = vsel %vm6488_vm5, %v2778_v58, %v2782_v54 }
  0xde   : > { %2231 = vrot.lane.b32.xlu0 %v2146_v53, %s6315_s25  ;;  %3332 = vst.msk [vmem:[#allocation2 + $0x98] sm:$0xf] %vm364_vm6, %v3221_v26  ;;  %v3230_v50 = vrot.slane %v5641_v35, 5  ;;  %v5411_v53 = vld [vmem:[%s6437_s22 + $0x70] sm:$0xf]  ;;  %v7267_v3 = vrot.slane %v684_v43, 5 }
  0xdf   : > { %v2407_v24 = vpop.permute.xlu1 %2406  ;;  %3333 = vst.msk [vmem:[#allocation2 + $0xa4] sm:$0xf] %vm364_vm6, %v3224_v46  ;;  %3334 = vst.msk [vmem:[#allocation2 + $0xb0] sm:$0xf] %vm364_vm6, %v3228_v57  ;;  %v349_v41 = vld [vmem:[%s6437_s22 + $0x64] sm:$0xf] }
  0xe0   : > { %2495 = vst.msk [vmem:[#allocation2 + $0x58] sm:$0xf] %vm1268_vm8, %v2407_v24  ;;  %v2405_v30 = vpop.permute.xlu0 %2404  ;;  %v348_v0 = vld [vmem:[%s6437_s22 + $0x60] sm:$0xf]  ;;  %v2154_v5 = vrot.slane %v2152_v47, 4  ;;  %v3231_v12 = vsel %vm6448_vm3, %v3229_v60, %v3230_v50  ;;  %v682_v6 = vrot.slane %v681_v19, 4 }
  0xe1   : > { %2494 = vst.msk [vmem:[#allocation2 + $0x4c] sm:$0xf] %vm1268_vm8, %v2405_v30  ;;  %1206 = vrot.lane.b32.xlu1 %v1122_v20, %s6314_s24  ;;  %v7272_v62 = vld [vmem:[%s6437_s22 + $0x74] sm:$0x1]  ;;  %v7275_v9 = vld [vmem:[%s6437_s22 + $0x6c] sm:$0xe]  ;;  %v2773_v30 = vsel %vm6488_vm5, %v2768_v61, %v7202_v7 }
  0xe2   : > { %1204 = vrot.lane.b32.xlu0 %v1119_v36, %s6314_s24  ;;  %382 = vst.msk [vmem:[#allocation2 + $0xcc] sm:$0xf] %vm364_vm6, %v349_v41  ;;  %381 = vst.msk [vmem:[#allocation2 + $0xc0] sm:$0xf] %vm364_vm6, %v348_v0  ;;  %v2155_v13 = vrot.slane %v7247_v55, 5  ;;  %v5531_v4 = vrot.slane %v7255_v59, 9  ;;  %v687_v22 = vsel %vm6488_vm5, %v682_v6, %v7267_v3 }
  0xe3   : > { %v1381_v44 = vpop.permute.xlu1 %1380  ;;  %v1125_v16 = vrot.slane %v7258_v49, 5  ;;  %3335 = vst.msk [vmem:[#allocation2 + $0xbc] sm:$0xf] %vm364_vm6, %v3231_v12  ;;  %v5451_v17 = vld [vmem:[%s6437_s22 + $0x70] sm:$0xf]  ;;  %v672_v14 = vrot.slane %v671_v63, 4 }
  0xe4   : > { %1470 = vst.msk [vmem:[#allocation2 + $0x54] sm:$0xf] %vm1462_vm9, %v1381_v44  ;;  %v1379_v52 = vpop.permute.xlu0 %1378  ;;  %v5598_v20 = vld [vmem:[%s6437_s22 + $0x88] sm:$0xf]  ;;  %v5452_v21 = vld [vmem:[%s6437_s22 + $0x74] sm:$0x1]  ;;  %v2156_v46 = vsel %vm6448_vm3, %v2154_v5, %v2155_v13 }
  0xe5   : > { %1469 = vst.msk [vmem:[#allocation2 + $0x48] sm:$0xf] %vm1462_vm9, %v1379_v52  ;;  %2426 = vrot.lane.b32.xlu1 %v5555_v39, %s6314_s24  ;;  %v1745_v23 = vshll.u32 %v5451_v17, 16  ;;  %v1749_v1 = vshrl.u32 %v5451_v17, 16  ;;  %v1128_v24 = vrot.slane %v7272_v62, 5  ;;  %v5387_v36 = vrot.slane %v7275_v9, 9 }
  0xe6   : > { %2424 = vrot.lane.b32.xlu0 %v5554_v45, %s6314_s24  ;;  %v1755_v25 = vshll.u32 %v5452_v21, 16  ;;  %v5597_v31 = vld [vmem:[%s6437_s22 + $0x84] sm:$0xf]  ;;  %v5450_v15 = vld [vmem:[%s6437_s22 + $0x6c] sm:$0xf]  ;;  %v2794_v27 = vshll.u32 %v5598_v20, 16  ;;  %v677_v48 = vsel %vm6488_vm5, %v672_v14, %v7221_v28 }
  0xe7   : > { %v2967_v2 = vpop.permute.xlu1 %2966  ;;  %v7300_v32 = vrot.slane %v1745_v23, 5  ;;  %v1751_v34 = vrot.slane %v1749_v1, 4  ;;  %v6201_v37 = vld [vmem:[#allocation2 + $0x98] ss:$12 sps:$4 sm:$0xff]   ;;  %v1736_v33 = vshrl.u32 %v5450_v15, 16  ;;  %v2798_v38 = vshrl.u32 %v5598_v20, 16 }
  0xe8   : > { %3055 = vst.msk [vmem:[#allocation2 + $0x58] sm:$0xf] %vm1462_vm9, %v2967_v2  ;;  %v2965_v11 = vpop.permute.xlu0 %2964  ;;  %v1757_v7 = vrot.slane %v1755_v25, 5  ;;  %v1739_v40 = vshll.u32 %v5450_v15, 16  ;;  %v2785_v26 = vshrl.u32 %v5597_v31, 16  ;;  %v2788_v42 = vshll.u32 %v5597_v31, 16  ;;  %6019 = vmatprep.mubr.msk.bf16.mxu1 %vm3807_vm10, %v6201_v37 }
  0xe9   : > { %3054 = vst.msk [vmem:[#allocation2 + $0x4c] sm:$0xf] %vm1462_vm9, %v2965_v11  ;;  %1400 = vrot.lane.b32.xlu1 %v5411_v53, %s6316_s17  ;;  %v1752_v39 = vor.u32 %v1751_v34, %v7300_v32  ;;  %v428_v44 = vld [vmem:[%s6437_s22 + $0x7c] sm:$0xf]  ;;  %v1738_v45 = vrot.slane %v1736_v33, 4  ;;  %v7327_v60 = vrot.slane %v2794_v27, 5  ;;  %v1126_v62 = vsel %vm6448_vm3, %v5387_v36, %v1125_v16 }
  0xea   : > { %1398 = vrot.lane.b32.xlu0 %v5410_v56, %s6316_s17  ;;  %v6202_v52 = vld [vmem:[#allocation2 + $0xb0] ss:$12 sps:$4 sm:$0xff]   ;;  %v2153_v56 = vsel %vm6448_vm3, %v5531_v4, %v2152_v47  ;;  %v427_v58 = vld [vmem:[%s6437_s22 + $0x78] sm:$0xf]  ;;  %v1741_v59 = vrot.slane %v1739_v40, 5  ;;  %v2800_v61 = vrot.slane %v2798_v38, 4 }
  0xeb   : > { %v851_v29 = vpop.permute.xlu1 %850  ;;  %v1753_v53 = vrot.slane %v1752_v39, 4  ;;  %v5599_v57 = vld [vmem:[%s6437_s22 + $0x8c] sm:$0x1]  ;;  %6020 = vmatmul.mubr.msk.bf16.gmra.mxu1 %vm3807_vm10, %v6202_v52  ;;  %v1127_v10 = vrot.slane %v1125_v16, 4  ;;  %v698_v47 = vshll.u32 %v428_v44, 16  ;;  %v702_v41 = vshrl.u32 %v428_v44, 16 }
  0xec   : > { %938 = vst.msk [vmem:[#allocation2 + $0x6c] sm:$0xf] %vm928_vm7, %v851_v29  ;;  %v849_v35 = vpop.permute.xlu0 %848  ;;  %v1742_v0 = vor.u32 %v1741_v59, %v1738_v45  ;;  %v2787_v3 = vrot.slane %v2785_v26, 4  ;;  %v2790_v5 = vrot.slane %v2788_v42, 5  ;;  %v689_v12 = vshrl.u32 %v427_v58, 16 }
  0xed   : > { %937 = vst.msk [vmem:[#allocation2 + $0x60] sm:$0xf] %vm928_vm7, %v849_v35  ;;  %2986 = vrot.lane.b32.xlu1 %v2783_v18, %s6316_s17  ;;  %v1758_v63 = vsel %vm6488_vm5, %v1753_v53, %v1757_v7  ;;  %v692_v11 = vshll.u32 %v427_v58, 16  ;;  %v2804_v13 = vshll.u32 %v5599_v57, 16  ;;  %v2801_v17 = vor.u32 %v2800_v61, %v7327_v60  ;;  %v429_v20 = vld [vmem:[%s6437_s22 + $0x80] sm:$0x1] }
  0xee   : > { %2984 = vrot.lane.b32.xlu0 %v2773_v30, %s6316_s17  ;;  %1976 = vst.msk [vmem:[#allocation2 + $0xd0] sm:$0xf] %vm364_vm6, %v1758_v63  ;;  %v1743_v4 = vrot.slane %v1742_v0, 4  ;;  %v1129_v18 = vsel %vm6448_vm3, %v1127_v10, %v1128_v24  ;;  %v7346_v21 = vrot.slane %v698_v47, 5  ;;  %v704_v23 = vrot.slane %v702_v41, 4 }
  0xef   : > { %v2218_v43 = vpop.permute.xlu1 %2217  ;;  %v3366_v50 = vld [vmem:[#allocation2 + $0x54] sm:$0xff]  ;;  %v2791_v25 = vor.u32 %v2790_v5, %v2787_v3  ;;  %v691_v29 = vrot.slane %v689_v12, 4  ;;  %v694_v24 = vrot.slane %v692_v11, 5  ;;  %v351_v30 = vld [vmem:[%s6437_s22 + $0x70] sm:$0xf]  ;;  %v7369_v36 = vrot.slane %v2801_v17, 4 }
  0xf0   : > { %2304 = vst.msk [vmem:[#allocation2 + $0x70] sm:$0xf] %vm928_vm7, %v2218_v43  ;;  %v2216_v54 = vpop.permute.xlu0 %2215  ;;  %v3364_v19 = vld [vmem:[#allocation2 + $0x48] sm:$0xff]  ;;  %v1748_v1 = vsel %vm6488_vm5, %v1743_v4, %v7300_v32  ;;  %v7362_v32 = vrot.slane %v2804_v13, 5  ;;  %v5556_v16 = vld [vmem:[%s6437_s22 + $0x84] sm:$0xf]  ;;  %v705_v7 = vor.u32 %v704_v23, %v7346_v21 }
  0xf1   : > { %v6191_v55 = vld [vmem:[#allocation2 + $0x4c] ss:$12 sps:$4 sm:$0xff]   ;;  %2303 = vst.msk [vmem:[#allocation2 + $0x64] sm:$0xf] %vm928_vm7, %v2216_v54  ;;  %870 = vrot.lane.b32.xlu1 %v687_v22, %s6315_s25  ;;  %v5692_v28 = vcombine.low %v3364_v19, %v3366_v50  ;;  %v5557_v9 = vld [vmem:[%s6437_s22 + $0x88] sm:$0xf]  ;;  %v695_v40 = vor.u32 %v694_v24, %v691_v29 }
  0xf2   : > { %868 = vrot.lane.b32.xlu0 %v677_v48, %s6315_s25  ;;  %3912 = vmatprep.mubr.bf16.mxu0 %v6191_v55  ;;  %1975 = vst.msk [vmem:[#allocation2 + $0xc4] sm:$0xf] %vm364_vm6, %v1748_v1  ;;  %v350_v31 = vld [vmem:[%s6437_s22 + $0x6c] sm:$0xf]  ;;  %384 = vst.msk [vmem:[#allocation2 + $0xe4] sm:$0xf] %vm364_vm6, %v351_v30 }
  0xf3   : > { %v1191_v2 = vpop.permute.xlu1 %1190  ;;  %3913 = vmatmul.mubr.bf16.gmra.mxu0 %v5692_v28  ;;  %383 = vst.msk [vmem:[#allocation2 + $0xd8] sm:$0xf] %vm364_vm6, %v350_v31  ;;  %v708_v34 = vshll.u32 %v429_v20, 16  ;;  %v7372_v15 = vld [vmem:[%s6437_s22 + $0x88] sm:$0xf]  ;;  %v7379_v39 = vrot.slane %v2791_v25, 4  ;;  %v2807_v20 = vsel %vm6488_vm5, %v7369_v36, %v7362_v32 }
  0xf4   : > { %1278 = vst.msk [vmem:[#allocation2 + $0x6c] sm:$0xf] %vm1268_vm8, %v1191_v2  ;;  %v1189_v6 = vpop.permute.xlu0 %1188  ;;  %v5601_v35 = vld [vmem:[%s6437_s22 + $0x94] sm:$0xf]  ;;  %v5600_v27 = vld [vmem:[%s6437_s22 + $0x90] sm:$0xf] }
  0xf5   : > { %1277 = vst.msk [vmem:[#allocation2 + $0x60] sm:$0xf] %vm1268_vm8, %v1189_v6  ;;  %2237 = vrot.lane.b32.xlu1 %v2156_v46, %s6315_s25  ;;  %v5454_v37 = vld [vmem:[%s6437_s22 + $0x7c] sm:$0xf]  ;;  %v5455_v33 = vld [vmem:[%s6437_s22 + $0x80] sm:$0x1]  ;;  %v2797_v29 = vsel %vm6488_vm5, %v7379_v39, %v7327_v60 }
  0xf6   : > { %2235 = vrot.lane.b32.xlu0 %v2153_v56, %s6315_s25  ;;  %v7383_v22 = vld [vmem:[%s6437_s22 + $0x8c] sm:$0x1]  ;;  %v1769_v26 = vshll.u32 %v5454_v37, 16  ;;  %v5453_v42 = vld [vmem:[%s6437_s22 + $0x78] sm:$0xf]  ;;  %v2818_v43 = vshll.u32 %v5601_v35, 16 }
  0xf7   : > { %v2411_v14 = vpop.permute.xlu1 %2410  ;;  %v7388_v45 = vld [vmem:[%s6437_s22 + $0x84] sm:$0xe]  ;;  %v2822_v48 = vshrl.u32 %v5601_v35, 16  ;;  %v1773_v50 = vshrl.u32 %v5454_v37, 16  ;;  %v1779_v52 = vshll.u32 %v5455_v33, 16  ;;  %v2809_v53 = vshrl.u32 %v5600_v27, 16 }
  0xf8   : > { %2497 = vst.msk [vmem:[#allocation2 + $0x70] sm:$0xf] %vm1268_vm8, %v2411_v14  ;;  %v2409_v49 = vpop.permute.xlu0 %2408  ;;  %v7392_v54 = vrot.slane %v1769_v26, 5  ;;  %v1760_v19 = vshrl.u32 %v5453_v42, 16  ;;  %v1763_v55 = vshll.u32 %v5453_v42, 16  ;;  %v7396_v56 = vrot.slane %v708_v34, 5 }
  0xf9   : > { %2496 = vst.msk [vmem:[#allocation2 + $0x64] sm:$0xf] %vm1268_vm8, %v2409_v49  ;;  %1210 = vrot.lane.b32.xlu1 %v1129_v18, %s6314_s24  ;;  %v5413_v46 = vld [vmem:[%s6437_s22 + $0x7c] sm:$0xf]  ;;  %v2159_v58 = vrot.slane %v7372_v15, 5  ;;  %v2812_v59 = vshll.u32 %v5600_v27, 16 }
  0xfa   : > { %1208 = vrot.lane.b32.xlu0 %v1126_v62, %s6314_s24  ;;  %v1775_v28 = vrot.slane %v1773_v50, 4  ;;  %v5412_v61 = vld [vmem:[%s6437_s22 + $0x78] sm:$0xf]  ;;  %v2162_v63 = vrot.slane %v7383_v22, 5  ;;  %v5532_v10 = vrot.slane %v7388_v45, 9  ;;  %v1762_v47 = vrot.slane %v1760_v19, 4 }
  0xfb   : > { %v1385_v38 = vpop.permute.xlu1 %1384  ;;  %v1765_v41 = vrot.slane %v1763_v55, 5  ;;  %v7403_v2 = vrot.slane %v705_v7, 4  ;;  %v7405_v3 = vrot.slane %v695_v40, 4  ;;  %v7408_v5 = vld [vmem:[%s6437_s22 + $0x7c] sm:$0xf]  ;;  %v1781_v11 = vrot.slane %v1779_v52, 5 }
  0xfc   : > { %1472 = vst.msk [vmem:[#allocation2 + $0x6c] sm:$0xf] %vm1462_vm9, %v1385_v38  ;;  %v1383_v44 = vpop.permute.xlu0 %1382  ;;  %v1776_v12 = vor.u32 %v1775_v28, %v7392_v54  ;;  %v7414_v6 = vld [vmem:[%s6437_s22 + $0x98] sm:$0x1]  ;;  %v7416_v13 = vrot.slane %v2818_v43, 5  ;;  %v7418_v4 = vrot.slane %v2822_v48, 4  ;;  %v2160_v22 = vsel %vm6448_vm3, %v5532_v10, %v2159_v58 }
  0xfd   : > { %1471 = vst.msk [vmem:[#allocation2 + $0x60] sm:$0xf] %vm1462_vm9, %v1383_v44  ;;  %2430 = vrot.lane.b32.xlu1 %v5557_v9, %s6314_s24  ;;  %v7420_v17 = vrot.slane %v2809_v53, 4  ;;  %v1766_v18 = vor.u32 %v1765_v41, %v1762_v47  ;;  %v7427_v23 = vrot.slane %v2812_v59, 5  ;;  %v7430_v1 = vld [vmem:[%s6437_s22 + $0x88] sm:$0xf]  ;;  %v711_v32 = vsel %vm6488_vm5, %v7403_v2, %v7396_v56 }
  0xfe   : > { %2428 = vrot.lane.b32.xlu0 %v5556_v16, %s6314_s24  ;;  %v1777_v14 = vrot.slane %v1776_v12, 4  ;;  %v5642_v62 = vld [vmem:[%s6437_s22 + $0x78] sm:$0xe]  ;;  %v2161_v24 = vrot.slane %v2159_v58, 4  ;;  %v5643_v31 = vld [vmem:[%s6437_s22 + $0x7c] sm:$0xf]  ;;  %v701_v60 = vsel %vm6488_vm5, %v7405_v3, %v7346_v21  ;;  %v2825_v37 = vor.u32 %v7418_v4, %v7416_v13 }
  0xff   : > { %v2971_v57 = vpop.permute.xlu1 %2970  ;;  %v1767_v30 = vrot.slane %v1766_v18, 4  ;;  %v5644_v49 = vld [vmem:[%s6437_s22 + $0x80] sm:$0x1]  ;;  %v1132_v16 = vrot.slane %v7408_v5, 5  ;;  %v7452_v36 = vld [vmem:[%s6437_s22 + $0x8c] sm:$0x1]  ;;  %v2815_v26 = vor.u32 %v7427_v23, %v7420_v17 }
 0x100   : > { %3057 = vst.msk [vmem:[#allocation2 + $0x70] sm:$0xf] %vm1462_vm9, %v2971_v57  ;;  %v2969_v0 = vpop.permute.xlu0 %2968  ;;  %v1782_v34 = vsel %vm6488_vm5, %v1777_v14, %v1781_v11  ;;  %v5645_v35 = vld [vmem:[%s6437_s22 + $0x84] sm:$0xe]  ;;  %v7460_v27 = vld [vmem:[%s6437_s22 + $0x80] sm:$0x1]  ;;  %v2163_v12 = vsel %vm6448_vm3, %v2161_v24, %v2162_v63 }
 0x101   : > { %3056 = vst.msk [vmem:[#allocation2 + $0x64] sm:$0xf] %vm1462_vm9, %v2969_v0  ;;  %1404 = vrot.lane.b32.xlu1 %v5413_v46, %s6316_s17  ;;  %v2828_v21 = vshll.u32 %v7414_v6, 16  ;;  %v7466_v33 = vld [vmem:[%s6437_s22 + $0x84] sm:$0xf]  ;;  %v1772_v38 = vsel %vm6488_vm5, %v1767_v30, %v7392_v54  ;;  %v5674_v39 = vrot.slane %v5642_v62, 9 }
 0x102   : > { %1402 = vrot.lane.b32.xlu0 %v5412_v61, %s6316_s17  ;;  %1978 = vst.msk [vmem:[#allocation2 + $0xe8] sm:$0xf] %vm364_vm6, %v1782_v34  ;;  %v5646_v7 = vld [vmem:[%s6437_s22 + $0x88] sm:$0xf]  ;;  %v7475_v40 = vld [vmem:[%s6437_s22 + $0x78] sm:$0xe] }
 0x103   : > { %v855_v25 = vpop.permute.xlu1 %854  ;;  %v722_v42 = vshll.u32 %v7430_v1, 16  ;;  %1977 = vst.msk [vmem:[#allocation2 + $0xdc] sm:$0xf] %vm364_vm6, %v1772_v38  ;;  %v3234_v44 = vrot.slane %v5643_v31, 5  ;;  %v3237_v43 = vrot.slane %v5644_v49, 5  ;;  %v726_v53 = vshrl.u32 %v7430_v1, 16 }
 0x104   : > { %940 = vst.msk [vmem:[#allocation2 + $0x84] sm:$0xf] %vm928_vm7, %v855_v25  ;;  %v853_v9 = vpop.permute.xlu0 %852  ;;  %v5647_v48 = vld [vmem:[%s6437_s22 + $0x8c] sm:$0x1]  ;;  %v732_v54 = vshll.u32 %v7452_v36, 16  ;;  %v5675_v19 = vrot.slane %v5645_v35, 9 }
 0x105   : > { %939 = vst.msk [vmem:[#allocation2 + $0x78] sm:$0xf] %vm928_vm7, %v853_v9  ;;  %2990 = vrot.lane.b32.xlu1 %v2807_v20, %s6316_s17  ;;  %v3241_v55 = vrot.slane %v5646_v7, 5  ;;  %v713_v28 = vshrl.u32 %v7466_v33, 16  ;;  %v3235_v57 = vsel %vm6448_vm3, %v5674_v39, %v3234_v44  ;;  %v3236_v61 = vrot.slane %v3234_v44, 4 }
 0x106   : > { %2988 = vrot.lane.b32.xlu0 %v2797_v29, %s6316_s17  ;;  %v3244_v47 = vrot.slane %v5647_v48, 5  ;;  %v716_v0 = vshll.u32 %v7466_v33, 16  ;;  %3336 = vst.msk [vmem:[#allocation2 + $0xc8] sm:$0xf] %vm364_vm6, %v3235_v57  ;;  %v1134_v11 = vrot.slane %v1132_v16, 4  ;;  %v1135_v6 = vrot.slane %v7460_v27, 5 }
 0x107   : > { %v2222_v50 = vpop.permute.xlu1 %2221  ;;  %v3370_v52 = vld [vmem:[#allocation2 + $0x6c] sm:$0xff]  ;;  %v3242_v2 = vsel %vm6448_vm3, %v5675_v19, %v3241_v55  ;;  %v3243_v3 = vrot.slane %v3241_v55, 4  ;;  %v7503_v4 = vld [vmem:[%s6437_s22 + $0xa0] sm:$0xf]  ;;  %v3238_v17 = vsel %vm6448_vm3, %v3236_v61, %v3237_v43  ;;  %v5388_v63 = vrot.slane %v7475_v40, 9 }
 0x108   : > { %2306 = vst.msk [vmem:[#allocation2 + $0x88] sm:$0xf] %vm928_vm7, %v2222_v50  ;;  %v2220_v46 = vpop.permute.xlu0 %2219  ;;  %v3368_v56 = vld [vmem:[#allocation2 + $0x60] sm:$0xff]  ;;  %v7515_v20 = vrot.slane %v2828_v21, 5  ;;  %v7518_v23 = vld [vmem:[%s6437_s22 + $0x9c] sm:$0xf]  ;;  %v1136_v49 = vsel %vm6448_vm3, %v1134_v11, %v1135_v6 }
 0x109   : > { %v6193_v59 = vld [vmem:[#allocation2 + $0x64] ss:$12 sps:$4 sm:$0xff]   ;;  %2305 = vst.msk [vmem:[#allocation2 + $0x7c] sm:$0xf] %vm928_vm7, %v2220_v46  ;;  %874 = vrot.lane.b32.xlu1 %v711_v32, %s6315_s25  ;;  %v5695_v41 = vcombine.low %v3368_v56, %v3370_v52  ;;  %v3245_v1 = vsel %vm6448_vm3, %v3243_v3, %v3244_v47  ;;  %v353_v14 = vld [vmem:[%s6437_s22 + $0x7c] sm:$0xf]  ;;  %v1133_v35 = vsel %vm6448_vm3, %v5388_v63, %v1132_v16 }
 0x10a   : > { %872 = vrot.lane.b32.xlu0 %v701_v60, %s6315_s25  ;;  %3920 = vmatprep.mubr.bf16.mxu0 %v6193_v59  ;;  %3338 = vst.msk [vmem:[#allocation2 + $0xe0] sm:$0xf] %vm364_vm6, %v3242_v2  ;;  %3337 = vst.msk [vmem:[#allocation2 + $0xd4] sm:$0xf] %vm364_vm6, %v3238_v17  ;;  %v7525_v45 = vrot.slane %v2825_v37, 4  ;;  %v7527_v62 = vrot.slane %v2815_v26, 4 }
 0x10b   : > { %v1195_v18 = vpop.permute.xlu1 %1194  ;;  %3921 = vmatmul.mubr.bf16.gmra.mxu0 %v5695_v41  ;;  %v7529_v58 = vrot.slane %v722_v42, 5  ;;  %v7531_v10 = vrot.slane %v726_v53, 4  ;;  %3339 = vst.msk [vmem:[#allocation2 + $0xec] sm:$0xf] %vm364_vm6, %v3245_v1  ;;  %386 = vst.msk [vmem:[#allocation2 + $0xfc] sm:$0xf] %vm364_vm6, %v353_v14 }
 0x10c   : > { %1280 = vst.msk [vmem:[#allocation2 + $0x84] sm:$0xf] %vm1268_vm8, %v1195_v18  ;;  %v1193_v15 = vpop.permute.xlu0 %1192  ;;  %v352_v25 = vld [vmem:[%s6437_s22 + $0x78] sm:$0xf]  ;;  %v7538_v29 = vrot.slane %v732_v54, 5  ;;  %v7540_v24 = vrot.slane %v713_v28, 4  ;;  %v2831_v55 = vsel %vm6488_vm5, %v7525_v45, %v7515_v20  ;;  %v2821_v46 = vsel %vm6488_vm5, %v7527_v62, %v7416_v13 }
 0x10d   : > { %1279 = vst.msk [vmem:[#allocation2 + $0x78] sm:$0xf] %vm1268_vm8, %v1193_v15  ;;  %2241 = vrot.lane.b32.xlu1 %v2163_v12, %s6315_s25  ;;  %v7542_v30 = vrot.slane %v716_v0, 5  ;;  %v2842_v31 = vshll.u32 %v7503_v4, 16  ;;  %v2846_v9 = vshrl.u32 %v7503_v4, 16  ;;  %v2833_v32 = vshrl.u32 %v7518_v23, 16 }
 0x10e   : > { %385 = vst.msk [vmem:[#allocation2 + $0xf0] sm:$0xf] %vm364_vm6, %v352_v25  ;;  %2239 = vrot.lane.b32.xlu0 %v2160_v22, %s6315_s25  ;;  %v5457_v60 = vld [vmem:[%s6437_s22 + $0x88] sm:$0xf]  ;;  %v5458_v36 = vld [vmem:[%s6437_s22 + $0x8c] sm:$0x1]  ;;  %v729_v22 = vor.u32 %v7531_v10, %v7529_v58 }
 0x10f   : > { %v2415_v34 = vpop.permute.xlu1 %2414  ;;  %v2836_v27 = vshll.u32 %v7518_v23, 16  ;;  %v434_v37 = vld [vmem:[%s6437_s22 + $0x94] sm:$0xf]  ;;  %v1793_v21 = vshll.u32 %v5457_v60, 16  ;;  %v5456_v33 = vld [vmem:[%s6437_s22 + $0x84] sm:$0xf]  ;;  %v719_v25 = vor.u32 %v7542_v30, %v7540_v24 }
 0x110   : > { %2499 = vst.msk [vmem:[#allocation2 + $0x88] sm:$0xf] %vm1268_vm8, %v2415_v34  ;;  %v2413_v38 = vpop.permute.xlu0 %2412  ;;  %v5559_v39 = vld [vmem:[%s6437_s22 + $0x94] sm:$0xf]  ;;  %v7563_v7 = vld [vmem:[%s6437_s22 + $0x90] sm:$0xf] }
 0x111   : > { %v1797_v40 = vshrl.u32 %v5457_v60, 16  ;;  %v1803_v26 = vshll.u32 %v5458_v36, 16  ;;  %2498 = vst.msk [vmem:[#allocation2 + $0x7c] sm:$0xf] %vm1268_vm8, %v2413_v38  ;;  %1214 = vrot.lane.b32.xlu1 %v1136_v49, %s6314_s24  ;;  %v5558_v5 = vld [vmem:[%s6437_s22 + $0x90] sm:$0xf] }
 0x112   : > { %v7569_v16 = vld [vmem:[%s6437_s22 + $0x94] sm:$0xf]  ;;  %v7571_v42 = vrot.slane %v2842_v31, 5  ;;  %v7573_v44 = vrot.slane %v1793_v21, 5  ;;  %v1784_v43 = vshrl.u32 %v5456_v33, 16  ;;  %v1787_v48 = vshll.u32 %v5456_v33, 16  ;;  %1212 = vrot.lane.b32.xlu0 %v1133_v35, %s6314_s24 }
 0x113   : > { %v7577_v50 = vld [vmem:[%s6437_s22 + $0x98] sm:$0x1]  ;;  %v746_v52 = vshll.u32 %v434_v37, 16  ;;  %v6207_v53 = vld [vmem:[#allocation2 + $0xc8] ss:$12 sps:$4 sm:$0xff]   ;;  %v1799_v54 = vrot.slane %v1797_v40, 4  ;;  %v1389_v19 = vpop.permute.xlu1 %1388 }
 0x114   : > { %v750_v56 = vshrl.u32 %v434_v37, 16  ;;  %v6208_v59 = vld [vmem:[#allocation2 + $0xe0] ss:$12 sps:$4 sm:$0xff]   ;;  %v1786_v28 = vrot.slane %v1784_v43, 4  ;;  %1474 = vst.msk [vmem:[#allocation2 + $0x84] sm:$0xf] %vm1462_vm9, %v1389_v19  ;;  %v1387_v57 = vpop.permute.xlu0 %1386  ;;  %6023 = vmatprep.mubr.msk.bf16.mxu1 %vm3807_vm10, %v6207_v53 }
 0x115   : > { %v5415_v61 = vld [vmem:[%s6437_s22 + $0x88] sm:$0xf]  ;;  %v7592_v41 = vrot.slane %v2846_v9, 4  ;;  %v1800_v0 = vor.u32 %v1799_v54, %v7573_v44  ;;  %v1805_v2 = vrot.slane %v1803_v26, 5  ;;  %v1789_v3 = vrot.slane %v1787_v48, 5  ;;  %2434 = vrot.lane.b32.xlu1 %v5559_v39, %s6314_s24  ;;  %6024 = vmatmul.mubr.msk.bf16.gmra.mxu1 %vm3807_vm10, %v6208_v59 }
 0x116   : > { %v7590_v47 = vld [vmem:[%s6437_s22 + $0x88] sm:$0xf]  ;;  %1473 = vst.msk [vmem:[#allocation2 + $0x78] sm:$0xf] %vm1462_vm9, %v1387_v57  ;;  %v5605_v12 = vld [vmem:[%s6437_s22 + $0xa4] sm:$0x1]  ;;  %2432 = vrot.lane.b32.xlu0 %v5558_v5, %s6314_s24 }
 0x117   : > { %v2835_v11 = vrot.slane %v2833_v32, 4  ;;  %v2838_v6 = vrot.slane %v2836_v27, 5  ;;  %v737_v4 = vshrl.u32 %v7563_v7, 16  ;;  %v740_v17 = vshll.u32 %v7563_v7, 16  ;;  %v5414_v18 = vld [vmem:[%s6437_s22 + $0x84] sm:$0xf]  ;;  %v2975_v15 = vpop.permute.xlu1 %2974 }
 0x118   : > { %v2166_v63 = vrot.slane %v7569_v16, 5  ;;  %v7608_v23 = vld [vmem:[%s6437_s22 + $0x90] sm:$0xe]  ;;  %v1801_v1 = vrot.slane %v1800_v0, 4  ;;  %v1790_v14 = vor.u32 %v1789_v3, %v1786_v28  ;;  %v2169_v31 = vrot.slane %v7577_v50, 5  ;;  %v2973_v10 = vpop.permute.xlu0 %2972 }
 0x119   : > { %v435_v49 = vld [vmem:[%s6437_s22 + $0x98] sm:$0x1]  ;;  %v7614_v9 = vrot.slane %v746_v52, 5  ;;  %v752_v32 = vrot.slane %v750_v56, 4  ;;  %3059 = vst.msk [vmem:[#allocation2 + $0x88] sm:$0xf] %vm1462_vm9, %v2975_v15  ;;  %1408 = vrot.lane.b32.xlu1 %v5415_v61, %s6316_s17  ;;  %v2849_v37 = vor.u32 %v7592_v41, %v7571_v42  ;;  %v2839_v21 = vor.u32 %v2838_v6, %v2835_v11 }
 0x11a   : > { %v1139_v60 = vrot.slane %v7590_v47, 5  ;;  %v2852_v36 = vshll.u32 %v5605_v12, 16  ;;  %v7619_v34 = vld [vmem:[%s6437_s22 + $0xa0] sm:$0xf]  ;;  %v1806_v35 = vsel %vm6488_vm5, %v1801_v1, %v1805_v2  ;;  %v1791_v27 = vrot.slane %v1790_v14, 4  ;;  %1406 = vrot.lane.b32.xlu0 %v5414_v18, %s6316_s17 }
 0x11b   : > { %3058 = vst.msk [vmem:[#allocation2 + $0x7c] sm:$0xf] %vm1462_vm9, %v2973_v10  ;;  %v7626_v24 = vld [vmem:[%s6437_s22 + $0x8c] sm:$0x1]  ;;  %v7629_v30 = vld [vmem:[%s6437_s22 + $0x84] sm:$0xe]  ;;  %v859_v5 = vpop.permute.xlu1 %858  ;;  %v753_v52 = vor.u32 %v752_v32, %v7614_v9 }
 0x11c   : > { %v739_v33 = vrot.slane %v737_v4, 4  ;;  %v742_v38 = vrot.slane %v740_v17, 5  ;;  %1980 = vst.msk [vmem:[#allocation2 + $0x100] sm:$0xf] %vm364_vm6, %v1806_v35  ;;  %v730_v39 = vrot.slane %v729_v22, 4  ;;  %v5533_v7 = vrot.slane %v7608_v23, 9  ;;  %v857_v19 = vpop.permute.xlu0 %856 }
 0x11d   : > { %v756_v40 = vshll.u32 %v435_v49, 16  ;;  %v1796_v26 = vsel %vm6488_vm5, %v1791_v27, %v7573_v44  ;;  %v720_v43 = vrot.slane %v719_v25, 4  ;;  %v2168_v48 = vrot.slane %v2166_v63, 4  ;;  %v7643_v53 = vld [vmem:[%s6437_s22 + $0xa4] sm:$0x1]  ;;  %2994 = vrot.lane.b32.xlu1 %v2831_v55, %s6316_s17 }
 0x11e   : > { %v2173_v54 = vrot.slane %v7619_v34, 5  ;;  %1979 = vst.msk [vmem:[#allocation2 + $0xf4] sm:$0xf] %vm364_vm6, %v1796_v26  ;;  %v1141_v44 = vrot.slane %v1139_v60, 4  ;;  %v1142_v56 = vrot.slane %v7626_v24, 5  ;;  %v5389_v59 = vrot.slane %v7629_v30, 9  ;;  %2992 = vrot.lane.b32.xlu0 %v2821_v46, %s6316_s17 }
 0x11f   : > { %942 = vst.msk [vmem:[#allocation2 + $0x9c] sm:$0xf] %vm928_vm7, %v859_v5  ;;  %v7652_v28 = vrot.slane %v2852_v36, 5  ;;  %v7655_v57 = vld [vmem:[%s6437_s22 + $0x9c] sm:$0xe]  ;;  %v7664_v61 = vrot.slane %v2849_v37, 4  ;;  %v743_v0 = vor.u32 %v742_v38, %v739_v33  ;;  %v735_v20 = vsel %vm6488_vm5, %v730_v39, %v7538_v29  ;;  %v2226_v6 = vpop.permute.xlu1 %2225 }
 0x120   : > { %941 = vst.msk [vmem:[#allocation2 + $0x90] sm:$0xf] %vm928_vm7, %v857_v19  ;;  %v7666_v41 = vrot.slane %v2839_v21, 4  ;;  %v355_v2 = vld [vmem:[%s6437_s22 + $0x88] sm:$0xf]  ;;  %v7679_v45 = vrot.slane %v756_v40, 5  ;;  %v725_v13 = vsel %vm6488_vm5, %v720_v43, %v7529_v58  ;;  %v2224_v18 = vpop.permute.xlu0 %2223  ;;  %v2170_v10 = vsel %vm6448_vm3, %v2168_v48, %v2169_v31 }
 0x121   : > { %v354_v3 = vld [vmem:[%s6437_s22 + $0x84] sm:$0xf]  ;;  %v2176_v55 = vrot.slane %v7643_v53, 5  ;;  %v7683_v12 = vld [vmem:[%s6437_s22 + $0x94] sm:$0xf]  ;;  %v7693_v29 = vrot.slane %v753_v52, 4  ;;  %878 = vrot.lane.b32.xlu1 %v735_v20, %s6315_s25  ;;  %v2167_v36 = vsel %vm6448_vm3, %v5533_v7, %v2166_v63  ;;  %v1143_v38 = vsel %vm6448_vm3, %v1141_v44, %v1142_v56 }
 0x122   : > { %v7686_v11 = vld [vmem:[%s6437_s22 + $0x98] sm:$0x1]  ;;  %388 = vst.msk [vmem:[#allocation2 + $0x114] sm:$0xf] %vm364_vm6, %v355_v2  ;;  %387 = vst.msk [vmem:[#allocation2 + $0x108] sm:$0xf] %vm364_vm6, %v354_v3  ;;  %876 = vrot.lane.b32.xlu0 %v725_v13, %s6315_s25  ;;  %v1140_v39 = vsel %vm6448_vm3, %v5389_v59, %v1139_v60 }
 0x123   : > { %v3374_v62 = vld [vmem:[#allocation2 + $0x84] sm:$0xff]  ;;  %v7697_v46 = vrot.slane %v2173_v54, 4  ;;  %v5534_v4 = vrot.slane %v7655_v57, 9  ;;  %v5460_v17 = vld [vmem:[%s6437_s22 + $0x94] sm:$0xf]  ;;  %v3372_v22 = vld [vmem:[#allocation2 + $0x78] sm:$0xff]  ;;  %v1199_v37 = vpop.permute.xlu1 %1198 }
 0x124   : > { %2308 = vst.msk [vmem:[#allocation2 + $0xa0] sm:$0xf] %vm928_vm7, %v2226_v6  ;;  %v6197_v23 = vld [vmem:[#allocation2 + $0x7c] ss:$12 sps:$4 sm:$0xff]   ;;  %v7703_v1 = vld [vmem:[%s6437_s22 + $0x90] sm:$0xe]  ;;  %v5698_v14 = vcombine.low %v3372_v22, %v3374_v62  ;;  %v1197_v63 = vpop.permute.xlu0 %1196 }
 0x125   : > { %v1817_v58 = vshll.u32 %v5460_v17, 16  ;;  %2307 = vst.msk [vmem:[#allocation2 + $0x94] sm:$0xf] %vm928_vm7, %v2224_v18  ;;  %v7707_v15 = vrot.slane %v743_v0, 4  ;;  %v1146_v25 = vrot.slane %v7683_v12, 5  ;;  %v1149_v49 = vrot.slane %v7686_v11, 5  ;;  %3928 = vmatprep.mubr.bf16.mxu0 %v6197_v23  ;;  %2245 = vrot.lane.b32.xlu1 %v2170_v10, %s6315_s25 }
 0x126   : > { %v5461_v32 = vld [vmem:[%s6437_s22 + $0x98] sm:$0x1]  ;;  %v7722_v35 = vld [vmem:[%s6437_s22 + $0xac] sm:$0xf]  ;;  %v1821_v24 = vshrl.u32 %v5460_v17, 16  ;;  %3929 = vmatmul.mubr.bf16.gmra.mxu0 %v5698_v14  ;;  %v5390_v50 = vrot.slane %v7703_v1, 9  ;;  %2243 = vrot.lane.b32.xlu0 %v2167_v36, %s6315_s25 }
 0x127   : > { %v7724_v27 = vrot.slane %v1817_v58, 5  ;;  %v5459_v30 = vld [vmem:[%s6437_s22 + $0x90] sm:$0xf]  ;;  %v1827_v21 = vshll.u32 %v5461_v32, 16  ;;  %1282 = vst.msk [vmem:[#allocation2 + $0x9c] sm:$0xf] %vm1268_vm8, %v1199_v37  ;;  %v2419_v2 = vpop.permute.xlu1 %2418 }
 0x128   : > { %v1808_v33 = vshrl.u32 %v5459_v30, 16  ;;  %v1811_v31 = vshll.u32 %v5459_v30, 16  ;;  %v5648_v16 = vld [vmem:[%s6437_s22 + $0x90] sm:$0xe]  ;;  %v1823_v7 = vrot.slane %v1821_v24, 4  ;;  %v7742_v43 = vrot.slane %v1146_v25, 4  ;;  %v2417_v18 = vpop.permute.xlu0 %2416 }
 0x129   : > { %v5649_v40 = vld [vmem:[%s6437_s22 + $0x94] sm:$0xf]  ;;  %v5650_v26 = vld [vmem:[%s6437_s22 + $0x98] sm:$0x1]  ;;  %v5676_v5 = vrot.slane %v5648_v16, 9  ;;  %v2866_v47 = vshll.u32 %v7722_v35, 16  ;;  %1218 = vrot.lane.b32.xlu1 %v1143_v38, %s6314_s24 }
 0x12a   : > { %1281 = vst.msk [vmem:[#allocation2 + $0x90] sm:$0xf] %vm1268_vm8, %v1197_v63  ;;  %v1810_v48 = vrot.slane %v1808_v33, 4  ;;  %v1813_v52 = vrot.slane %v1811_v31, 5  ;;  %v5651_v60 = vld [vmem:[%s6437_s22 + $0x9c] sm:$0xe]  ;;  %v1824_v19 = vor.u32 %v1823_v7, %v7724_v27  ;;  %1216 = vrot.lane.b32.xlu0 %v1140_v39, %s6314_s24 }
 0x12b   : > { %v1829_v44 = vrot.slane %v1827_v21, 5  ;;  %v3248_v56 = vrot.slane %v5649_v40, 5  ;;  %v3251_v59 = vrot.slane %v5650_v26, 5  ;;  %v5652_v0 = vld [vmem:[%s6437_s22 + $0xa0] sm:$0xf]  ;;  %v2870_v20 = vshrl.u32 %v7722_v35, 16  ;;  %v1393_v40 = vpop.permute.xlu1 %1392 }
 0x12c   : > { %v7750_v3 = vld [vmem:[%s6437_s22 + $0xb0] sm:$0x1]  ;;  %v1814_v6 = vor.u32 %v1813_v52, %v1810_v48  ;;  %v5653_v13 = vld [vmem:[%s6437_s22 + $0xa4] sm:$0x1]  ;;  %v5677_v62 = vrot.slane %v5651_v60, 9  ;;  %v3255_v17 = vrot.slane %v5652_v0, 5  ;;  %v749_v35 = vsel %vm6488_vm5, %v7707_v15, %v7614_v9 }
 0x12d   : > { %2501 = vst.msk [vmem:[#allocation2 + $0xa0] sm:$0xf] %vm1268_vm8, %v2419_v2  ;;  %v5561_v22 = vld [vmem:[%s6437_s22 + $0xa0] sm:$0xf]  ;;  %v7757_v23 = vld [vmem:[%s6437_s22 + $0xa8] sm:$0xf]  ;;  %v3249_v14 = vsel %vm6448_vm3, %v5676_v5, %v3248_v56  ;;  %v2177_v9 = vsel %vm6448_vm3, %v7697_v46, %v2176_v55  ;;  %v1150_v46 = vsel %vm6448_vm3, %v7742_v43, %v1149_v49 }
 0x12e   : > { %v1825_v58 = vrot.slane %v1824_v19, 4  ;;  %v3250_v32 = vrot.slane %v3248_v56, 4  ;;  %v5463_v10 = vld [vmem:[%s6437_s22 + $0xa0] sm:$0xf]  ;;  %v5462_v36 = vld [vmem:[%s6437_s22 + $0x9c] sm:$0xf]  ;;  %v3256_v37 = vsel %vm6448_vm3, %v5677_v62, %v3255_v17  ;;  %v1391_v19 = vpop.permute.xlu0 %1390  ;;  %2438 = vrot.lane.b32.xlu1 %v5561_v22, %s6314_s24 }
 0x12f   : > { %2500 = vst.msk [vmem:[#allocation2 + $0x94] sm:$0xf] %vm1268_vm8, %v2417_v18  ;;  %v5560_v24 = vld [vmem:[%s6437_s22 + $0x9c] sm:$0xf]  ;;  %v1815_v30 = vrot.slane %v1814_v6, 4  ;;  %v3257_v21 = vrot.slane %v3255_v17, 4 }
 0x130   : > { %3340 = vst.msk [vmem:[#allocation2 + $0xf8] sm:$0xf] %vm364_vm6, %v3249_v14  ;;  %v3258_v33 = vrot.slane %v5653_v13, 5  ;;  %v1830_v31 = vsel %vm6488_vm5, %v1825_v58, %v1829_v44  ;;  %v3252_v16 = vsel %vm6448_vm3, %v3250_v32, %v3251_v59  ;;  %3342 = vst.msk [vmem:[#allocation2 + $0x110] sm:$0xf] %vm364_vm6, %v3256_v37  ;;  %v1841_v38 = vshll.u32 %v5463_v10, 16  ;;  %2436 = vrot.lane.b32.xlu0 %v5560_v24, %s6314_s24  ;;  %v2979_v58 = vpop.permute.xlu1 %2978 }
 0x131   : > { %v5464_v63 = vld [vmem:[%s6437_s22 + $0xa4] sm:$0x1]  ;;  %v1845_v7 = vshrl.u32 %v5463_v10, 16  ;;  %1982 = vst.msk [vmem:[#allocation2 + $0x118] sm:$0xf] %vm364_vm6, %v1830_v31  ;;  %v1820_v26 = vsel %vm6488_vm5, %v1815_v30, %v7724_v27  ;;  %v1832_v60 = vshrl.u32 %v5462_v36, 16 }
 0x132   : > { %3341 = vst.msk [vmem:[#allocation2 + $0x104] sm:$0xf] %vm364_vm6, %v3252_v16  ;;  %v3259_v39 = vsel %vm6448_vm3, %v3257_v21, %v3258_v33  ;;  %v357_v5 = vld [vmem:[%s6437_s22 + $0x94] sm:$0xf]  ;;  %v356_v48 = vld [vmem:[%s6437_s22 + $0x90] sm:$0xf]  ;;  %v2977_v14 = vpop.permute.xlu0 %2976  ;;  %v2845_v33 = vsel %vm6488_vm5, %v7666_v41, %v7571_v42  ;;  %v759_v42 = vsel %vm6488_vm5, %v7693_v29, %v7679_v45 }
 0x133   : > { %v1851_v52 = vshll.u32 %v5464_v63, 16  ;;  %1476 = vst.msk [vmem:[#allocation2 + $0x9c] sm:$0xf] %vm1462_vm9, %v1393_v40  ;;  %v5417_v44 = vld [vmem:[%s6437_s22 + $0x94] sm:$0xf]  ;;  %v2876_v56 = vshll.u32 %v7750_v3, 16 }
 0x134   : > { %1981 = vst.msk [vmem:[#allocation2 + $0x10c] sm:$0xf] %vm364_vm6, %v1820_v26  ;;  %3343 = vst.msk [vmem:[#allocation2 + $0x11c] sm:$0xf] %vm364_vm6, %v3259_v39  ;;  %v1843_v27 = vrot.slane %v1841_v38, 5  ;;  %v1847_v59 = vrot.slane %v1845_v7, 4  ;;  %1412 = vrot.lane.b32.xlu1 %v5417_v44, %s6316_s17  ;;  %v863_v21 = vpop.permute.xlu1 %862 }
 0x135   : > { %390 = vst.msk [vmem:[#allocation2 + $0x12c] sm:$0xf] %vm364_vm6, %v357_v5  ;;  %389 = vst.msk [vmem:[#allocation2 + $0x120] sm:$0xf] %vm364_vm6, %v356_v48  ;;  %v1835_v0 = vshll.u32 %v5462_v36, 16  ;;  %v2857_v6 = vshrl.u32 %v7757_v23, 16  ;;  %v2855_v36 = vsel %vm6488_vm5, %v7664_v61, %v7652_v28 }
 0x136   : > { %1475 = vst.msk [vmem:[#allocation2 + $0x90] sm:$0xf] %vm1462_vm9, %v1391_v19  ;;  %v5416_v2 = vld [vmem:[%s6437_s22 + $0x90] sm:$0xf]  ;;  %v1834_v13 = vrot.slane %v1832_v60, 4  ;;  %v1848_v62 = vor.u32 %v1847_v59, %v1843_v27  ;;  %v1853_v17 = vrot.slane %v1851_v52, 5  ;;  %v861_v28 = vpop.permute.xlu0 %860 }
 0x137   : > { %v1837_v18 = vrot.slane %v1835_v0, 5  ;;  %3061 = vst.msk [vmem:[#allocation2 + $0xa0] sm:$0xf] %vm1462_vm9, %v2979_v58  ;;  %v7800_v32 = vrot.slane %v2866_v47, 5  ;;  %3060 = vst.msk [vmem:[#allocation2 + $0x94] sm:$0xf] %vm1462_vm9, %v2977_v14  ;;  %1410 = vrot.lane.b32.xlu0 %v5416_v2, %s6316_s17 }
 0x138   : > { %v1849_v10 = vrot.slane %v1848_v62, 4  ;;  %v2872_v24 = vrot.slane %v2870_v20, 4  ;;  %v437_v31 = vld [vmem:[%s6437_s22 + $0xa0] sm:$0xf]  ;;  %944 = vst.msk [vmem:[#allocation2 + $0xb4] sm:$0xf] %vm928_vm7, %v863_v21  ;;  %2998 = vrot.lane.b32.xlu1 %v2855_v36, %s6316_s17  ;;  %v2230_v41 = vpop.permute.xlu1 %2229 }
 0x139   : > { %v1838_v22 = vor.u32 %v1837_v18, %v1834_v13  ;;  %v6213_v30 = vld [vmem:[#allocation2 + $0xf8] ss:$12 sps:$4 sm:$0xff]   ;;  %943 = vst.msk [vmem:[#allocation2 + $0xa8] sm:$0xf] %vm928_vm7, %v861_v28  ;;  %v2860_v63 = vshll.u32 %v7757_v23, 16  ;;  %v770_v39 = vshll.u32 %v437_v31, 16  ;;  %v2174_v23 = vsel %vm6448_vm3, %v5534_v4, %v2173_v54 }
 0x13a   : > { %v1854_v47 = vsel %vm6488_vm5, %v1849_v10, %v1853_v17  ;;  %6027 = vmatprep.mubr.msk.bf16.mxu1 %vm3807_vm10, %v6213_v30  ;;  %v436_v38 = vld [vmem:[%s6437_s22 + $0x9c] sm:$0xf]  ;;  %2310 = vst.msk [vmem:[#allocation2 + $0xb8] sm:$0xf] %vm928_vm7, %v2230_v41  ;;  %v2228_v7 = vpop.permute.xlu0 %2227  ;;  %v2873_v29 = vor.u32 %v2872_v24, %v7800_v32  ;;  %v774_v5 = vshrl.u32 %v437_v31, 16  ;;  %v7859_v34 = vrot.slane %v2876_v56, 5 }
 0x13b   : > { %v1839_v37 = vrot.slane %v1838_v22, 4  ;;  %v6214_v16 = vld [vmem:[#allocation2 + $0x110] ss:$12 sps:$4 sm:$0xff]   ;;  %1984 = vst.msk [vmem:[#allocation2 + $0x130] sm:$0xf] %vm364_vm6, %v1854_v47  ;;  %2996 = vrot.lane.b32.xlu0 %v2845_v33, %s6316_s17  ;;  %v761_v48 = vshrl.u32 %v436_v38, 16  ;;  %v1147_v4 = vsel %vm6448_vm3, %v5390_v50, %v1146_v25 }
 0x13c   : > { %6028 = vmatmul.mubr.msk.bf16.gmra.mxu1 %vm3807_vm10, %v6214_v16  ;;  %2309 = vst.msk [vmem:[#allocation2 + $0xac] sm:$0xf] %vm928_vm7, %v2228_v7  ;;  %882 = vrot.lane.b32.xlu1 %v759_v42, %s6315_s25  ;;  %v1203_v15 = vpop.permute.xlu1 %1202  ;;  %v764_v55 = vshll.u32 %v436_v38, 16  ;;  %v7861_v57 = vrot.slane %v2857_v6, 4  ;;  %v7863_v54 = vrot.slane %v2860_v63, 5  ;;  %v7877_v3 = vrot.slane %v2873_v29, 4 }
 0x13d   : > { %v1844_v61 = vsel %vm6488_vm5, %v1839_v37, %v1843_v27  ;;  %1284 = vst.msk [vmem:[#allocation2 + $0xb4] sm:$0xf] %vm1268_vm8, %v1203_v15  ;;  %v7879_v52 = vrot.slane %v770_v39, 5  ;;  %v5466_v60 = vld [vmem:[%s6437_s22 + $0xac] sm:$0xf]  ;;  %v7889_v50 = vrot.slane %v774_v5, 4 }
 0x13e   : > { %1983 = vst.msk [vmem:[#allocation2 + $0x124] sm:$0xf] %vm364_vm6, %v1844_v61  ;;  %v3378_v20 = vld [vmem:[#allocation2 + $0x9c] sm:$0xff]  ;;  %v3376_v40 = vld [vmem:[#allocation2 + $0x90] sm:$0xff]  ;;  %v1201_v53 = vpop.permute.xlu0 %1200  ;;  %v5465_v19 = vld [vmem:[%s6437_s22 + $0xa8] sm:$0xf]  ;;  %v2863_v10 = vor.u32 %v7863_v54, %v7861_v57 }
 0x13f   : > { %v6199_v26 = vld [vmem:[#allocation2 + $0x94] ss:$12 sps:$4 sm:$0xff]   ;;  %v5701_v45 = vcombine.low %v3376_v40, %v3378_v20  ;;  %880 = vrot.lane.b32.xlu0 %v749_v35, %s6315_s25  ;;  %1283 = vst.msk [vmem:[#allocation2 + $0xa8] sm:$0xf] %vm1268_vm8, %v1201_v53  ;;  %v7884_v44 = vld [vmem:[%s6437_s22 + $0xa4] sm:$0x1] }
 0x140   : > { %3936 = vmatprep.mubr.bf16.mxu0 %v6199_v26  ;;  %2249 = vrot.lane.b32.xlu1 %v2177_v9, %s6315_s25  ;;  %v2423_v11 = vpop.permute.xlu1 %2422  ;;  %v1865_v56 = vshll.u32 %v5466_v60, 16  ;;  %v1869_v49 = vshrl.u32 %v5466_v60, 16  ;;  %v1856_v43 = vshrl.u32 %v5465_v19, 16  ;;  %v1859_v12 = vshll.u32 %v5465_v19, 16  ;;  %v5655_v27 = vld [vmem:[%s6437_s22 + $0xac] sm:$0xf] }
 0x141   : > { %3937 = vmatmul.mubr.bf16.gmra.mxu0 %v5701_v45  ;;  %2503 = vst.msk [vmem:[#allocation2 + $0xb8] sm:$0xf] %vm1268_vm8, %v2423_v11  ;;  %v5563_v25 = vld [vmem:[%s6437_s22 + $0xac] sm:$0xf]  ;;  %v7891_v59 = vrot.slane %v761_v48, 4  ;;  %v7893_v0 = vrot.slane %v764_v55, 5  ;;  %v777_v45 = vor.u32 %v7889_v50, %v7879_v52  ;;  %v2879_v19 = vsel %vm6488_vm5, %v7877_v3, %v7859_v34 }
 0x142   : > { %v2421_v1 = vpop.permute.xlu0 %2420  ;;  %v3262_v2 = vrot.slane %v5655_v27, 5  ;;  %v5658_v6 = vld [vmem:[%s6437_s22 + $0xb8] sm:$0xf]  ;;  %v5562_v13 = vld [vmem:[%s6437_s22 + $0xa8] sm:$0xf]  ;;  %v1867_v62 = vrot.slane %v1865_v56, 5 }
 0x143   : > { %2247 = vrot.lane.b32.xlu0 %v2174_v23, %s6315_s25  ;;  %2502 = vst.msk [vmem:[#allocation2 + $0xac] sm:$0xf] %vm1268_vm8, %v2421_v1  ;;  %v1871_v17 = vrot.slane %v1869_v49, 4  ;;  %v1858_v18 = vrot.slane %v1856_v43, 4  ;;  %v1861_v58 = vrot.slane %v1859_v12, 5  ;;  %v780_v42 = vshll.u32 %v7884_v44, 16 }
 0x144   : > { %1222 = vrot.lane.b32.xlu1 %v1150_v46, %s6314_s24  ;;  %v5654_v14 = vld [vmem:[%s6437_s22 + $0xa8] sm:$0xe]  ;;  %v5467_v22 = vld [vmem:[%s6437_s22 + $0xb0] sm:$0x1]  ;;  %v3264_v30 = vrot.slane %v3262_v2, 4  ;;  %v1397_v47 = vpop.permute.xlu1 %1396  ;;  %v3269_v63 = vrot.slane %v5658_v6, 5  ;;  %v767_v48 = vor.u32 %v7893_v0, %v7891_v59 }
 0x145   : > { %v5656_v36 = vld [vmem:[%s6437_s22 + $0xb0] sm:$0x1]  ;;  %v5678_v24 = vrot.slane %v5654_v14, 9  ;;  %v359_v37 = vld [vmem:[%s6437_s22 + $0xa0] sm:$0xf]  ;;  %v1872_v33 = vor.u32 %v1871_v17, %v1867_v62  ;;  %v1875_v31 = vshll.u32 %v5467_v22, 16  ;;  %v1862_v16 = vor.u32 %v1861_v58, %v1858_v18 }
 0x146   : > { %v358_v21 = vld [vmem:[%s6437_s22 + $0x9c] sm:$0xf]  ;;  %v3265_v28 = vrot.slane %v5656_v36, 5  ;;  %1478 = vst.msk [vmem:[#allocation2 + $0xb4] sm:$0xf] %vm1462_vm9, %v1397_v47  ;;  %v1395_v61 = vpop.permute.xlu0 %1394  ;;  %v3271_v29 = vrot.slane %v3269_v63, 4 }
 0x147   : > { %1220 = vrot.lane.b32.xlu0 %v1147_v4, %s6314_s24  ;;  %392 = vst.msk [vmem:[#allocation2 + $0x144] sm:$0xf] %vm364_vm6, %v359_v37  ;;  %391 = vst.msk [vmem:[#allocation2 + $0x138] sm:$0xf] %vm364_vm6, %v358_v21  ;;  %v3263_v41 = vsel %vm6448_vm3, %v5678_v24, %v3262_v2  ;;  %v5657_v35 = vld [vmem:[%s6437_s22 + $0xb4] sm:$0xe] }
 0x148   : > { %v5659_v20 = vld [vmem:[%s6437_s22 + $0xbc] sm:$0x1]  ;;  %1477 = vst.msk [vmem:[#allocation2 + $0xa8] sm:$0xf] %vm1462_vm9, %v1395_v61  ;;  %2442 = vrot.lane.b32.xlu1 %v5563_v25, %s6314_s24  ;;  %v1873_v38 = vrot.slane %v1872_v33, 4  ;;  %v1877_v7 = vrot.slane %v1875_v31, 5  ;;  %v3266_v26 = vsel %vm6448_vm3, %v3264_v30, %v3265_v28  ;;  %v2983_v23 = vpop.permute.xlu1 %2982 }
 0x149   : > { %v1863_v40 = vrot.slane %v1862_v16, 4  ;;  %3344 = vst.msk [vmem:[#allocation2 + $0x128] sm:$0xf] %vm364_vm6, %v3263_v41  ;;  %v5419_v39 = vld [vmem:[%s6437_s22 + $0xa0] sm:$0xf]  ;;  %v5679_v9 = vrot.slane %v5657_v35, 9 }
 0x14a   : > { %3345 = vst.msk [vmem:[#allocation2 + $0x134] sm:$0xf] %vm364_vm6, %v3266_v26  ;;  %v3272_v15 = vrot.slane %v5659_v20, 5  ;;  %v5418_v53 = vld [vmem:[%s6437_s22 + $0x9c] sm:$0xf]  ;;  %v2864_v5 = vrot.slane %v2863_v10, 4  ;;  %v1878_v57 = vsel %vm6488_vm5, %v1873_v38, %v1877_v7  ;;  %v2981_v46 = vpop.permute.xlu0 %2980 }
 0x14b   : > { %2440 = vrot.lane.b32.xlu0 %v5562_v13, %s6314_s24  ;;  %v7929_v55 = vld [vmem:[%s6437_s22 + $0xac] sm:$0xf]  ;;  %v1868_v54 = vsel %vm6488_vm5, %v1863_v40, %v1867_v62  ;;  %3063 = vst.msk [vmem:[#allocation2 + $0xb8] sm:$0xf] %vm1462_vm9, %v2983_v23  ;;  %v3270_v4 = vsel %vm6448_vm3, %v5679_v9, %v3269_v63  ;;  %3062 = vst.msk [vmem:[#allocation2 + $0xac] sm:$0xf] %vm1462_vm9, %v2981_v46 }
 0x14c   : > { %1986 = vst.msk [vmem:[#allocation2 + $0x148] sm:$0xf] %vm364_vm6, %v1878_v57  ;;  %1985 = vst.msk [vmem:[#allocation2 + $0x13c] sm:$0xf] %vm364_vm6, %v1868_v54  ;;  %v3273_v60 = vsel %vm6448_vm3, %v3271_v29, %v3272_v15  ;;  %1416 = vrot.lane.b32.xlu1 %v5419_v39, %s6316_s17  ;;  %v778_v11 = vrot.slane %v777_v45, 4  ;;  %v782_v44 = vrot.slane %v780_v42, 5  ;;  %v867_v43 = vpop.permute.xlu1 %866  ;;  %v2869_v12 = vsel %vm6488_vm5, %v2864_v5, %v7800_v32 }
 0x14d   : > { %3346 = vst.msk [vmem:[#allocation2 + $0x140] sm:$0xf] %vm364_vm6, %v3270_v4  ;;  %3347 = vst.msk [vmem:[#allocation2 + $0x14c] sm:$0xf] %vm364_vm6, %v3273_v60  ;;  %v5515_v56 = vld [vmem:[%s6437_s22 + $0xb0] sm:$0x1] }
 0x14e   : > { %v2180_v49 = vrot.slane %v7929_v55, 5  ;;  %v768_v27 = vrot.slane %v767_v48, 4  ;;  %v5513_v1 = vld [vmem:[%s6437_s22 + $0xa8] sm:$0xe]  ;;  %v1001_v25 = vld [vmem:[%s6437_s22 + $0xa0] sm:$0xf]  ;;  %v865_v50 = vpop.permute.xlu0 %864  ;;  %v783_v32 = vsel %vm6488_vm5, %v778_v11, %v782_v44 }
 0x14f   : > { %1414 = vrot.lane.b32.xlu0 %v5418_v53, %s6316_s17  ;;  %946 = vst.msk [vmem:[#allocation2 + $0xcc] sm:$0xf] %vm928_vm7, %v867_v43  ;;  %v5610_v34 = vld [vmem:[%s6437_s22 + $0xb8] sm:$0xf]  ;;  %945 = vst.msk [vmem:[#allocation2 + $0xc0] sm:$0xf] %vm928_vm7, %v865_v50 }
 0x150   : > { %3002 = vrot.lane.b32.xlu1 %v2879_v19, %s6316_s17  ;;  %v2183_v3 = vrot.slane %v5515_v56, 5  ;;  %v2182_v0 = vrot.slane %v2180_v49, 4  ;;  %v5535_v2 = vrot.slane %v5513_v1, 9  ;;  %v1153_v6 = vrot.slane %v1001_v25, 5  ;;  %v5609_v13 = vld [vmem:[%s6437_s22 + $0xb4] sm:$0xf]  ;;  %v2234_v62 = vpop.permute.xlu1 %2233 }
 0x151   : > { %v6219_v59 = vld [vmem:[#allocation2 + $0x128] ss:$12 sps:$4 sm:$0xff]   ;;  %v773_v17 = vsel %vm6488_vm5, %v768_v27, %v7879_v52  ;;  %v1002_v58 = vld [vmem:[%s6437_s22 + $0xa4] sm:$0x1]  ;;  %v1000_v14 = vld [vmem:[%s6437_s22 + $0x9c] sm:$0xe] }
 0x152   : > { %v3382_v18 = vld [vmem:[#allocation2 + $0xb4] sm:$0xff]  ;;  %v2890_v10 = vshll.u32 %v5610_v34, 16  ;;  %6031 = vmatprep.mubr.msk.bf16.mxu1 %vm3807_vm10, %v6219_v59  ;;  %2312 = vst.msk [vmem:[#allocation2 + $0xd0] sm:$0xf] %vm928_vm7, %v2234_v62  ;;  %v2232_v22 = vpop.permute.xlu0 %2231  ;;  %v3380_v36 = vld [vmem:[#allocation2 + $0xa8] sm:$0xff]  ;;  %v2894_v30 = vshrl.u32 %v5610_v34, 16  ;;  %v2184_v33 = vsel %vm6448_vm3, %v2182_v0, %v2183_v3  ;;  %v2181_v41 = vsel %vm6448_vm3, %v5535_v2, %v2180_v49 }
 0x153   : > { %3000 = vrot.lane.b32.xlu0 %v2869_v12, %s6316_s17  ;;  %v6203_v24 = vld [vmem:[#allocation2 + $0xac] ss:$12 sps:$4 sm:$0xff]   ;;  %2311 = vst.msk [vmem:[#allocation2 + $0xc4] sm:$0xf] %vm928_vm7, %v2232_v22  ;;  %v5704_v47 = vcombine.low %v3380_v36, %v3382_v18  ;;  %v2881_v52 = vshrl.u32 %v5609_v13, 16  ;;  %v2884_v37 = vshll.u32 %v5609_v13, 16 }
 0x154   : > { %886 = vrot.lane.b32.xlu1 %v783_v32, %s6315_s25  ;;  %v6220_v21 = vld [vmem:[#allocation2 + $0x140] ss:$12 sps:$4 sm:$0xff]   ;;  %3944 = vmatprep.mubr.bf16.mxu0 %v6203_v24  ;;  %v1155_v31 = vrot.slane %v1153_v6, 4  ;;  %v1156_v16 = vrot.slane %v1002_v58, 5  ;;  %v5391_v28 = vrot.slane %v1000_v14, 9  ;;  %v1207_v42 = vpop.permute.xlu1 %1206  ;;  %v7984_v63 = vrot.slane %v2890_v10, 5 }
 0x155   : > { %v440_v61 = vld [vmem:[%s6437_s22 + $0xac] sm:$0xf]  ;;  %3945 = vmatmul.mubr.bf16.gmra.mxu0 %v5704_v47  ;;  %v439_v35 = vld [vmem:[%s6437_s22 + $0xa8] sm:$0xf]  ;;  %6032 = vmatmul.mubr.msk.bf16.gmra.mxu1 %vm3807_vm10, %v6220_v21  ;;  %1286 = vst.msk [vmem:[#allocation2 + $0xcc] sm:$0xf] %vm1268_vm8, %v1207_v42 }
 0x156   : > { %v1205_v20 = vpop.permute.xlu0 %1204  ;;  %v2896_v38 = vrot.slane %v2894_v30, 4  ;;  %v5611_v7 = vld [vmem:[%s6437_s22 + $0xbc] sm:$0x1]  ;;  %v2883_v40 = vrot.slane %v2881_v52, 4  ;;  %v2886_v26 = vrot.slane %v2884_v37, 5  ;;  %v794_v39 = vshll.u32 %v440_v61, 16 }
 0x157   : > { %884 = vrot.lane.b32.xlu0 %v773_v17, %s6315_s25  ;;  %1285 = vst.msk [vmem:[#allocation2 + $0xc0] sm:$0xf] %vm1268_vm8, %v1205_v20  ;;  %v798_v45 = vshrl.u32 %v440_v61, 16  ;;  %v1157_v9 = vsel %vm6448_vm3, %v1155_v31, %v1156_v16  ;;  %v1154_v29 = vsel %vm6448_vm3, %v5391_v28, %v1153_v6  ;;  %v785_v15 = vshrl.u32 %v439_v35, 16  ;;  %v5469_v53 = vld [vmem:[%s6437_s22 + $0xb8] sm:$0xf] }
 0x158   : > { %2253 = vrot.lane.b32.xlu1 %v2184_v33, %s6315_s25  ;;  %v788_v23 = vshll.u32 %v439_v35, 16  ;;  %v5468_v5 = vld [vmem:[%s6437_s22 + $0xb4] sm:$0xf]  ;;  %v2427_v48 = vpop.permute.xlu1 %2426  ;;  %v1889_v55 = vshll.u32 %v5469_v53, 16  ;;  %v1893_v57 = vshrl.u32 %v5469_v53, 16  ;;  %v2897_v19 = vor.u32 %v2896_v38, %v7984_v63 }
 0x159   : > { %v1880_v54 = vshrl.u32 %v5468_v5, 16  ;;  %v1883_v46 = vshll.u32 %v5468_v5, 16  ;;  %2505 = vst.msk [vmem:[#allocation2 + $0xd0] sm:$0xf] %vm1268_vm8, %v2427_v48  ;;  %v5565_v60 = vld [vmem:[%s6437_s22 + $0xb8] sm:$0xf]  ;;  %v2887_v1 = vor.u32 %v2886_v26, %v2883_v40 }
 0x15a   : > { %v2425_v4 = vpop.permute.xlu0 %2424  ;;  %v2900_v11 = vshll.u32 %v5611_v7, 16  ;;  %v5564_v44 = vld [vmem:[%s6437_s22 + $0xb4] sm:$0xf]  ;;  %v441_v56 = vld [vmem:[%s6437_s22 + $0xb0] sm:$0x1]  ;;  %v1891_v49 = vrot.slane %v1889_v55, 5 }
 0x15b   : > { %2251 = vrot.lane.b32.xlu0 %v2181_v41, %s6315_s25  ;;  %2504 = vst.msk [vmem:[#allocation2 + $0xc4] sm:$0xf] %vm1268_vm8, %v2425_v4  ;;  %v1895_v43 = vrot.slane %v1893_v57, 4  ;;  %v1882_v12 = vrot.slane %v1880_v54, 4  ;;  %v1885_v27 = vrot.slane %v1883_v46, 5  ;;  %v8004_v25 = vrot.slane %v794_v39, 5 }
 0x15c   : > { %1226 = vrot.lane.b32.xlu1 %v1157_v9, %s6314_s24  ;;  %v800_v50 = vrot.slane %v798_v45, 4  ;;  %v787_v34 = vrot.slane %v785_v15, 4  ;;  %v5470_v3 = vld [vmem:[%s6437_s22 + $0xbc] sm:$0x1]  ;;  %v1401_v59 = vpop.permute.xlu1 %1400  ;;  %v790_v32 = vrot.slane %v788_v23, 5  ;;  %v2902_v18 = vrot.slane %v2900_v11, 5 }
 0x15d   : > { %v361_v0 = vld [vmem:[%s6437_s22 + $0xac] sm:$0xf]  ;;  %v360_v2 = vld [vmem:[%s6437_s22 + $0xa8] sm:$0xf]  ;;  %v1896_v6 = vor.u32 %v1895_v43, %v1891_v49  ;;  %v1899_v13 = vshll.u32 %v5470_v3, 16  ;;  %v1886_v62 = vor.u32 %v1885_v27, %v1882_v12  ;;  %v2898_v58 = vrot.slane %v2897_v19, 4 }
 0x15e   : > { %1480 = vst.msk [vmem:[#allocation2 + $0xcc] sm:$0xf] %vm1462_vm9, %v1401_v59  ;;  %v1399_v17 = vpop.permute.xlu0 %1398  ;;  %v8015_v14 = vld [vmem:[%s6437_s22 + $0xb8] sm:$0xf]  ;;  %v5421_v24 = vld [vmem:[%s6437_s22 + $0xac] sm:$0xf]  ;;  %v801_v30 = vor.u32 %v800_v50, %v8004_v25  ;;  %v791_v33 = vor.u32 %v790_v32, %v787_v34 }
 0x15f   : > { %1224 = vrot.lane.b32.xlu0 %v1154_v29, %s6314_s24  ;;  %394 = vst.msk [vmem:[#allocation2 + $0x15c] sm:$0xf] %vm364_vm6, %v361_v0  ;;  %393 = vst.msk [vmem:[#allocation2 + $0x150] sm:$0xf] %vm364_vm6, %v360_v2  ;;  %v1897_v10 = vrot.slane %v1896_v6, 4  ;;  %v1901_v22 = vrot.slane %v1899_v13, 5  ;;  %v2903_v41 = vsel %vm6488_vm5, %v2898_v58, %v2902_v18 }
 0x160   : > { %1479 = vst.msk [vmem:[#allocation2 + $0xc0] sm:$0xf] %vm1462_vm9, %v1399_v17  ;;  %2446 = vrot.lane.b32.xlu1 %v5565_v60, %s6314_s24  ;;  %v1887_v36 = vrot.slane %v1886_v62, 4  ;;  %v804_v47 = vshll.u32 %v441_v56, 16  ;;  %v2987_v52 = vpop.permute.xlu1 %2986  ;;  %v5420_v37 = vld [vmem:[%s6437_s22 + $0xa8] sm:$0xf] }
 0x161   : > { %v2888_v21 = vrot.slane %v2887_v1, 4  ;;  %v5613_v31 = vld [vmem:[%s6437_s22 + $0xc4] sm:$0xf]  ;;  %v1902_v16 = vsel %vm6488_vm5, %v1897_v10, %v1901_v22  ;;  %3065 = vst.msk [vmem:[#allocation2 + $0xd0] sm:$0xf] %vm1462_vm9, %v2987_v52  ;;  %v2187_v42 = vrot.slane %v8015_v14, 5 }
 0x162   : > { %v1892_v28 = vsel %vm6488_vm5, %v1887_v36, %v1891_v49  ;;  %v2985_v61 = vpop.permute.xlu0 %2984  ;;  %1988 = vst.msk [vmem:[#allocation2 + $0x160] sm:$0xf] %vm364_vm6, %v1902_v16  ;;  %v5518_v35 = vld [vmem:[%s6437_s22 + $0xbc] sm:$0x1]  ;;  %v802_v20 = vrot.slane %v801_v30, 4  ;;  %v806_v38 = vrot.slane %v804_v47, 5 }
 0x163   : > { %2444 = vrot.lane.b32.xlu0 %v5564_v44, %s6314_s24  ;;  %1987 = vst.msk [vmem:[#allocation2 + $0x154] sm:$0xf] %vm364_vm6, %v1892_v28  ;;  %v1004_v7 = vld [vmem:[%s6437_s22 + $0xac] sm:$0xf]  ;;  %v2914_v40 = vshll.u32 %v5613_v31, 16  ;;  %v2918_v26 = vshrl.u32 %v5613_v31, 16  ;;  %v2893_v45 = vsel %vm6488_vm5, %v2888_v21, %v7984_v63 }
 0x164   : > { %3064 = vst.msk [vmem:[#allocation2 + $0xc4] sm:$0xf] %vm1462_vm9, %v2985_v61  ;;  %1420 = vrot.lane.b32.xlu1 %v5421_v24, %s6316_s17  ;;  %v871_v39 = vpop.permute.xlu1 %870  ;;  %v792_v9 = vrot.slane %v791_v33, 4  ;;  %v2189_v15 = vrot.slane %v2187_v42, 4  ;;  %v2190_v23 = vrot.slane %v5518_v35, 5  ;;  %v1160_v5 = vrot.slane %v1004_v7, 5 }
 0x165   : > { %948 = vst.msk [vmem:[#allocation2 + $0xe4] sm:$0xf] %vm928_vm7, %v871_v39  ;;  %v5516_v53 = vld [vmem:[%s6437_s22 + $0xb4] sm:$0xe]  ;;  %v1003_v48 = vld [vmem:[%s6437_s22 + $0xa8] sm:$0xe]  ;;  %v807_v63 = vsel %vm6488_vm5, %v802_v20, %v806_v38 }
 0x166   : > { %v869_v29 = vpop.permute.xlu0 %868  ;;  %v5614_v55 = vld [vmem:[%s6437_s22 + $0xc8] sm:$0x1]  ;;  %v8049_v57 = vrot.slane %v2914_v40, 5  ;;  %v2920_v54 = vrot.slane %v2918_v26, 4  ;;  %v5612_v46 = vld [vmem:[%s6437_s22 + $0xc0] sm:$0xf]  ;;  %v797_v60 = vsel %vm6488_vm5, %v792_v9, %v8004_v25  ;;  %v2191_v27 = vsel %vm6448_vm3, %v2189_v15, %v2190_v23 }
 0x167   : > { %1418 = vrot.lane.b32.xlu0 %v5420_v37, %s6316_s17  ;;  %947 = vst.msk [vmem:[#allocation2 + $0xd8] sm:$0xf] %vm928_vm7, %v869_v29  ;;  %v5536_v11 = vrot.slane %v5516_v53, 9  ;;  %v1005_v44 = vld [vmem:[%s6437_s22 + $0xb0] sm:$0x1]  ;;  %v5392_v1 = vrot.slane %v1003_v48, 9 }
 0x168   : > { %3006 = vrot.lane.b32.xlu1 %v2903_v41, %s6316_s17  ;;  %v2238_v4 = vpop.permute.xlu1 %2237  ;;  %v3386_v19 = vld [vmem:[#allocation2 + $0xcc] sm:$0xff]  ;;  %v443_v56 = vld [vmem:[%s6437_s22 + $0xb8] sm:$0xf]  ;;  %v2924_v25 = vshll.u32 %v5614_v55, 16  ;;  %v2905_v34 = vshrl.u32 %v5612_v46, 16  ;;  %v2908_v3 = vshll.u32 %v5612_v46, 16  ;;  %v2921_v2 = vor.u32 %v2920_v54, %v8049_v57 }
 0x169   : > { %2314 = vst.msk [vmem:[#allocation2 + $0xe8] sm:$0xf] %vm928_vm7, %v2238_v4  ;;  %v442_v59 = vld [vmem:[%s6437_s22 + $0xb4] sm:$0xf]  ;;  %v1162_v32 = vrot.slane %v1160_v5, 4  ;;  %v1163_v0 = vrot.slane %v1005_v44, 5  ;;  %v2188_v17 = vsel %vm6448_vm3, %v5536_v11, %v2187_v42  ;;  %v1161_v36 = vsel %vm6448_vm3, %v5392_v1, %v1160_v5 }
 0x16a   : > { %v2236_v49 = vpop.permute.xlu0 %2235  ;;  %v818_v6 = vshll.u32 %v443_v56, 16  ;;  %v5854_v62 = vpop.f32.mrf.mxu0  ;;  %v822_v58 = vshrl.u32 %v443_v56, 16  ;;  %v809_v14 = vshrl.u32 %v442_v59, 16  ;;  %v812_v10 = vshll.u32 %v442_v59, 16  ;;  %v5472_v31 = vld [vmem:[%s6437_s22 + $0xc4] sm:$0xf] }
 0x16b   : > { %3004 = vrot.lane.b32.xlu0 %v2893_v45, %s6316_s17  ;;  %v3384_v43 = vld [vmem:[#allocation2 + $0xc0] sm:$0xff]  ;;  %2313 = vst.msk [vmem:[#allocation2 + $0xdc] sm:$0xf] %vm928_vm7, %v2236_v49  ;;  %v8072_v24 = vrot.slane %v2924_v25, 5  ;;  %v8074_v30 = vrot.slane %v2905_v34, 4  ;;  %v8076_v47 = vrot.slane %v2908_v3, 5  ;;  %v1164_v37 = vsel %vm6448_vm3, %v1162_v32, %v1163_v0 }
 0x16c   : > { %v6205_v12 = vld [vmem:[#allocation2 + $0xc4] ss:$12 sps:$4 sm:$0xff]   ;;  %890 = vrot.lane.b32.xlu1 %v807_v63, %s6315_s25  ;;  %v5707_v50 = vcombine.low %v3384_v43, %v3386_v19  ;;  %v1211_v13 = vpop.permute.xlu1 %1210  ;;  %v5855_v22 = vpop.f32.mrf.mxu0  ;;  %v8083_v21 = vrot.slane %v2921_v2, 4  ;;  %v8085_v33 = vrot.slane %v818_v6, 5  ;;  %v5471_v16 = vld [vmem:[%s6437_s22 + $0xc0] sm:$0xf] }
 0x16d   : > { %3952 = vmatprep.mubr.bf16.mxu0 %v6205_v12  ;;  %1288 = vst.msk [vmem:[#allocation2 + $0xe4] sm:$0xf] %vm1268_vm8, %v1211_v13  ;;  %v8079_v52 = vadd.f32 %v5855_v22, %v5854_v62  ;;  %v8090_v42 = vld [vmem:[%s6437_s22 + $0xbc] sm:$0x1]  ;;  %v1913_v41 = vshll.u32 %v5472_v31, 16  ;;  %v1917_v35 = vshrl.u32 %v5472_v31, 16  ;;  %v2911_v4 = vor.u32 %v8076_v47, %v8074_v30 }
 0x16e   : > { %3953 = vmatmul.mubr.bf16.gmra.mxu0 %v5707_v50  ;;  %v1209_v18 = vpop.permute.xlu0 %1208  ;;  %v5857_v61 = vpop.f32.mrf.mxu0  ;;  %v1904_v20 = vshrl.u32 %v5471_v16, 16  ;;  %v1907_v38 = vshll.u32 %v5471_v16, 16  ;;  %v5661_v7 = vld [vmem:[%s6437_s22 + $0xc4] sm:$0xf]  ;;  %v8095_v39 = vrot.slane %v822_v58, 4  ;;  %v8097_v45 = vrot.slane %v809_v14, 4 }
 0x16f   : > { %888 = vrot.lane.b32.xlu0 %v797_v60, %s6315_s25  ;;  %1287 = vst.msk [vmem:[#allocation2 + $0xd8] sm:$0xf] %vm1268_vm8, %v1209_v18  ;;  %v5567_v26 = vld [vmem:[%s6437_s22 + $0xc4] sm:$0xf]  ;;  %v8099_v9 = vrot.slane %v812_v10, 5  ;;  %v3276_v29 = vrot.slane %v5661_v7, 5 }
 0x170   : > { %2257 = vrot.lane.b32.xlu1 %v2191_v27, %s6315_s25  ;;  %v2431_v28 = vpop.permute.xlu1 %2430  ;;  %v5664_v15 = vld [vmem:[%s6437_s22 + $0xd0] sm:$0xf]  ;;  %v5858_v23 = vpop.f32.mrf.mxu0  ;;  %v5566_v53 = vld [vmem:[%s6437_s22 + $0xc0] sm:$0xf]  ;;  %v1915_v5 = vrot.slane %v1913_v41, 5  ;;  %v1919_v48 = vrot.slane %v1917_v35, 4  ;;  %v825_v18 = vor.u32 %v8095_v39, %v8085_v33  ;;  %v2927_v41 = vsel %vm6488_vm5, %v8083_v21, %v8072_v24 }
 0x171   : > { %2507 = vst.msk [vmem:[#allocation2 + $0xe8] sm:$0xf] %vm1268_vm8, %v2431_v28  ;;  %v1906_v63 = vrot.slane %v1904_v20, 4  ;;  %v1909_v55 = vrot.slane %v1907_v38, 5  ;;  %v5660_v54 = vld [vmem:[%s6437_s22 + $0xc0] sm:$0xe]  ;;  %v8107_v46 = vadd.f32 %v5858_v23, %v5857_v61  ;;  %v815_v47 = vor.u32 %v8099_v9, %v8097_v45 }
 0x172   : > { %v2429_v40 = vpop.permute.xlu0 %2428  ;;  %v5473_v60 = vld [vmem:[%s6437_s22 + $0xc8] sm:$0x1]  ;;  %v5680_v11 = vrot.slane %v5660_v54, 9  ;;  %v3278_v44 = vrot.slane %v3276_v29, 4  ;;  %v363_v49 = vld [vmem:[%s6437_s22 + $0xb8] sm:$0xf]  ;;  %v1920_v12 = vor.u32 %v1919_v48, %v1915_v5 }
 0x173   : > { %2255 = vrot.lane.b32.xlu0 %v2188_v17, %s6315_s25  ;;  %2506 = vst.msk [vmem:[#allocation2 + $0xdc] sm:$0xf] %vm1268_vm8, %v2429_v40  ;;  %v5662_v19 = vld [vmem:[%s6437_s22 + $0xc8] sm:$0x1]  ;;  %v362_v43 = vld [vmem:[%s6437_s22 + $0xb4] sm:$0xf]  ;;  %v1910_v1 = vor.u32 %v1909_v55, %v1906_v63 }
 0x174   : > { %1230 = vrot.lane.b32.xlu1 %v1164_v37, %s6314_s24  ;;  %v1405_v56 = vpop.permute.xlu1 %1404  ;;  %v1923_v27 = vshll.u32 %v5473_v60, 16  ;;  %v3279_v50 = vrot.slane %v5662_v19, 5  ;;  %v828_v34 = vshll.u32 %v8090_v42, 16  ;;  %396 = vst.msk [vmem:[#allocation2 + $0x174] sm:$0xf] %vm364_vm6, %v363_v49  ;;  %v3277_v3 = vsel %vm6448_vm3, %v5680_v11, %v3276_v29 }
 0x175   : > { %1482 = vst.msk [vmem:[#allocation2 + $0xe4] sm:$0xf] %vm1462_vm9, %v1405_v56  ;;  %v5663_v59 = vld [vmem:[%s6437_s22 + $0xcc] sm:$0xe]  ;;  %v5665_v32 = vld [vmem:[%s6437_s22 + $0xd4] sm:$0x1] }
 0x176   : > { %v1403_v25 = vpop.permute.xlu0 %1402  ;;  %395 = vst.msk [vmem:[#allocation2 + $0x168] sm:$0xf] %vm364_vm6, %v362_v43  ;;  %v3283_v0 = vrot.slane %v5664_v15, 5  ;;  %v1921_v2 = vrot.slane %v1920_v12, 4  ;;  %v1925_v6 = vrot.slane %v1923_v27, 5  ;;  %v1911_v13 = vrot.slane %v1910_v1, 4 }
 0x177   : > { %1228 = vrot.lane.b32.xlu0 %v1161_v36, %s6314_s24  ;;  %1481 = vst.msk [vmem:[#allocation2 + $0xd8] sm:$0xf] %vm1462_vm9, %v1403_v25  ;;  %v3280_v62 = vsel %vm6448_vm3, %v3278_v44, %v3279_v50  ;;  %v5423_v17 = vld [vmem:[%s6437_s22 + $0xb8] sm:$0xf]  ;;  %v5681_v58 = vrot.slane %v5663_v59, 9  ;;  %v3286_v10 = vrot.slane %v5665_v32, 5 }
 0x178   : > { %2450 = vrot.lane.b32.xlu1 %v5567_v26, %s6314_s24  ;;  %3348 = vst.msk [vmem:[#allocation2 + $0x158] sm:$0xf] %vm364_vm6, %v3277_v3  ;;  %3349 = vst.msk [vmem:[#allocation2 + $0x164] sm:$0xf] %vm364_vm6, %v3280_v62  ;;  %v3285_v14 = vrot.slane %v3283_v0, 4  ;;  %v2991_v22 = vpop.permute.xlu1 %2990  ;;  %v2912_v30 = vrot.slane %v2911_v4, 4  ;;  %v1926_v31 = vsel %vm6488_vm5, %v1921_v2, %v1925_v6  ;;  %v1916_v16 = vsel %vm6488_vm5, %v1911_v13, %v1915_v5 }
 0x179   : > { %v5422_v36 = vld [vmem:[%s6437_s22 + $0xb4] sm:$0xf]  ;;  %v8137_v37 = vld [vmem:[%s6437_s22 + $0xc4] sm:$0xf]  ;;  %3067 = vst.msk [vmem:[#allocation2 + $0xe8] sm:$0xf] %vm1462_vm9, %v2991_v22  ;;  %v3284_v61 = vsel %vm6448_vm3, %v5681_v58, %v3283_v0 }
 0x17a   : > { %v2989_v28 = vpop.permute.xlu0 %2988  ;;  %1990 = vst.msk [vmem:[#allocation2 + $0x178] sm:$0xf] %vm364_vm6, %v1926_v31  ;;  %1989 = vst.msk [vmem:[#allocation2 + $0x16c] sm:$0xf] %vm364_vm6, %v1916_v16  ;;  %v3287_v42 = vsel %vm6448_vm3, %v3285_v14, %v3286_v10  ;;  %v826_v35 = vrot.slane %v825_v18, 4  ;;  %v830_v20 = vrot.slane %v828_v34, 5  ;;  %v2917_v26 = vsel %vm6488_vm5, %v2912_v30, %v8049_v57 }
 0x17b   : > { %2448 = vrot.lane.b32.xlu0 %v5566_v53, %s6314_s24  ;;  %3066 = vst.msk [vmem:[#allocation2 + $0xdc] sm:$0xf] %vm1462_vm9, %v2989_v28  ;;  %v5521_v38 = vld [vmem:[%s6437_s22 + $0xc8] sm:$0x1]  ;;  %v2194_v7 = vrot.slane %v8137_v37, 5  ;;  %v816_v39 = vrot.slane %v815_v47, 4 }
 0x17c   : > { %1424 = vrot.lane.b32.xlu1 %v5423_v17, %s6316_s17  ;;  %3350 = vst.msk [vmem:[#allocation2 + $0x170] sm:$0xf] %vm364_vm6, %v3284_v61  ;;  %3351 = vst.msk [vmem:[#allocation2 + $0x17c] sm:$0xf] %vm364_vm6, %v3287_v42  ;;  %v875_v40 = vpop.permute.xlu1 %874  ;;  %v1007_v45 = vld [vmem:[%s6437_s22 + $0xb8] sm:$0xf]  ;;  %v831_v15 = vsel %vm6488_vm5, %v826_v35, %v830_v20 }
 0x17d   : > { %950 = vst.msk [vmem:[#allocation2 + $0xfc] sm:$0xf] %vm928_vm7, %v875_v40  ;;  %v5519_v29 = vld [vmem:[%s6437_s22 + $0xc0] sm:$0xe]  ;;  %v2197_v24 = vrot.slane %v5521_v38, 5  ;;  %v2196_v57 = vrot.slane %v2194_v7, 4  ;;  %v821_v63 = vsel %vm6488_vm5, %v816_v39, %v8085_v33 }
 0x17e   : > { %v873_v9 = vpop.permute.xlu0 %872  ;;  %v1008_v23 = vld [vmem:[%s6437_s22 + $0xbc] sm:$0x1]  ;;  %v1167_v53 = vrot.slane %v1007_v45, 5  ;;  %v1006_v5 = vld [vmem:[%s6437_s22 + $0xb4] sm:$0xe]  ;;  %v5537_v54 = vrot.slane %v5519_v29, 9 }
 0x17f   : > { %1422 = vrot.lane.b32.xlu0 %v5422_v36, %s6316_s17  ;;  %949 = vst.msk [vmem:[#allocation2 + $0xf0] sm:$0xf] %vm928_vm7, %v873_v9  ;;  %v6225_v21 = vld [vmem:[#allocation2 + $0x158] ss:$12 sps:$4 sm:$0xff]   ;;  %v5616_v4 = vld [vmem:[%s6437_s22 + $0xd0] sm:$0xf]  ;;  %v2198_v33 = vsel %vm6448_vm3, %v2196_v57, %v2197_v24 }
 0x180   : > { %3010 = vrot.lane.b32.xlu1 %v2927_v41, %s6316_s17  ;;  %v2242_v48 = vpop.permute.xlu1 %2241  ;;  %v3390_v55 = vld [vmem:[#allocation2 + $0xe4] sm:$0xff]  ;;  %v5615_v60 = vld [vmem:[%s6437_s22 + $0xcc] sm:$0xf]  ;;  %6035 = vmatprep.mubr.msk.bf16.mxu1 %vm3807_vm10, %v6225_v21  ;;  %v1170_v49 = vrot.slane %v1008_v23, 5  ;;  %v1169_v12 = vrot.slane %v1167_v53, 4  ;;  %v2938_v27 = vshll.u32 %v5616_v4, 16  ;;  %v2195_v34 = vsel %vm6448_vm3, %v5537_v54, %v2194_v7 }
 0x181   : > { %2316 = vst.msk [vmem:[#allocation2 + $0x100] sm:$0xf] %vm928_vm7, %v2242_v48  ;;  %v2942_v1 = vshrl.u32 %v5616_v4, 16  ;;  %v5393_v3 = vrot.slane %v1006_v5, 9  ;;  %v2929_v59 = vshrl.u32 %v5615_v60, 16  ;;  %v2932_v32 = vshll.u32 %v5615_v60, 16 }
 0x182   : > { %v2240_v19 = vpop.permute.xlu0 %2239  ;;  %v3388_v11 = vld [vmem:[#allocation2 + $0xd8] sm:$0xff]  ;;  %v1171_v13 = vsel %vm6448_vm3, %v1169_v12, %v1170_v49  ;;  %v5617_v62 = vld [vmem:[%s6437_s22 + $0xd4] sm:$0x1]  ;;  %v8198_v17 = vrot.slane %v2938_v27, 5  ;;  %v5569_v16 = vld [vmem:[%s6437_s22 + $0xd0] sm:$0xf] }
 0x183   : > { %3008 = vrot.lane.b32.xlu0 %v2917_v26, %s6316_s17  ;;  %v6209_v44 = vld [vmem:[#allocation2 + $0xdc] ss:$12 sps:$4 sm:$0xff]   ;;  %2315 = vst.msk [vmem:[#allocation2 + $0xf4] sm:$0xf] %vm928_vm7, %v2240_v19  ;;  %v5710_v56 = vcombine.low %v3388_v11, %v3390_v55  ;;  %v5860_v25 = vpop.f32.mrf.mxu0  ;;  %v2944_v18 = vrot.slane %v2942_v1, 4  ;;  %v1168_v10 = vsel %vm6448_vm3, %v5393_v3, %v1167_v53  ;;  %v2931_v22 = vrot.slane %v2929_v59, 4 }
 0x184   : > { %894 = vrot.lane.b32.xlu1 %v831_v15, %s6315_s25  ;;  %v6226_v43 = vld [vmem:[#allocation2 + $0x170] ss:$12 sps:$4 sm:$0xff]   ;;  %3960 = vmatprep.mubr.bf16.mxu0 %v6209_v44  ;;  %v1215_v50 = vpop.permute.xlu1 %1214  ;;  %v2934_v36 = vrot.slane %v2932_v32, 5  ;;  %v2948_v37 = vshll.u32 %v5617_v62, 16  ;;  %v5568_v42 = vld [vmem:[%s6437_s22 + $0xcc] sm:$0xf] }
 0x185   : > { %3961 = vmatmul.mubr.bf16.gmra.mxu0 %v5710_v56  ;;  %6036 = vmatmul.mubr.msk.bf16.gmra.mxu1 %vm3807_vm10, %v6226_v43  ;;  %1290 = vst.msk [vmem:[#allocation2 + $0xfc] sm:$0xf] %vm1268_vm8, %v1215_v50  ;;  %v5861_v2 = vpop.f32.mrf.mxu0  ;;  %v2945_v28 = vor.u32 %v2944_v18, %v8198_v17  ;;  %v5619_v35 = vld [vmem:[%s6437_s22 + $0x1c] sm:$0xf]  ;;  %v5425_v38 = vld [vmem:[%s6437_s22 + $0xc4] sm:$0xf] }
 0x186   : > { %v1213_v0 = vpop.permute.xlu0 %1212  ;;  %v8193_v6 = vadd.f32 %v5861_v2, %v5860_v25  ;;  %v2935_v41 = vor.u32 %v2934_v36, %v2931_v22  ;;  %v3178_v7 = vrot.slane %v5619_v35, 5  ;;  %v5622_v40 = vld [vmem:[%s6437_s22 + $0x28] sm:$0xf]  ;;  %v5424_v26 = vld [vmem:[%s6437_s22 + $0xc0] sm:$0xf]  ;;  %v2950_v39 = vrot.slane %v2948_v37, 5 }
 0x187   : > { %892 = vrot.lane.b32.xlu0 %v821_v63, %s6315_s25  ;;  %1289 = vst.msk [vmem:[#allocation2 + $0xf0] sm:$0xf] %vm1268_vm8, %v1213_v0  ;;  %v5863_v14 = vpop.f32.mrf.mxu0  ;;  %v5618_v45 = vld [vmem:[%s6437_s22 + $0x18] sm:$0xe]  ;;  %v5620_v9 = vld [vmem:[%s6437_s22 + $0x20] sm:$0x1] }
 0x188   : > { %2261 = vrot.lane.b32.xlu1 %v2198_v33, %s6315_s25  ;;  %v2435_v58 = vpop.permute.xlu1 %2434  ;;  %v3185_v29 = vrot.slane %v5622_v40, 5  ;;  %v2946_v24 = vrot.slane %v2945_v28, 4  ;;  %v5666_v21 = vrot.slane %v5618_v45, 9  ;;  %v3180_v15 = vrot.slane %v3178_v7, 4  ;;  %v5621_v23 = vld [vmem:[%s6437_s22 + $0x24] sm:$0xe] }
 0x189   : > { %2509 = vst.msk [vmem:[#allocation2 + $0x100] sm:$0xf] %vm1268_vm8, %v2435_v58  ;;  %v5864_v47 = vpop.f32.mrf.mxu0  ;;  %v3181_v57 = vrot.slane %v5620_v9, 5  ;;  %v2936_v5 = vrot.slane %v2935_v41, 4  ;;  %v5623_v48 = vld [vmem:[%s6437_s22 + $0x2c] sm:$0x1] }
 0x18a   : > { %v2433_v30 = vpop.permute.xlu0 %2432  ;;  %v8206_v31 = vadd.f32 %v5864_v47, %v5863_v14  ;;  %v5667_v63 = vrot.slane %v5621_v23, 9  ;;  %v3187_v55 = vrot.slane %v3185_v29, 4  ;;  %v3179_v4 = vsel %vm6448_vm3, %v5666_v21, %v3178_v7 }
 0x18b   : > { %2259 = vrot.lane.b32.xlu0 %v2195_v34, %s6315_s25  ;;  %2508 = vst.msk [vmem:[#allocation2 + $0xf4] sm:$0xf] %vm1268_vm8, %v2433_v30  ;;  %v3182_v60 = vsel %vm6448_vm3, %v3180_v15, %v3181_v57  ;;  %v3188_v19 = vrot.slane %v5623_v48, 5  ;;  %v2951_v44 = vsel %vm6488_vm5, %v2946_v24, %v2950_v39  ;;  %v2941_v43 = vsel %vm6488_vm5, %v2936_v5, %v8198_v17  ;;  %s5837_s25 = sshll.u32 %s6393_s13, 10  ;;  %s6319_s13 = smov [#allocation3]  }
 0x18c   : > { %1234 = vrot.lane.b32.xlu1 %v1171_v13, %s6314_s24  ;;  %v1409_v61 = vpop.permute.xlu1 %1408  ;;  %3320 = vst.msk [vmem:[#allocation2 + $0x8] sm:$0xf] %vm364_vm6, %v3179_v4  ;;  %3321 = vst.msk [vmem:[#allocation2 + $0x14] sm:$0xf] %vm364_vm6, %v3182_v60  ;;  %v3186_v11 = vsel %vm6448_vm3, %v5667_v63, %v3185_v29  ;;  %s9014_s29 = scalar_lea.hbm %s9065_s9, %s5837_s25  ;;  %s6256_s21 = sshll.u32 %s6319_s13, 4  ;;  %s6257_s21 = int_to_ptr.vmem [resolvable:$false] %s6256_s21 }
 0x18d   : > { %1484 = vst.msk [vmem:[#allocation2 + $0xfc] sm:$0xf] %vm1462_vm9, %v1409_v61  ;;  %v3189_v56 = vsel %vm6448_vm3, %v3187_v55, %v3188_v19  ;;  %s6258_s23 = scalar_lea.vmem %s6257_s21, 2048 }
 0x18e   : > { %v1407_v20 = vpop.permute.xlu0 %1406  ;;  %3322 = vst.msk [vmem:[#allocation2 + $0x20] sm:$0xf] %vm364_vm6, %v3186_v11  ;;  %3323 = vst.msk [vmem:[#allocation2 + $0x2c] sm:$0xf] %vm364_vm6, %v3189_v56 }
 0x18f   : > { %1232 = vrot.lane.b32.xlu0 %v1168_v10, %s6314_s24  ;;  %1483 = vst.msk [vmem:[#allocation2 + $0xf0] sm:$0xf] %vm1462_vm9, %v1407_v20 }
 0x190   : > { %2454 = vrot.lane.b32.xlu1 %v5569_v16, %s6314_s24  ;;  %v2995_v53 = vpop.permute.xlu1 %2994 }
 0x191   : > { %3069 = vst.msk [vmem:[#allocation2 + $0x100] sm:$0xf] %vm1462_vm9, %v2995_v53 }
 0x192   : > { %v2993_v54 = vpop.permute.xlu0 %2992 }
 0x193   : > { %2452 = vrot.lane.b32.xlu0 %v5568_v42, %s6314_s24  ;;  %3068 = vst.msk [vmem:[#allocation2 + $0xf4] sm:$0xf] %vm1462_vm9, %v2993_v54 }
 0x194   : > { %1428 = vrot.lane.b32.xlu1 %v5425_v38, %s6316_s17  ;;  %v879_v49 = vpop.permute.xlu1 %878 }
 0x195   : > { %952 = vst.msk [vmem:[#allocation2 + $0x114] sm:$0xf] %vm928_vm7, %v879_v49 }
 0x196   : > { %v877_v33 = vpop.permute.xlu0 %876 }
 0x197   : > { %1426 = vrot.lane.b32.xlu0 %v5424_v26, %s6316_s17  ;;  %951 = vst.msk [vmem:[#allocation2 + $0x108] sm:$0xf] %vm928_vm7, %v877_v33 }
 0x198   : > { %3014 = vrot.lane.b32.xlu1 %v2951_v44, %s6316_s17  ;;  %v2246_v8 = vpop.permute.xlu1 %2245  ;;  %v3394_v12 = vld [vmem:[#allocation2 + $0xfc] sm:$0xff] }
 0x199   : > { %2318 = vst.msk [vmem:[#allocation2 + $0x118] sm:$0xf] %vm928_vm7, %v2246_v8 }
 0x19a   : > { %v2244_v27 = vpop.permute.xlu0 %2243  ;;  %v3392_v1 = vld [vmem:[#allocation2 + $0xf0] sm:$0xff] }
 0x19b   : > { %3012 = vrot.lane.b32.xlu0 %v2941_v43, %s6316_s17  ;;  %v6211_v50 = vld [vmem:[#allocation2 + $0xf4] ss:$12 sps:$4 sm:$0xff]   ;;  %2317 = vst.msk [vmem:[#allocation2 + $0x10c] sm:$0xf] %vm928_vm7, %v2244_v27  ;;  %v5713_v25 = vcombine.low %v3392_v1, %v3394_v12  ;;  %v5866_v3 = vpop.f32.mrf.mxu0 }
 0x19c   : > { %3968 = vmatprep.mubr.bf16.mxu0 %v6211_v50  ;;  %v1219_v34 = vpop.permute.xlu1 %1218 }
 0x19d   : > { %3969 = vmatmul.mubr.bf16.gmra.mxu0 %v5713_v25  ;;  %1292 = vst.msk [vmem:[#allocation2 + $0x114] sm:$0xf] %vm1268_vm8, %v1219_v34  ;;  %v5867_v32 = vpop.f32.mrf.mxu0 }
 0x19e   : > { %v1217_v59 = vpop.permute.xlu0 %1216  ;;  %v8252_v0 = vadd.f32 %v5867_v32, %v5866_v3 }
 0x19f   : > { %1291 = vst.msk [vmem:[#allocation2 + $0x108] sm:$0xf] %vm1268_vm8, %v1217_v59  ;;  %v5869_v13 = vpop.f32.mrf.mxu0 }
 0x1a0   : > { %v2439_v2 = vpop.permute.xlu1 %2438 }
 0x1a1   : > { %2511 = vst.msk [vmem:[#allocation2 + $0x118] sm:$0xf] %vm1268_vm8, %v2439_v2  ;;  %v5870_v17 = vpop.f32.mrf.mxu0 }
 0x1a2   : > { %v2437_v62 = vpop.permute.xlu0 %2436  ;;  %v8256_v18 = vadd.f32 %v5870_v17, %v5869_v13 }
 0x1a3   : > { %2510 = vst.msk [vmem:[#allocation2 + $0x10c] sm:$0xf] %vm1268_vm8, %v2437_v62 }
 0x1a6   : > { %v1413_v58 = vpop.permute.xlu1 %1412 }
 0x1a7   : > { %1486 = vst.msk [vmem:[#allocation2 + $0x114] sm:$0xf] %vm1462_vm9, %v1413_v58 }
 0x1a9   : > { %v1411_v14 = vpop.permute.xlu0 %1410 }
 0x1aa   : > { %1485 = vst.msk [vmem:[#allocation2 + $0x108] sm:$0xf] %vm1462_vm9, %v1411_v14  ;;  %v2999_v10 = vpop.permute.xlu1 %2998 }
 0x1ab   : > { %3071 = vst.msk [vmem:[#allocation2 + $0x118] sm:$0xf] %vm1462_vm9, %v2999_v10 }
 0x1ad   : > { %v2997_v22 = vpop.permute.xlu0 %2996 }
 0x1ae   : > { %3070 = vst.msk [vmem:[#allocation2 + $0x10c] sm:$0xf] %vm1462_vm9, %v2997_v22  ;;  %v883_v36 = vpop.permute.xlu1 %882 }
 0x1af   : > { %954 = vst.msk [vmem:[#allocation2 + $0x12c] sm:$0xf] %vm928_vm7, %v883_v36 }
 0x1b1   : > { %v881_v30 = vpop.permute.xlu0 %880 }
 0x1b2   : > { %953 = vst.msk [vmem:[#allocation2 + $0x120] sm:$0xf] %vm928_vm7, %v881_v30  ;;  %v2250_v47 = vpop.permute.xlu1 %2249  ;;  %v3398_v37 = vld [vmem:[#allocation2 + $0x114] sm:$0xff] }
 0x1b3   : > { %2320 = vst.msk [vmem:[#allocation2 + $0x130] sm:$0xf] %vm928_vm7, %v2250_v47  ;;  %v5872_v35 = vpop.f32.mrf.mxu0 }
 0x1b5   : > { %v2248_v16 = vpop.permute.xlu0 %2247  ;;  %v3396_v28 = vld [vmem:[#allocation2 + $0x108] sm:$0xff]  ;;  %v5873_v38 = vpop.f32.mrf.mxu0 }
 0x1b6   : > { %v6215_v61 = vld [vmem:[#allocation2 + $0x10c] ss:$12 sps:$4 sm:$0xff]   ;;  %2319 = vst.msk [vmem:[#allocation2 + $0x124] sm:$0xf] %vm928_vm7, %v2248_v16  ;;  %v5716_v42 = vcombine.low %v3396_v28, %v3398_v37  ;;  %v1223_v41 = vpop.permute.xlu1 %1222  ;;  %v8268_v7 = vadd.f32 %v5873_v38, %v5872_v35 }
 0x1b7   : > { %3976 = vmatprep.mubr.bf16.mxu0 %v6215_v61  ;;  %1294 = vst.msk [vmem:[#allocation2 + $0x12c] sm:$0xf] %vm1268_vm8, %v1223_v41  ;;  %v5875_v26 = vpop.f32.mrf.mxu0 }
 0x1b8   : > { %3977 = vmatmul.mubr.bf16.gmra.mxu0 %v5716_v42 }
 0x1b9   : > { %v1221_v20 = vpop.permute.xlu0 %1220  ;;  %v5876_v45 = vpop.f32.mrf.mxu0 }
 0x1ba   : > { %1293 = vst.msk [vmem:[#allocation2 + $0x120] sm:$0xf] %vm1268_vm8, %v1221_v20  ;;  %v2443_v40 = vpop.permute.xlu1 %2442  ;;  %v8272_v9 = vadd.f32 %v5876_v45, %v5875_v26 }
 0x1bb   : > { %2513 = vst.msk [vmem:[#allocation2 + $0x130] sm:$0xf] %vm1268_vm8, %v2443_v40 }
 0x1bd   : > { %v2441_v39 = vpop.permute.xlu0 %2440 }
 0x1be   : > { %2512 = vst.msk [vmem:[#allocation2 + $0x124] sm:$0xf] %vm1268_vm8, %v2441_v39  ;;  %v1417_v29 = vpop.permute.xlu1 %1416 }
 0x1bf   : > { %1488 = vst.msk [vmem:[#allocation2 + $0x12c] sm:$0xf] %vm1462_vm9, %v1417_v29 }
 0x1c1   : > { %v1415_v24 = vpop.permute.xlu0 %1414 }
 0x1c2   : > { %1487 = vst.msk [vmem:[#allocation2 + $0x120] sm:$0xf] %vm1462_vm9, %v1415_v24  ;;  %v3003_v21 = vpop.permute.xlu1 %3002 }
 0x1c3   : > { %3073 = vst.msk [vmem:[#allocation2 + $0x130] sm:$0xf] %vm1462_vm9, %v3003_v21 }
 0x1c5   : > { %v3001_v15 = vpop.permute.xlu0 %3000 }
 0x1c6   : > { %3072 = vst.msk [vmem:[#allocation2 + $0x124] sm:$0xf] %vm1462_vm9, %v3001_v15  ;;  %v887_v57 = vpop.permute.xlu1 %886 }
 0x1c7   : > { %956 = vst.msk [vmem:[#allocation2 + $0x144] sm:$0xf] %vm928_vm7, %v887_v57 }
 0x1c9   : > { %v885_v23 = vpop.permute.xlu0 %884 }
 0x1ca   : > { %955 = vst.msk [vmem:[#allocation2 + $0x138] sm:$0xf] %vm928_vm7, %v885_v23  ;;  %v2254_v53 = vpop.permute.xlu1 %2253  ;;  %v3402_v5 = vld [vmem:[#allocation2 + $0x12c] sm:$0xff] }
 0x1cb   : > { %2322 = vst.msk [vmem:[#allocation2 + $0x148] sm:$0xf] %vm928_vm7, %v2254_v53  ;;  %v5878_v60 = vpop.f32.mrf.mxu0 }
 0x1cd   : > { %v2252_v48 = vpop.permute.xlu0 %2251  ;;  %v3400_v63 = vld [vmem:[#allocation2 + $0x120] sm:$0xff]  ;;  %v5879_v11 = vpop.f32.mrf.mxu0 }
 0x1ce   : > { %v6217_v55 = vld [vmem:[#allocation2 + $0x124] ss:$12 sps:$4 sm:$0xff]   ;;  %2321 = vst.msk [vmem:[#allocation2 + $0x13c] sm:$0xf] %vm928_vm7, %v2252_v48  ;;  %v5719_v54 = vcombine.low %v3400_v63, %v3402_v5  ;;  %v1227_v4 = vpop.permute.xlu1 %1226  ;;  %v8284_v44 = vadd.f32 %v5879_v11, %v5878_v60  ;;  %v6230_v11 = vld [vmem:[#allocation2 + $0x8] ss:$12 sps:$4 sm:$0xff]  }
 0x1cf   : > { %3984 = vmatprep.mubr.bf16.mxu0 %v6217_v55  ;;  %1296 = vst.msk [vmem:[#allocation2 + $0x144] sm:$0xf] %vm1268_vm8, %v1227_v4  ;;  %v5881_v49 = vpop.f32.mrf.mxu0 }
 0x1d0   : > { %3985 = vmatmul.mubr.bf16.gmra.mxu0 %v5719_v54 }
 0x1d1   : > { %v1225_v19 = vpop.permute.xlu0 %1224  ;;  %v5882_v33 = vpop.f32.mrf.mxu0 }
 0x1d2   : > { %1295 = vst.msk [vmem:[#allocation2 + $0x138] sm:$0xf] %vm1268_vm8, %v1225_v19  ;;  %v2447_v56 = vpop.permute.xlu1 %2446  ;;  %v8288_v8 = vadd.f32 %v5882_v33, %v5881_v49 }
 0x1d3   : > { %2515 = vst.msk [vmem:[#allocation2 + $0x148] sm:$0xf] %vm1268_vm8, %v2447_v56 }
 0x1d5   : > { %v2445_v43 = vpop.permute.xlu0 %2444 }
 0x1d6   : > { %2514 = vst.msk [vmem:[#allocation2 + $0x13c] sm:$0xf] %vm1268_vm8, %v2445_v43  ;;  %v1421_v12 = vpop.permute.xlu1 %1420 }
 0x1d7   : > { %1490 = vst.msk [vmem:[#allocation2 + $0x144] sm:$0xf] %vm1462_vm9, %v1421_v12 }
 0x1d9   : > { %v1419_v27 = vpop.permute.xlu0 %1418 }
 0x1da   : > { %1489 = vst.msk [vmem:[#allocation2 + $0x138] sm:$0xf] %vm1462_vm9, %v1419_v27  ;;  %v3007_v1 = vpop.permute.xlu1 %3006 }
 0x1db   : > { %3075 = vst.msk [vmem:[#allocation2 + $0x148] sm:$0xf] %vm1462_vm9, %v3007_v1  ;;  %v6231_v1 = vld [vmem:[#allocation2 + $0x20] ss:$12 sps:$4 sm:$0xff]  }
 0x1dd   : > { %v3005_v50 = vpop.permute.xlu0 %3004 }
 0x1de   : > { %3074 = vst.msk [vmem:[#allocation2 + $0x13c] sm:$0xf] %vm1462_vm9, %v3005_v50  ;;  %v891_v25 = vpop.permute.xlu1 %890 }
 0x1df   : > { %958 = vst.msk [vmem:[#allocation2 + $0x15c] sm:$0xf] %vm928_vm7, %v891_v25 }
 0x1e1   : > { %v889_v34 = vpop.permute.xlu0 %888 }
 0x1e2   : > { %957 = vst.msk [vmem:[#allocation2 + $0x150] sm:$0xf] %vm928_vm7, %v889_v34  ;;  %v2258_v3 = vpop.permute.xlu1 %2257  ;;  %v3406_v59 = vld [vmem:[#allocation2 + $0x144] sm:$0xff] }
 0x1e3   : > { %2324 = vst.msk [vmem:[#allocation2 + $0x160] sm:$0xf] %vm928_vm7, %v2258_v3 }
 0x1e5   : > { %v2256_v32 = vpop.permute.xlu0 %2255  ;;  %v3404_v2 = vld [vmem:[#allocation2 + $0x138] sm:$0xff] }
 0x1e6   : > { %v6221_v13 = vld [vmem:[#allocation2 + $0x13c] ss:$12 sps:$4 sm:$0xff]   ;;  %2323 = vst.msk [vmem:[#allocation2 + $0x154] sm:$0xf] %vm928_vm7, %v2256_v32  ;;  %v5722_v62 = vcombine.low %v3404_v2, %v3406_v59  ;;  %v1231_v17 = vpop.permute.xlu1 %1230  ;;  %v5884_v58 = vpop.f32.mrf.mxu0 }
 0x1e7   : > { %3992 = vmatprep.mubr.bf16.mxu0 %v6221_v13  ;;  %1298 = vst.msk [vmem:[#allocation2 + $0x15c] sm:$0xf] %vm1268_vm8, %v1231_v17 }
 0x1e8   : > { %3993 = vmatmul.mubr.bf16.gmra.mxu0 %v5722_v62  ;;  %v5885_v10 = vpop.f32.mrf.mxu0 }
 0x1e9   : > { %v1229_v14 = vpop.permute.xlu0 %1228  ;;  %v8300_v22 = vadd.f32 %v5885_v10, %v5884_v58 }
 0x1ea   : > { %1297 = vst.msk [vmem:[#allocation2 + $0x150] sm:$0xf] %vm1268_vm8, %v1229_v14  ;;  %v2451_v36 = vpop.permute.xlu1 %2450  ;;  %v5887_v30 = vpop.f32.mrf.mxu0 }
 0x1eb   : > { %2517 = vst.msk [vmem:[#allocation2 + $0x160] sm:$0xf] %vm1268_vm8, %v2451_v36 }
 0x1ec   : > { %v5888_v37 = vpop.f32.mrf.mxu0 }
 0x1ed   : > { %v2449_v47 = vpop.permute.xlu0 %2448  ;;  %v8304_v16 = vadd.f32 %v5888_v37, %v5887_v30 }
 0x1ee   : > { %2516 = vst.msk [vmem:[#allocation2 + $0x154] sm:$0xf] %vm1268_vm8, %v2449_v47  ;;  %v1425_v28 = vpop.permute.xlu1 %1424 }
 0x1ef   : > { %1492 = vst.msk [vmem:[#allocation2 + $0x15c] sm:$0xf] %vm1462_vm9, %v1425_v28 }
 0x1f1   : > { %v1423_v61 = vpop.permute.xlu0 %1422 }
 0x1f2   : > { %1491 = vst.msk [vmem:[#allocation2 + $0x150] sm:$0xf] %vm1462_vm9, %v1423_v61  ;;  %v3011_v42 = vpop.permute.xlu1 %3010 }
 0x1f3   : > { %3077 = vst.msk [vmem:[#allocation2 + $0x160] sm:$0xf] %vm1462_vm9, %v3011_v42 }
 0x1f5   : > { %v3009_v41 = vpop.permute.xlu0 %3008 }
 0x1f6   : > { %3076 = vst.msk [vmem:[#allocation2 + $0x154] sm:$0xf] %vm1462_vm9, %v3009_v41  ;;  %v895_v35 = vpop.permute.xlu1 %894 }
 0x1f7   : > { %960 = vst.msk [vmem:[#allocation2 + $0x174] sm:$0xf] %vm928_vm7, %v895_v35 }
 0x1f9   : > { %v893_v20 = vpop.permute.xlu0 %892 }
 0x1fa   : > { %959 = vst.msk [vmem:[#allocation2 + $0x168] sm:$0xf] %vm928_vm7, %v893_v20  ;;  %v2262_v38 = vpop.permute.xlu1 %2261  ;;  %v3410_v40 = vld [vmem:[#allocation2 + $0x15c] sm:$0xff] }
 0x1fb   : > { %2326 = vst.msk [vmem:[#allocation2 + $0x178] sm:$0xf] %vm928_vm7, %v2262_v38 }
 0x1fd   : > { %v2260_v26 = vpop.permute.xlu0 %2259  ;;  %v3408_v39 = vld [vmem:[#allocation2 + $0x150] sm:$0xff] }
 0x1fe   : > { %v6223_v45 = vld [vmem:[#allocation2 + $0x154] ss:$12 sps:$4 sm:$0xff]   ;;  %2325 = vst.msk [vmem:[#allocation2 + $0x16c] sm:$0xf] %vm928_vm7, %v2260_v26  ;;  %v5725_v29 = vcombine.low %v3408_v39, %v3410_v40  ;;  %v1235_v24 = vpop.permute.xlu1 %1234  ;;  %v6232_v39 = vld [vmem:[%s9059_s3 + $0x38] sm:$0xff]  }
 0x1ff   : > { %4000 = vmatprep.mubr.bf16.mxu0 %v6223_v45  ;;  %1300 = vst.msk [vmem:[#allocation2 + $0x174] sm:$0xf] %vm1268_vm8, %v1235_v24  ;;  %v6233_v24 = vld [vmem:[%s9059_s3 + $0x30] sm:$0xff]  }
 0x200   : > { %4001 = vmatmul.mubr.bf16.gmra.mxu0 %v5725_v29  ;;  %v6317_v29 = vmov 0.0  }
 0x201   : > { %v5890_v21 = vpop.f32.mrf.mxu0  ;;  %v1233_v15 = vpop.permute.xlu0 %1232  ;;  %6039 = vmatprep.subr.bf16.mxu1 %v6317_v29  ;;  %6055 = vmatprep.mubr.msk.bf16.mxu1 %vm6318_vm11, %v6317_v29 }
 0x202   : > { %1299 = vst.msk [vmem:[#allocation2 + $0x168] sm:$0xf] %vm1268_vm8, %v1233_v15  ;;  %v2455_v53 = vpop.permute.xlu1 %2454  ;;  %6040 = vmatpush3.bf16.msra.mxu1 %v6232_v39 }
 0x203   : > { %v5891_v57 = vpop.f32.mrf.mxu0  ;;  %2519 = vst.msk [vmem:[#allocation2 + $0x178] sm:$0xf] %vm1268_vm8, %v2455_v53  ;;  %6041 = vmatprep.subr.bf16.mxu1 %v6317_v29  ;;  %v6234_v53 = vld [vmem:[%s9059_s3 + $0x28] sm:$0xff]  }
 0x204   : > { %v8316_v23 = vadd.f32 %v5891_v57, %v5890_v21 }
 0x205   : > { %v5893_v5 = vpop.f32.mrf.mxu0  ;;  %v2453_v48 = vpop.permute.xlu0 %2452 }
 0x206   : > { %2518 = vst.msk [vmem:[#allocation2 + $0x16c] sm:$0xf] %vm1268_vm8, %v2453_v48  ;;  %v1429_v54 = vpop.permute.xlu1 %1428  ;;  %6042 = vmatpush3.bf16.msra.mxu1 %v6233_v24 }
 0x207   : > { %v5894_v63 = vpop.f32.mrf.mxu0  ;;  %1494 = vst.msk [vmem:[#allocation2 + $0x174] sm:$0xf] %vm1462_vm9, %v1429_v54  ;;  %6043 = vmatprep.subr.bf16.mxu1 %v6317_v29  ;;  %v6236_v54 = vld [vmem:[%s9059_s3 + $0x18] sm:$0xff]  }
 0x208   : > { %v8320_v55 = vadd.f32 %v5894_v63, %v5893_v5  ;;  %v6235_v63 = vld [vmem:[%s9059_s3 + $0x20] sm:$0xff]  }
 0x209   : > { %v1427_v4 = vpop.permute.xlu0 %1426 }
 0x20a   : > { %1493 = vst.msk [vmem:[#allocation2 + $0x168] sm:$0xf] %vm1462_vm9, %v1427_v4  ;;  %v3015_v60 = vpop.permute.xlu1 %3014  ;;  %6044 = vmatpush3.bf16.msra.mxu1 %v6234_v53  ;;  %v6237_v4 = vld [vmem:[%s9059_s3 + $0x10] sm:$0xff]   ;;  %v8410_v53 = vld [vmem:[%s9058_s2] ss:$0 sm:$0xff] }
 0x20b   : > { %3079 = vst.msk [vmem:[#allocation2 + $0x178] sm:$0xf] %vm1462_vm9, %v3015_v60  ;;  %6045 = vmatprep.subr.bf16.mxu1 %v6317_v29  ;;  %v6238_v60 = vld [vmem:[%s9059_s3 + $0x8] sm:$0xff]  }
 0x20d   : > { %v3013_v19 = vpop.permute.xlu0 %3012 }
 0x20e   : > { %3078 = vst.msk [vmem:[#allocation2 + $0x16c] sm:$0xf] %vm1462_vm9, %v3013_v19  ;;  %6046 = vmatpush3.bf16.msra.mxu1 %v6235_v63 }
 0x20f   : > { %6047 = vmatprep.subr.bf16.mxu1 %v6317_v29 }
 0x211   : > { %v6229_v49 = vld [vmem:[#allocation2 + $0x168] ss:$12 sps:$4 sm:$0xff]  }
 0x212   : > { %6048 = vmatpush3.bf16.msra.mxu1 %v6236_v54 }
 0x213   : > { %6049 = vmatprep.subr.bf16.mxu1 %v6317_v29 }
 0x215   : > { %v6227_v56 = vld [vmem:[#allocation2 + $0x16c] ss:$12 sps:$4 sm:$0xff]   ;;  %v5896_v43 = vpop.f32.mrf.mxu0 }
 0x216   : > { %4008 = vmatprep.mubr.bf16.mxu0 %v6227_v56  ;;  %6050 = vmatpush3.bf16.msra.mxu1 %v6237_v4  ;;  %v3891_v4 = vadd.f32 %v8079_v52, %v8410_v53  ;;  %v3902_v52 = vadd.f32 %v8206_v31, %v8410_v53 }
 0x217   : > { %4009 = vmatmul.mubr.bf16.gmra.mxu0 %v6229_v49  ;;  %v5897_v33 = vpop.f32.mrf.mxu0  ;;  %6051 = vmatprep.subr.bf16.mxu1 %v6317_v29 }
 0x218   : > { %6007 = vmatprep.mubr.msk.bf16.mxu0 %vm3807_vm10, %v6230_v11  ;;  %v8327_v12 = vadd.f32 %v5897_v33, %v5896_v43  ;;  %v6239_v11 = vld [vmem:[%s9059_s3] sm:$0xff]  }
 0x219   : > { %v5899_v27 = vpop.f32.mrf.mxu0 }
 0x21a   : > { %6052 = vmatpush3.bf16.msra.mxu1 %v6238_v60 }
 0x21b   : > { %v5900_v50 = vpop.f32.mrf.mxu0  ;;  %6053 = vmatprep.subr.bf16.mxu1 %v6317_v29 }
 0x21c   : > { %v8329_v25 = vadd.f32 %v5900_v50, %v5899_v27 }
 0x21e   : > { %6054 = vmatpush3.bf16.msra.mxu1 %v6239_v11  ;;  %v3899_v11 = vadd.f32 %v8193_v6, %v8410_v53  ;;  %v3910_v6 = vadd.f32 %v8256_v18, %v8410_v53 }
 0x21f   : > { %6008 = vmatmul.mubr.msk.bf16.vlgmr.msra.gmra.mxu0 %vm3807_vm10, %v6231_v1  ;;  %6059 = vmatprep.subr.bf16.mxu1 %v6317_v29  ;;  %v6013_v1 = vpop.f32.mrf.mxu1 }
 0x221   : > { %v4067_v50 = vpop.f32.mrf.mxu1 }
 0x22e   : > { %v5902_v34 = vpop.f32.mrf.mxu0 }
 0x230   : > { %v5903_v3 = vpop.f32.mrf.mxu0 }
 0x231   : > { %v8332_v59 = vadd.f32 %v5903_v3, %v5902_v34  ;;  %v6014_v3 = vpop.f32.mrf.mxu1 }
 0x232   : > { %v5905_v32 = vpop.f32.mrf.mxu0 }
 0x234   : > { %v5906_v2 = vpop.f32.mrf.mxu0 }
 0x235   : > { %v8334_v13 = vadd.f32 %v5906_v2, %v5905_v32 }
 0x245   : > { %v5908_v62 = vpop.f32.mrf.mxu0 }
 0x247   : > { %v5909_v17 = vpop.f32.mrf.mxu0 }
 0x248   : > { %v8336_v58 = vadd.f32 %v5909_v17, %v5908_v62  ;;  %v4070_v17 = vpop.f32.mrf.mxu1 }
 0x249   : > { %v5911_v14 = vpop.f32.mrf.mxu0  ;;  %v8447_v18 = vadd.f32 %v4070_v17, %v3910_v6 }
 0x24b   : > { %v5912_v10 = vpop.f32.mrf.mxu0 }
 0x24c   : > { %v8338_v36 = vadd.f32 %v5912_v10, %v5911_v14 }
 0x25d   : > { %v5914_v30 = vpop.f32.mrf.mxu0 }
 0x25f   : > { %v5915_v47 = vpop.f32.mrf.mxu0 }
 0x260   : > { %v8340_v37 = vadd.f32 %v5915_v47, %v5914_v30  ;;  %v6017_v30 = vpop.f32.mrf.mxu1 }
 0x261   : > { %v5917_v28 = vpop.f32.mrf.mxu0 }
 0x262   : > { %v4083_v47 = vpop.f32.mrf.mxu1 }
 0x263   : > { %v5918_v61 = vpop.f32.mrf.mxu0 }
 0x264   : > { %v8342_v42 = vadd.f32 %v5918_v61, %v5917_v28  ;;  %v8395_v28 = vpop.f32.mrf.mxu1 }
 0x266   : > { %v4086_v61 = vpop.f32.mrf.mxu1 }
 0x278   : > { %v5920_v41 = vpop.f32.mrf.mxu0 }
 0x27a   : > { %v5921_v35 = vpop.f32.mrf.mxu0 }
 0x27b   : > { %v8344_v20 = vadd.f32 %v5921_v35, %v5920_v41  ;;  %v8397_v41 = vpop.f32.mrf.mxu1 }
 0x27c   : > { %v5923_v38 = vpop.f32.mrf.mxu0 }
 0x27e   : > { %v5924_v40 = vpop.f32.mrf.mxu0 }
 0x27f   : > { %v8346_v26 = vadd.f32 %v5924_v40, %v5923_v38  ;;  %v8399_v38 = vpop.f32.mrf.mxu1 }
 0x281   : > { %v8403_v24 = vpop.f32.mrf.mxu1 }
 0x283   : > { %v4102_v63 = vpop.f32.mrf.mxu1 }
 0x285   : > { %v8414_v60 = vpop.f32.mrf.mxu1 }
 0x290   : > { %v5926_v45 = vpop.f32.mrf.mxu0 }
 0x292   : > { %v5927_v21 = vpop.f32.mrf.mxu0 }
 0x293   : > { %v8358_v15 = vadd.f32 %v5927_v21, %v5926_v45 }
 0x294   : > { %v5929_v57 = vpop.f32.mrf.mxu0 }
 0x296   : > { %v5930_v5 = vpop.f32.mrf.mxu0 }
 0x297   : > { %v8364_v48 = vadd.f32 %v5930_v5, %v5929_v57 }
 0x2a8   : > { %v5932_v19 = vpop.f32.mrf.mxu0 }
 0x2aa   : > { %v5933_v56 = vpop.f32.mrf.mxu0 }
 0x2ab   : > { %v8386_v49 = vadd.f32 %v5933_v56, %v5932_v19 }
 0x2ac   : > { %v5935_v43 = vpop.f32.mrf.mxu0 }
 0x2ae   : > { %v5936_v33 = vpop.f32.mrf.mxu0 }
 0x2af   : > { %v8389_v27 = vadd.f32 %v5936_v33, %v5935_v43  ;;  %v3894_v43 = vadd.f32 %v8107_v46, %v8410_v53 }
 0x2c0   : > { %v5938_v34 = vpop.f32.mrf.mxu0 }
 0x2c2   : > { %v5939_v32 = vpop.f32.mrf.mxu0 }
 0x2c3   : > { %v8391_v2 = vadd.f32 %v5939_v32, %v5938_v34  ;;  %v3907_v34 = vadd.f32 %v8252_v0, %v8410_v53  ;;  %v3915_v0 = vadd.f32 %v8268_v7, %v8410_v53 }
 0x2c4   : > { %v5941_v62 = vpop.f32.mrf.mxu0 }
 0x2c6   : > { %v5942_v14 = vpop.f32.mrf.mxu0 }
 0x2c7   : > { %v8393_v10 = vadd.f32 %v5942_v14, %v5941_v62  ;;  %v4115_v14 = vpop.f32.mrf.mxu1 }
 0x2d7   : > { %v5944_v35 = vpop.f32.mrf.mxu0 }
 0x2d9   : > { %v5945_v40 = vpop.f32.mrf.mxu0 }
 0x2da   : > { %v8401_v39 = vadd.f32 %v5945_v40, %v5944_v35 }
 0x2db   : > { %v5947_v45 = vpop.f32.mrf.mxu0 }
 0x2dd   : > { %v5948_v21 = vpop.f32.mrf.mxu0 }
 0x2de   : > { %v8405_v57 = vadd.f32 %v5948_v21, %v5947_v45  ;;  %v8436_v45 = vadd.f32 %v4067_v50, %v3907_v34 }
 0x2df   : > { %v6009_v5 = vpop.f32.mrf.mxu0 }
 0x2e0   : > { %v8424_v32 = vadd.f32 %v6009_v5, %v3899_v11  ;;  %v8445_v5 = vpop.f32.mrf.mxu1  ;;  %v4182_v7 = vmax.f32 %v8436_v45, 0.0  ;;  %v3923_v11 = vadd.f32 %v8284_v44, %v8410_v53  ;;  %v3931_v44 = vadd.f32 %v8300_v22, %v8410_v53 }
 0x2e1   : > { %v4051_v54 = vpop.f32.mrf.mxu0  ;;  %v3939_v22 = vadd.f32 %v8316_v23, %v8410_v53  ;;  %v3947_v23 = vadd.f32 %v8327_v12, %v8410_v53  ;;  %v3955_v12 = vadd.f32 %v8332_v59, %v8410_v53  ;;  %v3963_v59 = vadd.f32 %v8336_v58, %v8410_v53 }
 0x2e2   : > { %v8418_v56 = vadd.f32 %v4051_v54, %v3891_v4  ;;  %v4180_v21 = vmax.f32 %v8424_v32, 0.0  ;;  %v3918_v54 = vadd.f32 %v8272_v9, %v8410_v53  ;;  %v4118_v17 = vpop.f32.mrf.mxu1  ;;  %v3926_v9 = vadd.f32 %v8288_v8, %v8410_v53 }
 0x2e3   : > { %v6010_v19 = vpop.f32.mrf.mxu0  ;;  %v3934_v8 = vadd.f32 %v8304_v16, %v8410_v53  ;;  %v3942_v16 = vadd.f32 %v8320_v55, %v8410_v53  ;;  %v3950_v55 = vadd.f32 %v8329_v25, %v8410_v53  ;;  %v3971_v58 = vadd.f32 %v8340_v37, %v8410_v53 }
 0x2e4   : > { %v4178_v35 = vmax.f32 %v8418_v56, 0.0  ;;  %v8433_v40 = vadd.f32 %v6010_v19, %v3902_v52  ;;  %v8455_v19 = vadd.f32 %v6013_v1, %v3915_v0  ;;  %v8462_v34 = vadd.f32 %v6014_v3, %v3918_v54  ;;  %v8468_v6 = vpop.f32.mrf.mxu1 }
 0x2e5   : > { %v4054_v33 = vpop.f32.mrf.mxu0  ;;  %v8471_v0 = vadd.f32 %v4083_v47, %v3923_v11  ;;  %v8478_v54 = vadd.f32 %v4086_v61, %v3926_v9  ;;  %v8485_v11 = vadd.f32 %v6017_v30, %v3931_v44  ;;  %v8493_v9 = vadd.f32 %v8395_v28, %v3934_v8 }
 0x2e6   : > { %v8428_v62 = vadd.f32 %v4054_v33, %v3894_v43  ;;  %v4181_v50 = vmax.f32 %v8433_v40, 0.0  ;;  %v4183_v33 = vmax.f32 %v8447_v18, 0.0  ;;  %v9066_v1 = vmax.f32 %v8455_v19, 0.0 }
 0x2e7   : > { %v4185_v3 = vmax.f32 %v8462_v34, 0.0  ;;  %v9067_v47 = vmax.f32 %v8471_v0, 0.0  ;;  %v4187_v61 = vmax.f32 %v8478_v54, 0.0  ;;  %v9068_v30 = vmax.f32 %v8485_v11, 0.0 }
 0x2e8   : > { %v4179_v46 = vmax.f32 %v8428_v62, 0.0  ;;  %v8501_v44 = vadd.f32 %v8399_v38, %v3939_v22  ;;  %v9069_v28 = vmax.f32 %v8493_v9, 0.0  ;;  %v8508_v8 = vadd.f32 %v4102_v63, %v3942_v16 }
 0x2e9   : > { %v8516_v22 = vadd.f32 %v8397_v41, %v3947_v23  ;;  %v8524_v25 = vadd.f32 %v8403_v24, %v3950_v55  ;;  %v8531_v23 = vadd.f32 %v4115_v14, %v3955_v12  ;;  %v8546_v12 = vadd.f32 %v8414_v60, %v3963_v59 }
 0x2ea   : > { %v4210_v31 = vadd.f32 %v4179_v46, %v4178_v35  ;;  %v4190_v38 = vmax.f32 %v8501_v44, 0.0  ;;  %v9070_v16 = vmax.f32 %v8508_v8, 0.0  ;;  %v3979_v37 = vadd.f32 %v8344_v20, %v8410_v53 }
 0x2eb   : > { %v4192_v41 = vmax.f32 %v8516_v22, 0.0  ;;  %v9071_v24 = vmax.f32 %v8524_v25, 0.0  ;;  %v9072_v14 = vmax.f32 %v8531_v23, 0.0  ;;  %v9073_v60 = vmax.f32 %v8546_v12, 0.0 }
 0x2ec   : > { %v4211_v4 = vadd.f32 %v4210_v31, %v4180_v21  ;;  %v3987_v20 = vadd.f32 %v8358_v15, %v8410_v53  ;;  %v3995_v15 = vadd.f32 %v8386_v49, %v8410_v53  ;;  %v4003_v49 = vadd.f32 %v8391_v2, %v8410_v53 }
 0x2ed   : > { %v4011_v2 = vadd.f32 %v8401_v39, %v8410_v53  ;;  %v9089_v62 = vmax.f32 %v8455_v19, 0.0  ;;  %v9090_v40 = vmax.f32 %v8471_v0, 0.0 }
 0x2ee   : > { %v4212_v43 = vadd.f32 %v4211_v4, %v4181_v50 }
 0x2f0   : > { %v4213_v52 = vadd.f32 %v4212_v43, %v4182_v7  ;;  %v4131_v43 = vpop.f32.mrf.mxu1 }
 0x2f1   : > { %v8561_v59 = vadd.f32 %v4131_v43, %v3971_v58  ;;  %v8576_v58 = vadd.f32 %v8468_v6, %v3979_v37 }
 0x2f2   : > { %v4214_v31 = vadd.f32 %v4213_v52, %v4183_v33 }
 0x2f3   : > { %v9074_v43 = vmax.f32 %v8561_v59, 0.0  ;;  %v9075_v6 = vmax.f32 %v8576_v58, 0.0 }
 0x2f4   : > { %v4215_v4 = vadd.f32 %v4214_v31, %v9066_v1  ;;  %v6030_v1 = vpop.f32.mrf.mxu1 }
 0x2f6   : > { %v4216_v52 = vadd.f32 %v4215_v4, %v4185_v3 }
 0x2f8   : > { %v4217_v31 = vadd.f32 %v4216_v52, %v9067_v47  ;;  %v4134_v47 = vpop.f32.mrf.mxu1 }
 0x2fa   : > { %v4218_v4 = vadd.f32 %v4217_v31, %v4187_v61  ;;  %v6033_v63 = vpop.f32.mrf.mxu1 }
 0x2fc   : > { %v4219_v52 = vadd.f32 %v4218_v4, %v9068_v30  ;;  %v3958_v4 = vadd.f32 %v8334_v13, %v8410_v53  ;;  %v3966_v13 = vadd.f32 %v8338_v36, %v8410_v53  ;;  %v3974_v36 = vadd.f32 %v8342_v42, %v8410_v53 }
 0x2fd   : > { %v3982_v42 = vadd.f32 %v8346_v26, %v8410_v53  ;;  %v3990_v26 = vadd.f32 %v8364_v48, %v8410_v53  ;;  %v3998_v48 = vadd.f32 %v8389_v27, %v8410_v53  ;;  %v4006_v27 = vadd.f32 %v8393_v10, %v8410_v53 }
 0x2fe   : > { %v4220_v31 = vadd.f32 %v4219_v52, %v9069_v28  ;;  %v4147_v28 = vpop.f32.mrf.mxu1  ;;  %v8538_v55 = vadd.f32 %v4118_v17, %v3958_v4  ;;  %v8554_v4 = vadd.f32 %v8445_v5, %v3966_v13  ;;  %v8568_v13 = vadd.f32 %v4134_v47, %v3974_v36 }
 0x2ff   : > { %v8583_v36 = vadd.f32 %v6030_v1, %v3982_v42  ;;  %v8590_v37 = vadd.f32 %v4147_v28, %v3987_v20  ;;  %v8604_v20 = vadd.f32 %v6033_v63, %v3995_v15  ;;  %v4014_v10 = vadd.f32 %v8405_v57, %v8410_v53 }
 0x300   : > { %v4221_v30 = vadd.f32 %v4220_v31, %v4190_v38  ;;  %v4195_v17 = vmax.f32 %v8538_v55, 0.0  ;;  %v4197_v5 = vmax.f32 %v8554_v4, 0.0  ;;  %v4199_v47 = vmax.f32 %v8568_v13, 0.0 }
 0x301   : > { %v4201_v1 = vmax.f32 %v8583_v36, 0.0  ;;  %v9076_v28 = vmax.f32 %v8590_v37, 0.0  ;;  %v9078_v63 = vmax.f32 %v8604_v20, 0.0  ;;  %v9098_v55 = vmax.f32 %v8576_v58, 0.0 }
 0x302   : > { %v4222_v52 = vadd.f32 %v4221_v30, %v9070_v16  ;;  %v6034_v16 = vpop.f32.mrf.mxu1 }
 0x304   : > { %v4223_v31 = vadd.f32 %v4222_v52, %v4192_v41 }
 0x306   : > { %v4224_v30 = vadd.f32 %v4223_v31, %v9071_v24  ;;  %v4150_v24 = vpop.f32.mrf.mxu1 }
 0x307   : > { %v8597_v42 = vadd.f32 %v4150_v24, %v3990_v26  ;;  %v8611_v26 = vadd.f32 %v6034_v16, %v3998_v48 }
 0x308   : > { %v4225_v52 = vadd.f32 %v4224_v30, %v9072_v14  ;;  %v6037_v14 = vpop.f32.mrf.mxu1 }
 0x309   : > { %v4203_v24 = vmax.f32 %v8597_v42, 0.0  ;;  %v9077_v16 = vmax.f32 %v8611_v26, 0.0  ;;  %v9101_v58 = vmax.f32 %v8611_v26, 0.0 }
 0x30a   : > { %v4226_v31 = vadd.f32 %v4225_v52, %v4195_v17 }
 0x30c   : > { %v4227_v30 = vadd.f32 %v4226_v31, %v9073_v60  ;;  %v4163_v60 = vpop.f32.mrf.mxu1 }
 0x30d   : > { %v8618_v15 = vadd.f32 %v4163_v60, %v4003_v49  ;;  %v8632_v60 = vadd.f32 %v6037_v14, %v4011_v2 }
 0x30e   : > { %v4228_v52 = vadd.f32 %v4227_v30, %v4197_v5 }
 0x310   : > { %v4229_v31 = vadd.f32 %v4228_v52, %v9074_v43  ;;  %v6038_v43 = vpop.f32.mrf.mxu1 }
 0x312   : > { %v4230_v30 = vadd.f32 %v4229_v31, %v4199_v47 }
 0x314   : > { %v4231_v52 = vadd.f32 %v4230_v30, %v9075_v6  ;;  %v4166_v6 = vpop.f32.mrf.mxu1 }
 0x315   : > { %v8625_v48 = vadd.f32 %v4166_v6, %v4006_v27  ;;  %v9082_v27 = vmax.f32 %v8632_v60, 0.0 }
 0x316   : > { %v4232_v31 = vadd.f32 %v4231_v52, %v4201_v1 }
 0x317   : > { %v9079_v49 = vmax.f32 %v8625_v48, 0.0 }
 0x318   : > { %v4233_v30 = vadd.f32 %v4232_v31, %v9076_v28  ;;  %v9080_v28 = vmax.f32 %v8618_v15, 0.0 }
 0x31a   : > { %v4234_v52 = vadd.f32 %v4233_v30, %v4203_v24  ;;  %v8637_v30 = vadd.f32 %v6038_v43, %v4014_v10 }
 0x31c   : > { %v4235_v31 = vadd.f32 %v4234_v52, %v9078_v63  ;;  %v9081_v53 = vmax.f32 %v8637_v30, 0.0 }
 0x31e   : > { %v4236_v39 = vadd.f32 %v4235_v31, %v9077_v16 }
 0x320   : > { %v4237_v6 = vadd.f32 %v4236_v39, %v9080_v28  ;;  %v4356_v39 = vld [vmem:[%s9061_s5] sm:$0xf] }
 0x321   : > { %v4364_v28 = vsel %vm4362_vm12, %v4356_v39, 0  ;;  %v6244_v39 = vld [vmem:[%s9063_s7 + $0x18] sm:$0xff]  }
 0x322   : > { %v4238_v57 = vadd.f32 %v4237_v6, %v9079_v49 }
 0x324   : > { %v4239_v14 = vadd.f32 %v4238_v57, %v9082_v27  ;;  %v4265_v57 = vld [vmem:[%s9060_s4] sm:$0x1] }
 0x326   : > { %v4240_v2 = vadd.f32 %v4239_v14, %v9081_v53 }
 0x328   : > { %v4241_v52 = vrot.slane %v4240_v2, 4 }
 0x32a   : > { %v4242_v31 = vadd.f32 %v4241_v52, %v4240_v2 }
 0x32c   : > { %v4243_v43 = vrot.slane %v4242_v31, 2 }
 0x32e   : > { %v4244_v10 = vadd.f32 %v4243_v43, %v4242_v31 }
 0x330   : > { %v4245_v16 = vrot.slane %v4244_v10, 1 }
 0x332   : > { %v4246_v63 = vadd.f32 %v4245_v16, %v4244_v10 }
 0x334   : > { %v4247_v6 = vmul.f32 0.00390625, %v4246_v63  ;;  %v6242_v63 = vld [vmem:[%s9063_s7 + $0x28] sm:$0xff]  }
 0x336   : > { %v4248_v49 = vpack.c.bf16 %v4247_v6, %v4247_v6  ;;  %v6245_v6 = vld [vmem:[%s9063_s7 + $0x10] sm:$0xff]  }
 0x338   : > { %6056 = vmatmul.mubr.bf16.vlgmr.msra.gmra.mxu1 %v4248_v49  ;;  %v6243_v49 = vld [vmem:[%s9063_s7 + $0x20] sm:$0xff]  }
 0x339   : > { %6060 = vmatpush3.bf16.msra.mxu1 %v4364_v28  ;;  %6061 = vmatprep.mubr.msk.bf16.mxu1 %vm6318_vm11, %v6317_v29  ;;  %v6240_v28 = vld [vmem:[%s9063_s7 + $0x38] sm:$0xff]   ;;  %v6241_v29 = vld [vmem:[%s9063_s7 + $0x30] sm:$0xff]  }
 0x33a   : > { %6065 = vmatprep.subr.bf16.mxu1 %v6240_v28 }
 0x3f8   : > { %v4348_v14 = vpop.f32.mrf.mxu1 }
 0x3f9   : > { %v4349_v2 = vadd.f32 %v4348_v14, %v4265_v57  ;;  %v6246_v57 = vld [vmem:[%s9063_s7 + $0x8] sm:$0xff]   ;;  %v6247_v14 = vld [vmem:[%s9063_s7] sm:$0xff]  }
 0x3fa   : > { %v6057_v16 = vpop.f32.mrf.mxu1 }
 0x3fb   : > { %v4354_v52 = vmax.f32 %v4349_v2, 0.0  ;;  %v4357_v2 = vld [vmem:[%s9062_s6] sm:$0x1] }
 0x3fc   : > { %v4351_v31 = vpop.f32.mrf.mxu1 }
 0x3fd   : > { %v4355_v43 = vpack.c.bf16 %v4354_v52, %v4354_v52 }
 0x3fe   : > { %v6058_v10 = vpop.f32.mrf.mxu1 }
 0x3ff   : > { %6062 = vmatmul.mubr.msk.bf16.vlgmr.msra.gmra.mxu1 %vm4358_vm13, %v4355_v43 }
 0x400   : > { %6066 = vmatpush3.bf16.msra.mxu1 %v6240_v28 }
 0x401   : > { %6067 = vmatprep.subr.bf16.mxu1 %v6241_v29 }
 0x404   : > { %6068 = vmatpush3.bf16.msra.mxu1 %v6241_v29 }
 0x405   : > { %6069 = vmatprep.subr.bf16.mxu1 %v6242_v63 }
 0x408   : > { %6070 = vmatpush3.bf16.msra.mxu1 %v6242_v63 }
 0x409   : > { %6071 = vmatprep.subr.bf16.mxu1 %v6243_v49 }
 0x40c   : > { %6072 = vmatpush3.bf16.msra.mxu1 %v6243_v49  ;;  %v4412_v49 = vlaneseq }
 0x40d   : > { %6073 = vmatprep.subr.bf16.mxu1 %v6244_v39 }
 0x410   : > { %6074 = vmatpush3.bf16.msra.mxu1 %v6244_v39  ;;  %v4413_v39 = vshrl.u32 %v4412_v49, 7 }
 0x411   : > { %6075 = vmatprep.subr.bf16.mxu1 %v6245_v6 }
 0x414   : > { %6076 = vmatpush3.bf16.msra.mxu1 %v6245_v6  ;;  %v4414_v6 = vsub.s32 0, %v4413_v39 }
 0x415   : > { %6077 = vmatprep.subr.bf16.mxu1 %v6246_v57 }
 0x418   : > { %6078 = vmatpush3.bf16.msra.mxu1 %v6246_v57 }
 0x419   : > { %6079 = vmatprep.subr.bf16.mxu1 %v6247_v14 }
 0x41c   : > { %6080 = vmatpush3.bf16.msra.mxu1 %v6247_v14 }
 0x4bf   : > { %v4400_v16 = vpop.f32.mrf.mxu1 }
 0x4c0   : > { %v4401_v52 = vadd.f32 %v4400_v16, %v4357_v2 }
 0x4c1   : > { %v6063_v31 = vpop.f32.mrf.mxu1 }
 0x4c2   : > { %v5774_v43 = vmul.f32 -1.442695, %v4401_v52 }
 0x4c3   : > { %v4403_v10 = vpop.f32.mrf.mxu1 }
 0x4c4   : > { %6248 = vpow2.f32 %v5774_v43 }
 0x4c5   : > { %v6064_v28 = vpop.f32.mrf.mxu1 }
 0x4d1   : > { %v6249_v29 = vpop.eup %6248 }
 0x4d2   : > { %v4409_v63 = vadd.f32 1.0, %v6249_v29  ;;  %v9095_v29 = vmax.f32 %v8531_v23, 0.0 }
 0x4d4   : > { %6250 = vrcp.f32 %v4409_v63 }
 0x4e1   : > { %v6251_v57 = vpop.eup %6250 }
 0x4e2   : > { %v4415_v53 = vrot.slane %v6251_v57, %v4414_v6  ;;  %v9099_v57 = vmax.f32 %v8590_v37, 0.0 }
 0x4e4   : > { %v4416_v14 = vmul.f32 %v4415_v53, %v4178_v35  ;;  %v4417_v27 = vmul.f32 %v4415_v53, %v4179_v46  ;;  %v4418_v2 = vmul.f32 %v4415_v53, %v4180_v21  ;;  %v4419_v16 = vmul.f32 %v4415_v53, %v4181_v50 }
 0x4e5   : > { %v4420_v52 = vmul.f32 %v4415_v53, %v4182_v7  ;;  %v4421_v31 = vmul.f32 %v4415_v53, %v4183_v33  ;;  %v4422_v35 = vmul.f32 %v4415_v53, %v9089_v62  ;;  %v4423_v32 = vmul.f32 %v4415_v53, %v4185_v3 }
 0x4e6   : > { %v4449_v43 = vpack.c.bf16 %v4419_v16, %v4418_v2  ;;  %v4448_v10 = vpack.c.bf16 %v4417_v27, %v4416_v14  ;;  %v4424_v46 = vmul.f32 %v4415_v53, %v9090_v40  ;;  %v4425_v45 = vmul.f32 %v4415_v53, %v4187_v61  ;;  %v5788_v40 = vld [vmem:[%s6437_s22 + $0x1c] sm:$0xf] }
 0x4e7   : > { %v4450_v56 = vpack.c.bf16 %v4421_v31, %v4420_v52  ;;  %v4451_v21 = vpack.c.bf16 %v4423_v32, %v4422_v35  ;;  %v9091_v50 = vmax.f32 %v8485_v11, 0.0  ;;  %v9092_v33 = vmax.f32 %v8493_v9, 0.0 }
 0x4e8   : > { %6081 = vmatprep.mubr.bf16.mxu1 %v4448_v10  ;;  %v4452_v18 = vpack.c.bf16 %v4425_v45, %v4424_v46  ;;  %v4428_v34 = vmul.f32 %v4415_v53, %v4190_v38  ;;  %v9093_v3 = vmax.f32 %v8508_v8, 0.0  ;;  %v4430_v54 = vmul.f32 %v4415_v53, %v4192_v41  ;;  %v5784_v10 = vld [vmem:[%s6437_s22 + $0xc] sm:$0xf] }
 0x4e9   : > { %6082 = vmatmul.mubr.bf16.vlgmr.msra.gmra.mxu1 %v4449_v43  ;;  %v4426_v7 = vmul.f32 %v4415_v53, %v9091_v50  ;;  %v4427_v19 = vmul.f32 %v4415_v53, %v9092_v33  ;;  %v9094_v61 = vmax.f32 %v8524_v25, 0.0  ;;  %v4432_v9 = vmul.f32 %v4415_v53, %v9095_v29  ;;  %v5791_v29 = vld [vmem:[%s6437_s22 + $0x28] sm:$0xf] }
 0x4ea   : > { %6085 = vmatprep.mubr.bf16.mxu1 %v4450_v56  ;;  %v4429_v0 = vmul.f32 %v4415_v53, %v9093_v3  ;;  %v4433_v44 = vmul.f32 %v4415_v53, %v4195_v17  ;;  %v9096_v8 = vmax.f32 %v8546_v12, 0.0  ;;  %v4435_v22 = vmul.f32 %v4415_v53, %v4197_v5  ;;  %v5787_v56 = vld [vmem:[%s6437_s22 + $0x18] sm:$0xf]  ;;  %v5793_v3 = vld [vmem:[%s6437_s22 + $0x30] sm:$0xf] }
 0x4eb   : > { %v4453_v27 = vpack.c.bf16 %v4427_v19, %v4426_v7  ;;  %v4431_v11 = vmul.f32 %v4415_v53, %v9094_v61  ;;  %v9097_v41 = vmax.f32 %v8561_v59, 0.0  ;;  %v4437_v23 = vmul.f32 %v4415_v53, %v4199_v47  ;;  %v5786_v19 = vld [vmem:[%s6437_s22 + $0x14] sm:$0x1] }
 0x4ec   : > { %v4454_v28 = vpack.c.bf16 %v4429_v0, %v4428_v34  ;;  %v4456_v63 = vpack.c.bf16 %v4433_v44, %v4432_v9  ;;  %v4434_v49 = vmul.f32 %v4415_v53, %v9096_v8  ;;  %v4438_v17 = vmul.f32 %v4415_v53, %v9098_v55  ;;  %v5794_v0 = vld [vmem:[%s6437_s22 + $0x34] sm:$0xf]  ;;  %v5789_v44 = vld [vmem:[%s6437_s22 + $0x20] sm:$0x1] }
 0x4ed   : > { %v4455_v38 = vpack.c.bf16 %v4431_v11, %v4430_v54  ;;  %v4436_v25 = vmul.f32 %v4415_v53, %v9097_v41  ;;  %v4439_v12 = vmul.f32 %v4415_v53, %v4201_v1  ;;  %v4440_v4 = vmul.f32 %v4415_v53, %v9099_v57 }
 0x4ee   : > { %v4457_v39 = vpack.c.bf16 %v4435_v22, %v4434_v49  ;;  %v4441_v59 = vmul.f32 %v4415_v53, %v4203_v24  ;;  %v9100_v47 = vmax.f32 %v8604_v20, 0.0  ;;  %v4443_v36 = vmul.f32 %v4415_v53, %v9101_v58 }
 0x4ef   : > { %v4458_v6 = vpack.c.bf16 %v4437_v23, %v4436_v25  ;;  %v4459_v5 = vpack.c.bf16 %v4439_v12, %v4438_v17  ;;  %v9102_v1 = vmax.f32 %v8618_v15, 0.0  ;;  %v9103_v2 = vmax.f32 %v8625_v48, 0.0  ;;  %v5785_v48 = vld [vmem:[%s6437_s22 + $0x10] sm:$0xf] }
 0x4f0   : > { %v4460_v13 = vpack.c.bf16 %v4441_v59, %v4440_v4  ;;  %v4442_v14 = vmul.f32 %v4415_v53, %v9100_v47  ;;  %v9104_v52 = vmax.f32 %v8632_v60, 0.0  ;;  %v9105_v20 = vmax.f32 %v8637_v30, 0.0 }
 0x4f1   : > { %6086 = vmatmul.mubr.bf16.gmra.mxu1 %v4451_v21  ;;  %v4444_v37 = vmul.f32 %v4415_v53, %v9102_v1  ;;  %v4445_v42 = vmul.f32 %v4415_v53, %v9103_v2  ;;  %v4745_v15 = vshrl.u32 %v5784_v10, 16  ;;  %v4748_v62 = vshll.u32 %v5784_v10, 16  ;;  %v5792_v2 = vld [vmem:[%s6437_s22 + $0x2c] sm:$0x1] }
 0x4f2   : > { %6089 = vmatprep.mubr.bf16.mxu1 %v4452_v18  ;;  %v4461_v24 = vpack.c.bf16 %v4443_v36, %v4442_v14  ;;  %v4446_v31 = vmul.f32 %v4415_v53, %v9104_v52  ;;  %v4447_v43 = vmul.f32 %v4415_v53, %v9105_v20  ;;  %v4769_v35 = vshrl.u32 %v5787_v56, 16 }
 0x4f3   : > { %v4462_v16 = vpack.c.bf16 %v4445_v42, %v4444_v37  ;;  %v4772_v32 = vshll.u32 %v5787_v56, 16  ;;  %v4747_v46 = vrot.slane %v4745_v15, 4  ;;  %v4750_v60 = vrot.slane %v4748_v62, 5  ;;  %v5795_v37 = vld [vmem:[%s6437_s22 + $0x38] sm:$0x1] }
 0x4f4   : > { %v4463_v26 = vpack.c.bf16 %v4447_v43, %v4446_v31  ;;  %v4754_v45 = vshll.u32 %v5785_v48, 16  ;;  %v4758_v21 = vshrl.u32 %v5785_v48, 16  ;;  %v4771_v30 = vrot.slane %v4769_v35, 4  ;;  %v5796_v43 = vld [vmem:[%s6437_s22 + $0x3c] sm:$0xf] }
 0x4f5   : > { %v4774_v53 = vrot.slane %v4772_v32, 5  ;;  %v4778_v18 = vshll.u32 %v5788_v40, 16  ;;  %v4782_v50 = vshrl.u32 %v5788_v40, 16  ;;  %v4751_v7 = vor.u32 %v4750_v60, %v4747_v46  ;;  %v8779_v62 = vld [vmem:[%s9064_s8] ss:$0 sm:$0xff] }
 0x4f6   : > { %v4756_v33 = vrot.slane %v4754_v45, 5  ;;  %v4760_v34 = vrot.slane %v4758_v21, 4  ;;  %v4764_v11 = vshll.u32 %v5786_v19, 16  ;;  %v4820_v8 = vshll.u32 %v5793_v3, 16  ;;  %v5800_v60 = vld [vmem:[%s6437_s22 + $0x4c] sm:$0xf] }
 0x4f7   : > { %v8756_v54 = vrot.slane %v4778_v18, 5  ;;  %v4784_v61 = vrot.slane %v4782_v50, 4  ;;  %v4752_v9 = vrot.slane %v4751_v7, 4  ;;  %v4826_v49 = vshll.u32 %v5794_v0, 16 }
 0x4f8   : > { %v4830_v22 = vshrl.u32 %v5794_v0, 16  ;;  %v4802_v23 = vshll.u32 %v5791_v29, 16  ;;  %v4788_v17 = vshll.u32 %v5789_v44, 16  ;;  %v4766_v12 = vrot.slane %v4764_v11, 5 }
 0x4f9   : > { %6090 = vmatmul.mubr.bf16.gmra.mxu1 %v4453_v27  ;;  %v5790_v27 = vld [vmem:[%s6437_s22 + $0x24] sm:$0xf]  ;;  %v4785_v55 = vor.u32 %v4784_v61, %v8756_v54  ;;  %v4757_v57 = vsel %vm6488_vm5, %v4752_v9, %v4756_v33  ;;  %v8764_v47 = vrot.slane %v4826_v49, 5  ;;  %v4836_v40 = vshll.u32 %v5795_v37, 16  ;;  %v5808_v37 = vld [vmem:[%s6437_s22 + $0x6c] sm:$0xf] }
 0x4fa   : > { %6093 = vmatprep.mubr.bf16.mxu1 %v4454_v28  ;;  %v4775_v28 = vor.u32 %v4774_v53, %v4771_v30  ;;  %v4793_v41 = vshrl.u32 %v5790_v27, 16  ;;  %v4796_v25 = vshll.u32 %v5790_v27, 16  ;;  %v4832_v36 = vrot.slane %v4830_v22, 4 }
 0x4fb   : > { %v8766_v1 = vrot.slane %v4802_v23, 5  ;;  %v4790_v52 = vrot.slane %v4788_v17, 5  ;;  %v5160_v10 = vunpack.c.l.bf16 %v4757_v57  ;;  %v4812_v46 = vshll.u32 %v5792_v2, 16  ;;  %v5801_v17 = vld [vmem:[%s6437_s22 + $0x50] sm:$0x1] }
 0x4fc   : > { %v4795_v14 = vrot.slane %v4793_v41, 4  ;;  %v4798_v58 = vrot.slane %v4796_v25, 5  ;;  %v4833_v32 = vor.u32 %v4832_v36, %v8764_v47  ;;  %v4841_v30 = vshrl.u32 %v5796_v43, 16  ;;  %v5798_v36 = vld [vmem:[%s6437_s22 + $0x44] sm:$0x1] }
 0x4fd   : > { %v4844_v53 = vshll.u32 %v5796_v43, 16  ;;  %v4874_v0 = vshll.u32 %v5800_v60, 16  ;;  %v4878_v27 = vshrl.u32 %v5800_v60, 16  ;;  %v4814_v9 = vrot.slane %v4812_v46, 5 }
 0x4fe   : > { %v4799_v35 = vor.u32 %v4798_v58, %v4795_v14  ;;  %v4834_v11 = vrot.slane %v4833_v32, 4  ;;  %v4860_v46 = vshll.u32 %v5798_v36, 16 }
 0x500   : > { %v4800_v61 = vrot.slane %v4799_v35, 4  ;;  %v4940_v35 = vshll.u32 %v5808_v37, 16 }
 0x501   : > { %6094 = vmatmul.mubr.bf16.gmra.mxu1 %v4455_v38  ;;  %v4761_v38 = vor.u32 %v4760_v34, %v4756_v33 }
 0x502   : > { %6097 = vmatprep.mubr.bf16.mxu1 %v4456_v63  ;;  %v4817_v63 = vshrl.u32 %v5793_v3, 16 }
 0x503   : > { %v4762_v4 = vrot.slane %v4761_v38, 4 }
 0x504   : > { %v4819_v59 = vrot.slane %v4817_v63, 4  ;;  %v4843_v63 = vrot.slane %v4841_v30, 4 }
 0x505   : > { %v4767_v56 = vsel %vm6488_vm5, %v4762_v4, %v4766_v12  ;;  %v4880_v12 = vrot.slane %v4878_v27, 4  ;;  %v5802_v27 = vld [vmem:[%s6437_s22 + $0x54] sm:$0xf] }
 0x506   : > { %v5161_v7 = vunpack.c.l.bf16 %v4767_v56 }
 0x509   : > { %6098 = vmatmul.mubr.bf16.gmra.mxu1 %v4457_v39  ;;  %v4806_v39 = vshrl.u32 %v5791_v29, 16  ;;  %v4838_v29 = vrot.slane %v4836_v40, 5 }
 0x50a   : > { %6101 = vmatprep.mubr.bf16.mxu1 %v4458_v6  ;;  %v4776_v6 = vrot.slane %v4775_v28, 4  ;;  %v5797_v28 = vld [vmem:[%s6437_s22 + $0x40] sm:$0xf] }
 0x50b   : > { %v4808_v42 = vrot.slane %v4806_v39, 4  ;;  %v4850_v25 = vshll.u32 %v5797_v28, 16  ;;  %v4854_v23 = vshrl.u32 %v5797_v28, 16 }
 0x50d   : > { %v4809_v21 = vor.u32 %v4808_v42, %v8766_v1 }
 0x50f   : > { %v4810_v38 = vrot.slane %v4809_v21, 4 }
 0x511   : > { %6102 = vmatmul.mubr.bf16.gmra.mxu1 %v4459_v5  ;;  %v4822_v5 = vrot.slane %v4820_v8, 5  ;;  %v4846_v8 = vrot.slane %v4844_v53, 5  ;;  %v4815_v14 = vsel %vm6488_vm5, %v4810_v38, %v4814_v9  ;;  %v4862_v9 = vrot.slane %v4860_v46, 5 }
 0x512   : > { %6105 = vmatprep.mubr.bf16.mxu1 %v4460_v13  ;;  %v5799_v13 = vld [vmem:[%s6437_s22 + $0x48] sm:$0xf]  ;;  %v5165_v32 = vunpack.c.l.bf16 %v4815_v14 }
 0x513   : > { %v4865_v31 = vshrl.u32 %v5799_v13, 16  ;;  %v4868_v20 = vshll.u32 %v5799_v13, 16  ;;  %v4823_v15 = vor.u32 %v4822_v5, %v4819_v59  ;;  %v4805_v5 = vsel %vm6488_vm5, %v4800_v61, %v8766_v1 }
 0x514   : > { %v4839_v13 = vsel %vm6488_vm5, %v4834_v11, %v4838_v29  ;;  %v4847_v58 = vor.u32 %v4846_v8, %v4843_v63 }
 0x515   : > { %v4867_v33 = vrot.slane %v4865_v31, 4  ;;  %v4870_v19 = vrot.slane %v4868_v20, 5  ;;  %v4824_v3 = vrot.slane %v4823_v15, 4  ;;  %v5811_v15 = vld [vmem:[%s6437_s22 + $0x78] sm:$0xf] }
 0x516   : > { %v4848_v40 = vrot.slane %v4847_v58, 4  ;;  %v4964_v38 = vshll.u32 %v5811_v15, 16 }
 0x517   : > { %v4871_v41 = vor.u32 %v4870_v19, %v4867_v33  ;;  %v4829_v4 = vsel %vm6488_vm5, %v4824_v3, %v8764_v47  ;;  %v8809_v47 = vrot.slane %v4850_v25, 5  ;;  %v4961_v3 = vshrl.u32 %v5811_v15, 16  ;;  %v5814_v15 = vld [vmem:[%s6437_s22 + $0x84] sm:$0xf] }
 0x518   : > { %v8813_v20 = vunpack.c.l.bf16 %v4829_v4  ;;  %v4966_v58 = vrot.slane %v4964_v38, 5 }
 0x519   : > { %6106 = vmatmul.mubr.bf16.gmra.mxu1 %v4461_v24  ;;  %v4872_v42 = vrot.slane %v4871_v41, 4  ;;  %v4853_v29 = vsel %vm6488_vm5, %v4848_v40, %v8809_v47  ;;  %v4963_v4 = vrot.slane %v4961_v3, 4 }
 0x51a   : > { %6109 = vmatprep.mubr.bf16.mxu1 %v4462_v16  ;;  %v4786_v16 = vrot.slane %v4785_v55, 4  ;;  %v8792_v55 = vrot.slane %v4874_v0, 5 }
 0x51c   : > { %v4791_v50 = vsel %vm6488_vm5, %v4786_v16, %v4790_v52  ;;  %v4856_v16 = vrot.slane %v4854_v23, 4  ;;  %v5805_v52 = vld [vmem:[%s6437_s22 + $0x60] sm:$0xf]  ;;  %v4881_v43 = vor.u32 %v4880_v12, %v8792_v55  ;;  %v4877_v30 = vsel %vm6488_vm5, %v4872_v42, %v8792_v55  ;;  %v5812_v23 = vld [vmem:[%s6437_s22 + $0x7c] sm:$0xf] }
 0x51d   : > { %v5163_v57 = vunpack.c.l.bf16 %v4791_v50  ;;  %v4913_v60 = vshrl.u32 %v5805_v52, 16  ;;  %v4916_v50 = vshll.u32 %v5805_v52, 16  ;;  %v4889_v12 = vshrl.u32 %v5802_v27, 16  ;;  %v5810_v42 = vld [vmem:[%s6437_s22 + $0x74] sm:$0x1] }
 0x51e   : > { %v4882_v19 = vrot.slane %v4881_v43, 4  ;;  %v8849_v14 = vunpack.c.l.bf16 %v4877_v30  ;;  %v4970_v36 = vshll.u32 %v5812_v23, 16  ;;  %v4892_v52 = vshll.u32 %v5802_v27, 16 }
 0x51f   : > { %v4967_v30 = vor.u32 %v4966_v58, %v4963_v4 }
 0x521   : > { %6110 = vmatmul.mubr.bf16.gmra.mxu1 %v4463_v26  ;;  %v4781_v26 = vsel %vm6488_vm5, %v4776_v6, %v8756_v54 }
 0x522   : > { %v5162_v49 = vunpack.c.l.bf16 %v4781_v26  ;;  %v5164_v26 = vunpack.c.l.bf16 %v4805_v5 }
 0x5a9   : > { %v6083_v24 = vpop.f32.mrf.mxu1 }
 0x5aa   : > { %v4578_v39 = vadd.f32 %v6083_v24, %v8779_v62  ;;  %v4884_v24 = vshll.u32 %v5801_v17, 16  ;;  %v8845_v17 = vld [vmem:[%s6437_s22 + $0x58] sm:$0xf] }
 0x5ab   : > { %v4569_v48 = vpop.f32.mrf.mxu1 }
 0x5ac   : > { %v4570_v45 = vadd.f32 %v8779_v62, %v4569_v48  ;;  %v5194_v1 = vadd.f32 %v5162_v49, %v4578_v39  ;;  %v4937_v48 = vshrl.u32 %v5808_v37, 16  ;;  %v4886_v53 = vrot.slane %v4884_v24, 5 }
 0x5ad   : > { %v6084_v18 = vpop.f32.mrf.mxu1  ;;  %v4918_v49 = vrot.slane %v4916_v50, 5  ;;  %v4974_v37 = vshrl.u32 %v5812_v23, 16 }
 0x5ae   : > { %v5192_v34 = vadd.f32 %v5160_v10, %v4570_v45  ;;  %v4581_v31 = vadd.f32 %v6084_v18, %v8779_v62  ;;  %v8816_v10 = vunpack.c.l.bf16 %v4839_v13  ;;  %v5809_v45 = vld [vmem:[%s6437_s22 + $0x70] sm:$0xf]  ;;  %v4857_v18 = vor.u32 %v4856_v16, %v8809_v47 }
 0x5af   : > { %v4572_v54 = vpop.f32.mrf.mxu1  ;;  %v4939_v28 = vrot.slane %v4937_v48, 4  ;;  %v4946_v61 = vshll.u32 %v5809_v45, 16  ;;  %v4950_v11 = vshrl.u32 %v5809_v45, 16  ;;  %v4887_v55 = vsel %vm6488_vm5, %v4882_v19, %v4886_v53 }
 0x5b0   : > { %v4573_v44 = vadd.f32 %v8779_v62, %v4572_v54  ;;  %5224 = vxpose.xlu0.b32.start [1/16] (narrow) %v5192_v34, 32  ;;  %v8828_v34 = vld [vmem:[%s6437_s22 + $0x64] sm:$0xf]  ;;  %v4942_v54 = vrot.slane %v4940_v35, 5  ;;  %v4858_v8 = vrot.slane %v4857_v18, 4  ;;  %v8852_v47 = vunpack.c.l.bf16 %v4853_v29 }
 0x5b1   : > { %v8789_v22 = vpop.f32.mrf.mxu1  ;;  %v4922_v41 = vshll.u32 %v8828_v34, 16  ;;  %v4926_v25 = vshrl.u32 %v8828_v34, 16  ;;  %v4948_v5 = vrot.slane %v4946_v61, 5  ;;  %v4952_v13 = vrot.slane %v4950_v11, 4  ;;  %v8887_v29 = vld [vmem:[%s6437_s22 + $0x5c] sm:$0x1] }
 0x5b2   : > { %v5193_v6 = vadd.f32 %v5161_v7, %v4573_v44  ;;  %v5195_v7 = vadd.f32 %v5163_v57, %v4581_v31  ;;  %v4915_v44 = vrot.slane %v4913_v60, 4  ;;  %v4594_v31 = vadd.f32 %v8789_v22, %v8779_v62 }
 0x5b3   : > { %v4585_v59 = vpop.f32.mrf.mxu1  ;;  %v8856_v16 = vrot.slane %v4922_v41, 5  ;;  %v4953_v46 = vor.u32 %v4952_v13, %v4948_v5  ;;  %v4956_v60 = vshll.u32 %v5810_v42, 16  ;;  %v4891_v45 = vrot.slane %v4889_v12, 4  ;;  %v5817_v41 = vld [vmem:[%s6437_s22 + $0x90] sm:$0xf] }
 0x5b4   : > { %5225 = vxpose.xlu0.b32.cont [2/16] (narrow) %v5193_v6, 32  ;;  %v4586_v33 = vadd.f32 %v8779_v62, %v4585_v59  ;;  %v4943_v59 = vor.u32 %v4942_v54, %v4939_v28  ;;  %v4919_v48 = vor.u32 %v4918_v49, %v4915_v44  ;;  %v8868_v22 = vrot.slane %v4970_v36, 5  ;;  %v5815_v54 = vld [vmem:[%s6437_s22 + $0x88] sm:$0xf] }
 0x5b5   : > { %v8807_v2 = vpop.f32.mrf.mxu1  ;;  %v4894_v18 = vrot.slane %v4892_v52, 5  ;;  %v4988_v19 = vshll.u32 %v5814_v15, 16  ;;  %v5198_v34 = vadd.f32 %v8813_v20, %v4594_v31  ;;  %v4902_v28 = vshrl.u32 %v8845_v17, 16 }
 0x5b6   : > { %v5196_v39 = vadd.f32 %v5164_v26, %v4586_v33  ;;  %v8861_v26 = vunpack.c.l.bf16 %v4887_v55  ;;  %v4944_v40 = vrot.slane %v4943_v59, 4  ;;  %v4985_v33 = vshrl.u32 %v5814_v15, 16 }
 0x5b7   : > { %v4588_v56 = vpop.f32.mrf.mxu1  ;;  %v4597_v3 = vadd.f32 %v8807_v2, %v8779_v62  ;;  %v8882_v61 = vrot.slane %v4919_v48, 4  ;;  %v4954_v44 = vrot.slane %v4953_v46, 4  ;;  %v4958_v20 = vrot.slane %v4956_v60, 5  ;;  %v5816_v48 = vld [vmem:[%s6437_s22 + $0x8c] sm:$0x1] }
 0x5b8   : > { %5226 = vxpose.xlu0.b32.cont [3/16] (narrow) %v5194_v1, 32  ;;  %v4589_v6 = vadd.f32 %v8779_v62, %v4588_v56  ;;  %v4898_v1 = vshll.u32 %v8845_v17, 16  ;;  %v4863_v56 = vsel %vm6488_vm5, %v4858_v8, %v4862_v9  ;;  %v4949_v9 = vsel %vm6488_vm5, %v4944_v40, %v4948_v5 }
 0x5b9   : > { %v8820_v21 = vpop.f32.mrf.mxu1  ;;  %v8870_v53 = vunpack.c.l.bf16 %v4863_v56  ;;  %v8891_v38 = vrot.slane %v4926_v25, 4  ;;  %v4968_v2 = vrot.slane %v4967_v30, 4  ;;  %v4994_v55 = vshll.u32 %v5815_v54, 16 }
 0x5ba   : > { %v5197_v43 = vadd.f32 %v5165_v32, %v4589_v6  ;;  %v4976_v32 = vrot.slane %v4974_v37, 4  ;;  %v8878_v27 = vrot.slane %v4898_v1, 5  ;;  %v4990_v6 = vrot.slane %v4988_v19, 5 }
 0x5bb   : > { %v8830_v0 = vpop.f32.mrf.mxu1  ;;  %v4998_v17 = vshrl.u32 %v5815_v54, 16  ;;  %v5199_v12 = vadd.f32 %v8816_v10, %v4597_v3  ;;  %v4908_v25 = vshll.u32 %v8887_v29, 16  ;;  %v5176_v59 = vunpack.c.l.bf16 %v4949_v9 }
 0x5bc   : > { %5227 = vxpose.xlu0.b32.cont [4/16] (narrow) %v5195_v7, 32  ;;  %v5813_v7 = vld [vmem:[%s6437_s22 + $0x80] sm:$0x1]  ;;  %v4977_v8 = vor.u32 %v4976_v32, %v8868_v22  ;;  %v4602_v4 = vadd.f32 %v8779_v62, %v8830_v0  ;;  %v4895_v5 = vor.u32 %v4894_v18, %v4891_v45  ;;  %v4904_v13 = vrot.slane %v4902_v28, 4  ;;  %v5818_v0 = vld [vmem:[%s6437_s22 + $0x94] sm:$0xf] }
 0x5bd   : > { %v8836_v63 = vpop.f32.mrf.mxu1  ;;  %v4980_v49 = vshll.u32 %v5813_v7, 16  ;;  %v4959_v36 = vsel %vm6488_vm5, %v4954_v44, %v4958_v20  ;;  %v5009_v37 = vshrl.u32 %v5817_v41, 16  ;;  %v4973_v42 = vsel %vm6488_vm5, %v4968_v2, %v8868_v22 }
 0x5be   : > { %v5012_v1 = vshll.u32 %v5817_v41, 16  ;;  %v4996_v15 = vrot.slane %v4994_v55, 5  ;;  %v5000_v40 = vrot.slane %v4998_v17, 4  ;;  %v5200_v46 = vadd.f32 %v8852_v47, %v4602_v4 }
 0x5bf   : > { %v8847_v57 = vpop.f32.mrf.mxu1  ;;  %v4982_v52 = vrot.slane %v4980_v49, 5  ;;  %v5177_v30 = vunpack.c.l.bf16 %v4959_v36  ;;  %v4896_v22 = vrot.slane %v4895_v5, 4  ;;  %v4905_v32 = vor.u32 %v4904_v13, %v8878_v27  ;;  %v5820_v49 = vld [vmem:[%s6437_s22 + $0x9c] sm:$0xf]  ;;  %v5819_v5 = vld [vmem:[%s6437_s22 + $0x98] sm:$0x1] }
 0x5c0   : > { %5228 = vxpose.xlu0.b32.cont [5/16] (narrow) %v5196_v39, 32  ;;  %v4987_v39 = vrot.slane %v4985_v33, 4  ;;  %v4605_v60 = vadd.f32 %v8779_v62, %v8847_v57  ;;  %v5011_v7 = vrot.slane %v5009_v37, 4  ;;  %v5018_v33 = vshll.u32 %v5818_v0, 16 }
 0x5c1   : > { %v8854_v24 = vpop.f32.mrf.mxu1  ;;  %v5022_v3 = vshrl.u32 %v5818_v0, 16  ;;  %v5004_v28 = vshll.u32 %v5816_v48, 16  ;;  %v5178_v47 = vunpack.c.l.bf16 %v4973_v42  ;;  %v5001_v9 = vor.u32 %v5000_v40, %v4996_v15  ;;  %v5823_v40 = vld [vmem:[%s6437_s22 + $0xa8] sm:$0xf] }
 0x5c2   : > { %v4991_v56 = vor.u32 %v4990_v6, %v4987_v39  ;;  %v4610_v44 = vadd.f32 %v8820_v21, %v8779_v62  ;;  %v5201_v20 = vadd.f32 %v8870_v53, %v4605_v60  ;;  %v4901_v41 = vsel %vm6488_vm5, %v4896_v22, %v8878_v27 }
 0x5c3   : > { %v8866_v35 = vpop.f32.mrf.mxu1  ;;  %v4906_v39 = vrot.slane %v4905_v32, 4  ;;  %v4910_v6 = vrot.slane %v4908_v25, 5  ;;  %v8924_v55 = vrot.slane %v5018_v33, 5  ;;  %v5024_v21 = vrot.slane %v5022_v3, 4 }
 0x5c4   : > { %5229 = vxpose.xlu0.b32.cont [6/16] (narrow) %v5197_v43, 32  ;;  %v4978_v43 = vrot.slane %v4977_v8, 4  ;;  %v4992_v29 = vrot.slane %v4991_v56, 4  ;;  %v5006_v53 = vrot.slane %v5004_v28, 5  ;;  %v5002_v13 = vrot.slane %v5001_v9, 4 }
 0x5c5   : > { %v8872_v50 = vpop.f32.mrf.mxu1  ;;  %v5036_v36 = vshll.u32 %v5820_v49, 16  ;;  %v5202_v27 = vadd.f32 %v8849_v14, %v4610_v44  ;;  %v4613_v25 = vadd.f32 %v8836_v63, %v8779_v62  ;;  %v4929_v0 = vor.u32 %v8891_v38, %v8856_v16 }
 0x5c6   : > { %v4983_v57 = vsel %vm6488_vm5, %v4978_v43, %v4982_v52  ;;  %v5172_v52 = vunpack.c.l.bf16 %v4901_v41  ;;  %v4911_v14 = vsel %vm6488_vm5, %v4906_v39, %v4910_v6  ;;  %v5025_v56 = vor.u32 %v5024_v21, %v8924_v55 }
 0x5c7   : > { %v8884_v11 = vpop.f32.mrf.mxu1  ;;  %v5179_v4 = vunpack.c.l.bf16 %v4983_v57  ;;  %v5203_v38 = vadd.f32 %v8861_v26, %v4613_v25  ;;  %v4618_v60 = vadd.f32 %v8779_v62, %v8866_v35  ;;  %v4930_v22 = vrot.slane %v4929_v0, 4 }
 0x5c8   : > { %5230 = vxpose.xlu0.b32.cont [7/16] (narrow) %v5198_v34, 32  ;;  %v5014_v34 = vrot.slane %v5012_v1, 5  ;;  %v5057_v3 = vshrl.u32 %v5823_v40, 16  ;;  %v5060_v28 = vshll.u32 %v5823_v40, 16  ;;  %v5026_v26 = vrot.slane %v5025_v56, 4 }
 0x5c9   : > { %v6099_v23 = vpop.f32.mrf.mxu1  ;;  %v4621_v9 = vadd.f32 %v8779_v62, %v8884_v11  ;;  %v5827_v40 = vld [vmem:[%s6437_s22 + $0xb8] sm:$0xf] }
 0x5ca   : > { %v4642_v2 = vadd.f32 %v6099_v23, %v8779_v62  ;;  %v4997_v23 = vsel %vm6488_vm5, %v4992_v29, %v4996_v15  ;;  %v5028_v15 = vshll.u32 %v5819_v5, 16  ;;  %v5204_v29 = vadd.f32 %v5172_v52, %v4618_v60 }
 0x5cb   : > { %v4633_v58 = vpop.f32.mrf.mxu1  ;;  %v5180_v48 = vunpack.c.l.bf16 %v4997_v23  ;;  %v4626_v23 = vadd.f32 %v8854_v24, %v8779_v62 }
 0x5cc   : > { %v4634_v10 = vadd.f32 %v8779_v62, %v4633_v58  ;;  %5231 = vxpose.xlu0.b32.cont [8/16] (narrow) %v5199_v12, 32  ;;  %v5807_v12 = vld [vmem:[%s6437_s22 + $0x68] sm:$0x1]  ;;  %v5033_v58 = vshrl.u32 %v5820_v49, 16  ;;  %v5210_v37 = vadd.f32 %v5178_v47, %v4642_v2  ;;  %v5030_v35 = vrot.slane %v5028_v15, 5 }
 0x5cd   : > { %v6100_v31 = vpop.f32.mrf.mxu1  ;;  %v4932_v1 = vshll.u32 %v5807_v12, 16  ;;  %v5824_v2 = vld [vmem:[%s6437_s22 + $0xac] sm:$0xf]  ;;  %v5062_v12 = vrot.slane %v5060_v28, 5  ;;  %v5825_v15 = vld [vmem:[%s6437_s22 + $0xb0] sm:$0x1] }
 0x5ce   : > { %v5208_v45 = vadd.f32 %v5176_v59, %v4634_v10  ;;  %v5015_v59 = vor.u32 %v5014_v34, %v5011_v7  ;;  %v4645_v42 = vadd.f32 %v6100_v31, %v8779_v62  ;;  %v4925_v10 = vsel %vm6488_vm5, %v8882_v61, %v8856_v16  ;;  %v5821_v31 = vld [vmem:[%s6437_s22 + $0xa0] sm:$0xf] }
 0x5cf   : > { %v4636_v18 = vpop.f32.mrf.mxu1  ;;  %v5007_v61 = vsel %vm6488_vm5, %v5002_v13, %v5006_v53  ;;  %v5038_v16 = vrot.slane %v5036_v36, 5  ;;  %v4934_v32 = vrot.slane %v4932_v1, 5  ;;  %v5042_v7 = vshll.u32 %v5821_v31, 16 }
 0x5d0   : > { %v4637_v19 = vadd.f32 %v8779_v62, %v4636_v18  ;;  %5256 = vxpose.xlu1.b32.start [1/16] (narrow) %v5208_v45, 32  ;;  %5232 = vxpose.xlu0.b32.cont [9/16] (narrow) %v5200_v46, 32  ;;  %v5016_v63 = vrot.slane %v5015_v59, 4  ;;  %v5035_v46 = vrot.slane %v5033_v58, 4  ;;  %v5211_v45 = vadd.f32 %v5179_v4, %v4645_v42  ;;  %v5822_v4 = vld [vmem:[%s6437_s22 + $0xa4] sm:$0x1] }
 0x5d1   : > { %v8914_v54 = vpop.f32.mrf.mxu1  ;;  %v5046_v33 = vshrl.u32 %v5821_v31, 16  ;;  %v5181_v47 = vunpack.c.l.bf16 %v5007_v61  ;;  %v5044_v41 = vrot.slane %v5042_v7, 5  ;;  %v4935_v6 = vsel %vm6488_vm5, %v4930_v22, %v4934_v32 }
 0x5d2   : > { %v5209_v8 = vadd.f32 %v5177_v30, %v4637_v19  ;;  %v5173_v19 = vunpack.c.l.bf16 %v4911_v14  ;;  %v5021_v34 = vsel %vm6488_vm5, %v5016_v63, %v8924_v55  ;;  %v5039_v57 = vor.u32 %v5038_v16, %v5035_v46 }
 0x5d3   : > { %v4649_v17 = vpop.f32.mrf.mxu1  ;;  %v5048_v39 = vrot.slane %v5046_v33, 4  ;;  %v5182_v55 = vunpack.c.l.bf16 %v5021_v34  ;;  %v5031_v11 = vsel %vm6488_vm5, %v5026_v26, %v5030_v35  ;;  %v5066_v59 = vshll.u32 %v5824_v2, 16 }
 0x5d4   : > { %5257 = vxpose.xlu1.b32.cont [2/16] (narrow) %v5209_v8, 32  ;;  %5233 = vxpose.xlu0.b32.cont [10/16] (narrow) %v5201_v20, 32  ;;  %v4650_v30 = vadd.f32 %v8779_v62, %v4649_v17  ;;  %v5174_v8 = vunpack.c.l.bf16 %v4925_v10  ;;  %v5059_v17 = vrot.slane %v5057_v3, 4  ;;  %v5070_v21 = vshrl.u32 %v5824_v2, 16  ;;  %v5826_v10 = vld [vmem:[%s6437_s22 + $0xb4] sm:$0xf] }
 0x5d5   : > { %v8940_v43 = vpop.f32.mrf.mxu1  ;;  %v5040_v53 = vrot.slane %v5039_v57, 4  ;;  %v5205_v5 = vadd.f32 %v5173_v19, %v4621_v9  ;;  %v4658_v13 = vadd.f32 %v8914_v54, %v8779_v62  ;;  %v5052_v25 = vshll.u32 %v5822_v4, 16  ;;  %v5830_v9 = vld [vmem:[%s6437_s22 + $0xc4] sm:$0xf] }
 0x5d6   : > { %v5212_v44 = vadd.f32 %v5180_v48, %v4650_v30  ;;  %v5063_v42 = vor.u32 %v5062_v12, %v5059_v17  ;;  %v5183_v52 = vunpack.c.l.bf16 %v5031_v11  ;;  %v5068_v0 = vrot.slane %v5066_v59, 5 }
 0x5d7   : > { %v4652_v18 = vpop.f32.mrf.mxu1  ;;  %v5045_v24 = vsel %vm6488_vm5, %v5040_v53, %v5044_v41  ;;  %v5072_v1 = vrot.slane %v5070_v21, 4  ;;  %v5206_v14 = vadd.f32 %v5174_v8, %v4626_v23  ;;  %v4629_v54 = vadd.f32 %v8872_v50, %v8779_v62 }
 0x5d8   : > { %5258 = vxpose.xlu1.b32.cont [3/16] (narrow) %v5210_v37, 32  ;;  %5234 = vxpose.xlu0.b32.cont [11/16] (narrow) %v5202_v27, 32  ;;  %v4653_v20 = vadd.f32 %v8779_v62, %v4652_v18  ;;  %v5049_v27 = vor.u32 %v5048_v39, %v5044_v41  ;;  %v5175_v37 = vunpack.c.l.bf16 %v4935_v6  ;;  %v5214_v63 = vadd.f32 %v5182_v55, %v4658_v13  ;;  %v5828_v6 = vld [vmem:[%s6437_s22 + $0xbc] sm:$0x1] }
 0x5d9   : > { %v8960_v49 = vpop.f32.mrf.mxu1  ;;  %v4661_v56 = vadd.f32 %v8940_v43, %v8779_v62  ;;  %v5054_v61 = vrot.slane %v5052_v25, 5  ;;  %v5081_v46 = vshrl.u32 %v5826_v10, 16  ;;  %v5084_v16 = vshll.u32 %v5826_v10, 16  ;;  %v5829_v43 = vld [vmem:[%s6437_s22 + $0xc0] sm:$0xf] }
 0x5da   : > { %v5213_v58 = vadd.f32 %v5181_v47, %v4653_v20  ;;  %v5050_v48 = vrot.slane %v5049_v27, 4  ;;  %v5184_v60 = vunpack.c.l.bf16 %v5045_v24  ;;  %v5076_v30 = vshll.u32 %v5825_v15, 16 }
 0x5db   : > { %v4665_v36 = vpop.f32.mrf.mxu1  ;;  %v5207_v22 = vadd.f32 %v5175_v37, %v4629_v54  ;;  %v5215_v50 = vadd.f32 %v5183_v52, %v4661_v56  ;;  %v5090_v18 = vshll.u32 %v5827_v40, 16  ;;  %v5083_v19 = vrot.slane %v5081_v46, 4 }
 0x5dc   : > { %5259 = vxpose.xlu1.b32.cont [4/16] (narrow) %v5211_v45, 32  ;;  %5235 = vxpose.xlu0.b32.cont [12/16] (narrow) %v5203_v38, 32  ;;  %v5064_v38 = vrot.slane %v5063_v42, 4  ;;  %v5073_v45 = vor.u32 %v5072_v1, %v5068_v0  ;;  %v4666_v32 = vadd.f32 %v8779_v62, %v4665_v36  ;;  %v5055_v33 = vsel %vm6488_vm5, %v5050_v48, %v5054_v61  ;;  %v5831_v1 = vld [vmem:[%s6437_s22 + $0xc8] sm:$0x1]  ;;  %s323_s22 = sand.u32 1, %s6304_s10  }
 0x5dd   : > { %v6108_v31 = vpop.f32.mrf.mxu1  ;;  %v5086_v34 = vrot.slane %v5084_v16, 5  ;;  %v5094_v3 = vshrl.u32 %v5827_v40, 16  ;;  %v5078_v26 = vrot.slane %v5076_v30, 5  ;;  %v5105_v35 = vshrl.u32 %v5829_v43, 16  ;;  %s5376_s26 = sshll.u32 %s323_s22, 6  ;;  %s9016_s14 = scalar_lea.sflag [#allocation4], %s323_s22 }
 0x5de   : > { %v5069_v28 = vsel %vm6488_vm5, %v5064_v38, %v5068_v0  ;;  %v5216_v47 = vadd.f32 %v5184_v60, %v4666_v32  ;;  %v5074_v20 = vrot.slane %v5073_v45, 4  ;;  %v5092_v41 = vrot.slane %v5090_v18, 5  ;;  %s325_s27 = scalar_lea.vmem [#allocation3], %s5376_s26 }
 0x5df   : > { %v4668_v7 = vpop.f32.mrf.mxu1  ;;  %v5087_v8 = vor.u32 %v5086_v34, %v5083_v19  ;;  %v5096_v39 = vrot.slane %v5094_v3, 4  ;;  %v5186_v55 = vunpack.c.l.bf16 %v5069_v28  ;;  %v5107_v17 = vrot.slane %v5105_v35, 4  ;;  %s5310_s24 = sshll.u32 %s325_s27, 4  ;;  %s9009_s24 = int_to_ptr.vmem [resolvable:$true] %s5310_s24 }
 0x5e0   : > { %5260 = vxpose.xlu1.b32.cont [5/16] (narrow) %v5212_v44, 32  ;;  %5236 = vxpose.xlu0.b32.cont [13/16] (narrow) %v5204_v29, 32  ;;  %v4669_v57 = vadd.f32 %v8779_v62, %v4668_v7  ;;  %v5185_v29 = vunpack.c.l.bf16 %v5055_v33  ;;  %v5108_v44 = vshll.u32 %v5829_v43, 16  ;;  %v5114_v12 = vshll.u32 %v5830_v9, 16  ;;  %s6252_s16 = scalar_lea.vmem %s9009_s24, 1024  ;;  %p6259_p0 = scmp.lt.s32.totalorder %s9009_s24, %s6257_s21 }
 0x5e1   : > { %v6111_v2 = vpop.f32.mrf.mxu1  ;;  %v4674_v4 = vadd.f32 %v8960_v49, %v8779_v62  ;;  %v5118_v21 = vshrl.u32 %v5830_v9, 16  ;;  %v5079_v53 = vsel %vm6488_vm5, %v5074_v20, %v5078_v26  ;;  %v5097_v13 = vor.u32 %v5096_v39, %v5092_v41  ;;  %p6253_p11 = scmp.ne.s32.totalorder %s9009_s24, %s6252_s16  ;;  %p6260_p1 = scmp.lt.s32.totalorder %s6258_s23, %s6252_s16 }
 0x5e2   : > { %v5217_v11 = vadd.f32 %v5185_v29, %v4669_v57  ;;  %v5110_v59 = vrot.slane %v5108_v44, 5  ;;  %v5116_v36 = vrot.slane %v5114_v12, 5  ;;  %v4677_v25 = vadd.f32 %v6108_v31, %v8779_v62 }
 0x5e3   : > { %v4681_v23 = vpop.f32.mrf.mxu1  ;;  %v5218_v27 = vadd.f32 %v5186_v55, %v4674_v4  ;;  %v5187_v37 = vunpack.c.l.bf16 %v5079_v53  ;;  %v5120_v52 = vrot.slane %v5118_v21, 4  ;;  %v5098_v0 = vrot.slane %v5097_v13, 4  ;;  %p6254_p12 = pnand %p6253_p11, %p6410_p5  ;;  %p6261_p2 = por %p6260_p1, %p6259_p0 }
 0x5e4   : > { %5261 = vxpose.xlu1.b32.cont [6/16] (narrow) %v5213_v58, 32  ;;  %5237 = vxpose.xlu0.b32.cont [14/16] (narrow) %v5205_v5, 32  ;;  %v5088_v5 = vrot.slane %v5087_v8, 4  ;;  %v5100_v58 = vshll.u32 %v5828_v6, 16  ;;  %v5111_v42 = vor.u32 %v5110_v59, %v5107_v17  ;;  %v4682_v54 = vadd.f32 %v8779_v62, %v4681_v23 }
 0x5e5   : > { %v6112_v10 = vpop.f32.mrf.mxu1  ;;  %v5121_v15 = vor.u32 %v5120_v52, %v5116_v36  ;;  %v5124_v48 = vshll.u32 %v5831_v1, 16  ;;  %v4690_v30 = vadd.f32 %v6111_v2, %v8779_v62  ;;  %p6255_p13 = pneg %p6254_p12 }
 0x5e6   : > { %v5093_v49 = vsel %vm6488_vm5, %v5088_v5, %v5092_v41  ;;  %v5102_v24 = vrot.slane %v5100_v58, 5  ;;  %v5112_v56 = vrot.slane %v5111_v42, 4  ;;  %v4693_v18 = vadd.f32 %v6112_v10, %v8779_v62 }
 0x5e7   : > { %v4684_v61 = vpop.f32.mrf.mxu1  ;;  %v5122_v60 = vrot.slane %v5121_v15, 4  ;;  %v5126_v45 = vrot.slane %v5124_v48, 5  ;;  %p6262_p3 = pnand %p6261_p2, %p6255_p13 }
 0x5e8   : > { %5262 = vxpose.xlu1.b32.cont [7/16] (narrow) %v5214_v63, 32  ;;  %5238 = vxpose.xlu0.b32.cont [15/16] (narrow) %v5206_v14, 32  ;;  %v5219_v14 = vadd.f32 %v5187_v37, %v4677_v25  ;;  %v5188_v63 = vunpack.c.l.bf16 %v5093_v49  ;;  %v5103_v31 = vsel %vm6488_vm5, %v5098_v0, %v5102_v24  ;;  %v4685_v46 = vadd.f32 %v8779_v62, %v4684_v61 }
 0x5e9   : > { %v5189_v16 = vunpack.c.l.bf16 %v5103_v31  ;;  %v5117_v38 = vsel %vm6488_vm5, %v5112_v56, %v5116_v36  ;;  %v5127_v32 = vsel %vm6488_vm5, %v5122_v60, %v5126_v45 }
 0x5ea   : > { %v5220_v40 = vadd.f32 %v5188_v63, %v4682_v54  ;;  %v5191_v7 = vunpack.c.l.bf16 %v5127_v32 }
 0x5ec   : > { %5263 = vxpose.xlu1.b32.cont [8/16] (narrow) %v5215_v50, 32  ;;  %5239 = vxpose.xlu0.b32.end [16/16] (narrow) %v5207_v22, 32  ;;  %v5190_v22 = vunpack.c.l.bf16 %v5117_v38  ;;  %v5221_v50 = vadd.f32 %v5189_v16, %v4685_v46  ;;  %v5223_v33 = vadd.f32 %v5191_v7, %v4693_v18 }
 0x5ee   : > { %v5222_v43 = vadd.f32 %v5190_v22, %v4690_v30 }
 0x5f0   : > { %5264 = vxpose.xlu1.b32.cont [9/16] (narrow) %v5216_v47, 32 }
 0x5f4   : > { %5265 = vxpose.xlu1.b32.cont [10/16] (narrow) %v5217_v11, 32 }
 0x5f8   : > { %5266 = vxpose.xlu1.b32.cont [11/16] (narrow) %v5218_v27, 32 }
 0x5fc   : > { %5267 = vxpose.xlu1.b32.cont [12/16] (narrow) %v5219_v14, 32 }
 0x600   : > { %5268 = vxpose.xlu1.b32.cont [13/16] (narrow) %v5220_v40, 32 }
 0x604   : > { %5269 = vxpose.xlu1.b32.cont [14/16] (narrow) %v5221_v50, 32 }
 0x608   : > { %5270 = vxpose.xlu1.b32.cont [15/16] (narrow) %v5222_v43, 32 }
 0x60c   : > { %5271 = vxpose.xlu1.b32.end [16/16] (narrow) %v5223_v33, 32 }
 0x62c   : > { %v5240_v19 = vpop.trf.xlu0 }
 0x62d   : > { %5288 = vst [vmem:[%s325_s27] sm:$0xff] %v5240_v19 }
 0x630   : > { %v5241_v34 = vpop.trf.xlu0 }
 0x631   : > { %5290 = vst [vmem:[%s325_s27 + $0x10] sm:$0xff] %v5241_v34 }
 0x634   : > { %v5242_v3 = vpop.trf.xlu0 }
 0x635   : > { %5292 = vst [vmem:[%s325_s27 + $0x20] sm:$0xff] %v5242_v3 }
 0x638   : > { %v5243_v51 = vpop.trf.xlu0 }
 0x639   : > { %5294 = vst [vmem:[%s325_s27 + $0x30] sm:$0xff] %v5243_v51 }
 0x64c   : > { %v5272_v28 = vpop.trf.xlu1 }
 0x64d   : > { %5289 = vst [vmem:[%s325_s27 + $0x8] sm:$0xff] %v5272_v28 }
 0x650   : > { %v5273_v62 = vpop.trf.xlu1 }
 0x651   : > { %5291 = vst [vmem:[%s325_s27 + $0x18] sm:$0xff] %v5273_v62 }
 0x654   : > { %v5274_v26 = vpop.trf.xlu1 }
 0x655   : > { %5293 = vst [vmem:[%s325_s27 + $0x28] sm:$0xff] %v5274_v26 }
 0x658   : > { %v5275_v35 = vpop.trf.xlu1 }
 0x659   : > { %5295 = vst [vmem:[%s325_s27 + $0x38] sm:$0xff] %v5275_v35 }
 0x65a   : > { %6265 = shalt.err (!%p6262_p3)
}
 0x65b   : > { %s6266_s22 = scalar_lea.hbm %s9014_s29, 1024  ;;  %s6270_s25 = scalar_lea.hbm %s9065_s9, 2048 }
 0x65c   : > { %p6267_p4 = scmp.ne.s32.totalorder %s9014_s29, %s6266_s22  ;;  %p6271_p9 = scmp.lt.s32.totalorder %s9014_s29, %s9065_s9 }
 0x65d   : > { %p6272_p10 = scmp.lt.s32.totalorder %s6270_s25, %s6266_s22 }
 0x65e   : > { %p6268_p7 = pnand %p6267_p4, %p6410_p5 }
 0x65f   : > { %p6273_p11 = por %p6272_p10, %p6271_p9 }
 0x660   : > { %p6269_p8 = pneg %p6268_p7 }
 0x662   : > { %p6274_p12 = pnand %p6273_p11, %p6269_p8 }
 0x664   : > { %6277 = shalt.err (!%p6274_p12)
}
 0x665   : > { %s6320_s16 = smov 256   ;;  %s6321_s13 = smov 16  }
 0x666   : > { %6118 = dma.vmem_to_hbm [thread:$0]  (%p6410_p5), %s9009_s24, 1024, %s9014_s29, %s9016_s14, %s6320_s16, %s6320_s16, %s6321_s13  }
 0x667 PF: > { %p6124_p13 = scmp.ge.s32.totalorder %s6312_s12, 2  ;;  %s5325_s21 = sand.u32 1, %s6300_s30  }
 0x668   : > { %s5326_s23 = scalar_lea.sflag [#allocation4], %s5325_s21 }
 0x669   : > { %p6121_p0 = pnand %p6124_p13, %p6414_p6 }
 0x66b   : > { %p6122_p1 = pneg %p6121_p0 }
 0x66d   : > { %6295 = dma.done.wait (%p6122_p1), %s5326_s23, 1024  }
 0x66e   : > { %6297 = vsyncadd (%p6122_p1), %s5326_s23, 4294966272  ;;  %p19_p2 = scmp.ge.s32.totalorder %s6397_s15, 4   ;;  %s9106_s30 = smov %s6304_s10 }
 0x66f   : > { %s9107_s10 = smov %s6308_s11  ;;  %s9108_s11 = smov %s6408_s18 }
 0x670   : > { %s9109_s12 = smov %s6397_s15  ;;  %21 = sbr.rel (!%p19_p2) target bundleno = 3 (0x3), region = 93 }
 0x675   :  { %5331 = vsyncpa [#allocation4], 1 }
 0x676   :  { %5333 = vsyncpa [#allocation4 + $0x1], 1 }

</bundles_post_ra>
